<compile_context>
chip_gen: v7x
topology: tpu7x:2x2x1
jax: 0.10.0
libtpu: 0.0.40
codegen_flags: <defaults>
</compile_context>

<pallas_src>
import functools

import jax
import jax.numpy as jnp
from jax import lax
from jax.experimental import pallas as pl
from jax.experimental.pallas import tpu as pltpu

_MXU_DTYPE = jnp.bfloat16
_VMEM_SPEC = pl.BlockSpec(memory_space=pltpu.MemorySpace.VMEM)


def _padding(kernel_size: int):
    if kernel_size % 2 == 0:
        return (kernel_size // 2, kernel_size // 2 - 1)
    return (kernel_size // 2, kernel_size // 2)


# ---------------------------------------------------------------------------
# Fused Pallas kernel (whole network, register-resident intermediates)
# ---------------------------------------------------------------------------

def _inception_time_kernel(x_ref, wb_ref, wc_ref, vec_ref, ws_ref, rvec_ref,
                           out_ref, *, num_blocks, in_features, n_filters,
                           bottleneck, kernel_sizes, paddings, eps):
    B, T, _ = x_ref.shape
    F = n_filters
    Cb = bottleneck
    K1 = kernel_sizes[0]
    PL, PR = paddings[0]

    def batchnorm_relu(z, gamma, beta, extra=None):
        # Training-mode BN: one-pass batch statistics (biased variance),
        # clamped at 0 to guard f32 cancellation in E[x^2] - E[x]^2.
        n = float(B * T)
        s = jnp.sum(z, axis=(0, 1), keepdims=True)
        ss = jnp.sum(z * z, axis=(0, 1), keepdims=True)
        mu = s / n
        var = jnp.maximum(ss / n - mu * mu, 0.0)
        zh = (z - mu) * lax.rsqrt(var + eps) * gamma + beta
        if extra is not None:
            zh = zh + extra
        return jnp.maximum(zh, 0.0)

    x_b = x_ref[...]            # bf16 activation feeding the next matmul
    res_b = x_b                 # bf16 residual-branch input
    x_f = None                  # f32 activation (residual add / final store)
    res_idx = 0

    for i in range(num_blocks):                 # static unroll over blocks
        cin = in_features if i == 0 else 4 * F
        wb = wb_ref[i, 0:cin, :]                # (cin, Cb)        bf16
        wc = wc_ref[i]                          # ((K1+1)*Cb, 4F)  bf16
        bb = vec_ref[i, 0:1, 0:Cb]              # (1, Cb)          f32
        bc = vec_ref[i, 1:2, 0:4 * F]           # (1, 4F)
        gamma = vec_ref[i, 2:3, 0:4 * F]
        beta = vec_ref[i, 3:4, 0:4 * F]

        # 1x1 bottleneck conv (bf16 operands, f32 accumulation) + bias.
        y = lax.dot_general(x_b, wb, (((2,), (0,)), ((), ())),
                            preferred_element_type=jnp.float32) + bb
        yb = y.astype(_MXU_DTYPE)

        # Zero padding for the conv branches -- held entirely in registers
        # (no scratch buffer, no masked/unaligned VMEM stores).
        pads = [jnp.zeros((B, PL, Cb), _MXU_DTYPE), yb]
        if PR > 0:
            pads.append(jnp.zeros((B, PR, Cb), _MXU_DTYPE))
        y_zpad = jnp.concatenate(pads, axis=1)          # (B, T+PL+PR, Cb)

        # MaxPool1d(kernel=3, stride=1, padding=1); -1e30 stands in for the
        # -inf pad (representable in bf16, below any real activation).
        ninf = jnp.full((B, 1, Cb), -1e30, _MXU_DTYPE)
        y_mpad = jnp.concatenate([ninf, yb, ninf], axis=1)
        mp = jnp.maximum(
            jnp.maximum(y_mpad[:, 0:T, :], y_mpad[:, 1:T + 1, :]),
            y_mpad[:, 2:T + 2, :])

        # In-register im2col slab: K1 shifted copies of y plus the pooled
        # branch, concatenated on the channel axis and fed straight to the
        # MXU (no slab scratch round-trip).
        slab = jnp.concatenate(
            [y_zpad[:, k:k + T, :] for k in range(K1)] + [mp], axis=-1)

        # One wide matmul produces all four branches at once (lane-dense
        # 4F-wide output; the branch weights were packed along the output
        # axis in the wrapper).
        z = lax.dot_general(slab, wc, (((2,), (0,)), ((), ())),
                            preferred_element_type=jnp.float32) + bc
        x_f = batchnorm_relu(z, gamma, beta)

        if i % 3 == 2:
            # Residual block: bias-free 1x1 shortcut conv + BN + add + ReLU.
            cres = in_features if res_idx == 0 else 4 * F
            ws = ws_ref[res_idx, 0:cres, :]
            rg = rvec_ref[res_idx, 0:1, :]
            rb = rvec_ref[res_idx, 1:2, :]
            sc = lax.dot_general(res_b, ws, (((2,), (0,)), ((), ())),
                                 preferred_element_type=jnp.float32)
            x_f = batchnorm_relu(sc, rg, rb, extra=x_f)
            res_b = x_f.astype(_MXU_DTYPE)
            res_idx += 1

        x_b = x_f.astype(_MXU_DTYPE)

    out_ref[...] = x_f                           # single lane-dense f32 store


# ---------------------------------------------------------------------------
# Wrapper: weight packing + pallas_call
# ---------------------------------------------------------------------------

def _pack_params(params, config, in_features):
    """Pack all per-block parameters into 5 arrays (few, large DMAs).

    wc packing: the three dilated convs become sub-ranges of the im2col rows
    (branch b's taps placed at row offset (PL - pad_b)*Cb), the pooled 1x1
    branch occupies the final Cb rows; outputs are stacked along the 4F axis.
    """
    F = config["num_filters"]
    Cb = config["bottleneck_size"]
    nb = config["num_blocks"]
    kernel_sizes = [config["kernel_size"] // 2 ** i for i in range(3)]
    paddings = [_padding(k) for k in kernel_sizes]
    K1 = kernel_sizes[0]
    PL = paddings[0][0]
    cin_max = max(in_features, 4 * F)
    vw = max(Cb, 4 * F)
    n_res = max(1, sum(1 for i in range(nb) if i % 3 == 2))

    wb_all = jnp.zeros((nb, cin_max, Cb), jnp.float32)
    wc_all = jnp.zeros((nb, (K1 + 1) * Cb, 4 * F), jnp.float32)
    vec_all = jnp.zeros((nb, 4, vw), jnp.float32)
    ws_all = jnp.zeros((n_res, cin_max, 4 * F), jnp.float32)
    rvec_all = jnp.zeros((n_res, 2, 4 * F), jnp.float32)

    r = 0
    for i in range(nb):
        blk = params[f"block_{i}"]
        cin = in_features if i == 0 else 4 * F
        wb_all = wb_all.at[i, :cin, :].set(blk["wb"])

        wc = jnp.zeros(((K1 + 1) * Cb, 4 * F), jnp.float32)
        # branch 1 (largest kernel): occupies all K1 taps
        wc = wc.at[0:K1 * Cb, 0:F].set(blk["w1"].reshape(K1 * Cb, F))
        # branch 2
        K2, p2 = kernel_sizes[1], paddings[1][0]
        o2 = PL - p2
        wc = wc.at[o2 * Cb:(o2 + K2) * Cb, F:2 * F].set(
            blk["w2"].reshape(K2 * Cb, F))
        # branch 3
        K3, p3 = kernel_sizes[2], paddings[2][0]
        o3 = PL - p3
        wc = wc.at[o3 * Cb:(o3 + K3) * Cb, 2 * F:3 * F].set(
            blk["w3"].reshape(K3 * Cb, F))
        # pooled branch (1x1 conv on the maxpool output)
        wc = wc.at[K1 * Cb:(K1 + 1) * Cb, 3 * F:4 * F].set(blk["wp"])
        wc_all = wc_all.at[i].set(wc)

        vec_all = vec_all.at[i, 0, 0:Cb].set(blk["bb"][0])
        bc = jnp.concatenate([blk["b1"], blk["b2"], blk["b3"], blk["bp"]],
                             axis=1)
        vec_all = vec_all.at[i, 1, 0:4 * F].set(bc[0])
        vec_all = vec_all.at[i, 2, 0:4 * F].set(blk["gamma"][0])
        vec_all = vec_all.at[i, 3, 0:4 * F].set(blk["beta"][0])

        if i % 3 == 2:
            rp = params[f"res_{i}"]
            cres = in_features if r == 0 else 4 * F
            ws_all = ws_all.at[r, :cres, :].set(rp["ws"])
            rvec_all = rvec_all.at[r, 0].set(rp["gamma"][0])
            rvec_all = rvec_all.at[r, 1].set(rp["beta"][0])
            r += 1

    return (wb_all.astype(_MXU_DTYPE), wc_all.astype(_MXU_DTYPE), vec_all,
            ws_all.astype(_MXU_DTYPE), rvec_all)


def inception_time_forward(x, params, config):
    # The module does x.transpose(1,2) ... transpose back; identity in (B,T,C).
    B, T, in_features = x.shape
    F = config["num_filters"]
    Cb = config["bottleneck_size"]
    nb = config["num_blocks"]
    kernel_sizes = tuple(config["kernel_size"] // 2 ** i for i in range(3))
    paddings = tuple(_padding(k) for k in kernel_sizes)

    packed = _pack_params(params, config, in_features)

    kern = functools.partial(
        _inception_time_kernel, num_blocks=nb, in_features=in_features,
        n_filters=F, bottleneck=Cb, kernel_sizes=kernel_sizes,
        paddings=paddings, eps=1e-5)

    # Whole network in ONE pallas_call: at these sizes every activation and
    # weight fits comfortably in VMEM, so there is one launch and zero
    # intermediate HBM traffic.
    # TODO(synk): at realistic (B, T) add a grid over B/T (BlockSpec
    # index_maps, "parallel" batch semantics for v7x megacore, explicit
    # vmem_limit_bytes under v7x's 64 MiB physical VMEM) plus a separate
    # global BatchNorm-statistics pass so tiling does not change numerics.
    return pl.pallas_call(
        kern,
        out_shape=jax.ShapeDtypeStruct((B, T, 4 * F), jnp.float32),
        in_specs=[_VMEM_SPEC] * 6,
        out_specs=_VMEM_SPEC,
    )(x.astype(_MXU_DTYPE), *packed)


# ---------------------------------------------------------------------------
# Parameter init (deterministic, synthetic; conv weights stored as (K, Cin, F))
# ---------------------------------------------------------------------------

def init_params(key, in_features, config):
    counter = [0]

    def nk():
        counter[0] += 1
        return jax.random.fold_in(key, counter[0])

    def normal(shape, scale=0.1):
        return scale * jax.random.normal(nk(), shape, jnp.float32)

    F = config["num_filters"]
    Cb = config["bottleneck_size"]
    K = config["kernel_size"]
    kernel_sizes = [K // 2 ** i for i in range(3)]

    params = {}
    n_inputs = in_features
    n_res_inputs = in_features
    for i in range(config["num_blocks"]):
        params[f"block_{i}"] = {
            "wb": normal((n_inputs, Cb)),
            "bb": normal((1, Cb)),
            "w1": normal((kernel_sizes[0], Cb, F)),
            "b1": normal((1, F)),
            "w2": normal((kernel_sizes[1], Cb, F)),
            "b2": normal((1, F)),
            "w3": normal((kernel_sizes[2], Cb, F)),
            "b3": normal((1, F)),
            "wp": normal((Cb, F)),
            "bp": normal((1, F)),
            "gamma": 1.0 + normal((1, 4 * F)),
            "beta": normal((1, 4 * F)),
        }
        if i % 3 == 2:
            params[f"res_{i}"] = {
                "ws": normal((n_res_inputs, 4 * F)),
                "gamma": 1.0 + normal((1, 4 * F)),
                "beta": normal((1, 4 * F)),
            }
            n_res_inputs = 4 * F
        n_inputs = 4 * F
    return params


if __name__ == "__main__":
    config = {
        "num_blocks": 6,
        "num_filters": 4,
        "bottleneck_size": 8,
        "kernel_size": 8,
    }
    in_features = 4
    B, T = 2, 16

    key = jax.random.PRNGKey(0)
    x = jax.random.normal(jax.random.fold_in(key, 1000), (B, T, in_features),
                          jnp.float32)
    params = init_params(key, in_features, config)

    fwd = jax.jit(functools.partial(inception_time_forward, config=config))
    out = jax.block_until_ready(fwd(x, params))

    assert out.shape == (B, T, 4 * config["num_filters"]), out.shape
    assert bool(jnp.all(jnp.isfinite(out)))
    print("KERNEL_OK")
</pallas_src>

<mosaic_0001>
module attributes {stable_mosaic.version = 11 : i64} {
  func.func @_inception_time_kernel(%arg0: memref<2x16x4xbf16, #tpu.memory_space<vmem>>, %arg1: memref<6x16x8xbf16, #tpu.memory_space<vmem>>, %arg2: memref<6x72x16xbf16, #tpu.memory_space<vmem>>, %arg3: memref<6x4x16xf32, #tpu.memory_space<vmem>>, %arg4: memref<2x16x16xbf16, #tpu.memory_space<vmem>>, %arg5: memref<2x2x16xf32, #tpu.memory_space<vmem>>, %arg6: memref<2x16x16xf32, #tpu.memory_space<vmem>>) attributes {dimension_semantics = [], scalar_prefetch = 0 : i64, scratch_operands = 0 : i64, tpu.core_type = #tpu.core_type<tc>} {
    %c0 = arith.constant 0 : index
    %c0_0 = arith.constant 0 : index
    %c0_1 = arith.constant 0 : index
    %0 = vector.load %arg0[%c0, %c0_0, %c0_1] : memref<2x16x4xbf16, #tpu.memory_space<vmem>>, vector<2x16x4xbf16>
    %c0_2 = arith.constant 0 : index
    %c0_3 = arith.constant 0 : index
    %c0_4 = arith.constant 0 : index
    %1 = vector.load %arg1[%c0_2, %c0_3, %c0_4] : memref<6x16x8xbf16, #tpu.memory_space<vmem>>, vector<1x4x8xbf16>
    %2 = vector.shape_cast %1 : vector<1x4x8xbf16> to vector<4x8xbf16>
    %c0_5 = arith.constant 0 : index
    %c0_6 = arith.constant 0 : index
    %c0_7 = arith.constant 0 : index
    %3 = vector.load %arg2[%c0_5, %c0_6, %c0_7] : memref<6x72x16xbf16, #tpu.memory_space<vmem>>, vector<1x72x16xbf16>
    %4 = vector.shape_cast %3 : vector<1x72x16xbf16> to vector<72x16xbf16>
    %c0_8 = arith.constant 0 : index
    %c0_9 = arith.constant 0 : index
    %c0_10 = arith.constant 0 : index
    %5 = vector.load %arg3[%c0_8, %c0_9, %c0_10] : memref<6x4x16xf32, #tpu.memory_space<vmem>>, vector<1x1x8xf32>
    %6 = vector.shape_cast %5 : vector<1x1x8xf32> to vector<1x8xf32>
    %c0_11 = arith.constant 0 : index
    %c1 = arith.constant 1 : index
    %c0_12 = arith.constant 0 : index
    %7 = vector.load %arg3[%c0_11, %c1, %c0_12] : memref<6x4x16xf32, #tpu.memory_space<vmem>>, vector<1x1x16xf32>
    %8 = vector.shape_cast %7 : vector<1x1x16xf32> to vector<1x16xf32>
    %c0_13 = arith.constant 0 : index
    %c2 = arith.constant 2 : index
    %c0_14 = arith.constant 0 : index
    %9 = vector.load %arg3[%c0_13, %c2, %c0_14] : memref<6x4x16xf32, #tpu.memory_space<vmem>>, vector<1x1x16xf32>
    %10 = vector.shape_cast %9 : vector<1x1x16xf32> to vector<1x16xf32>
    %c0_15 = arith.constant 0 : index
    %c3 = arith.constant 3 : index
    %c0_16 = arith.constant 0 : index
    %11 = vector.load %arg3[%c0_15, %c3, %c0_16] : memref<6x4x16xf32, #tpu.memory_space<vmem>>, vector<1x1x16xf32>
    %12 = vector.shape_cast %11 : vector<1x1x16xf32> to vector<1x16xf32>
    %cst = arith.constant dense<0.000000e+00> : vector<2x16x8xf32>
    %13 = tpu.matmul %0, %2, %cst {dimension_numbers = #tpu.dot_dimension_numbers<[2], [0], [0, 1], [1], [0, 0, 0, 1, 1, 1], [], []>} : vector<2x16x4xbf16>, vector<4x8xbf16>, vector<2x16x8xf32> -> vector<2x16x8xf32>
    %14 = vector.shape_cast %6 : vector<1x8xf32> to vector<1x1x8xf32>
    %15 = vector.broadcast %14 : vector<1x1x8xf32> to vector<2x16x8xf32>
    %16 = arith.addf %13, %15 : vector<2x16x8xf32>
    %17 = arith.truncf %16 : vector<2x16x8xf32> to vector<2x16x8xbf16>
    %cst_17 = arith.constant 0.000000e+00 : bf16
    %18 = vector.broadcast %cst_17 : bf16 to vector<2x4x8xbf16>
    %cst_18 = arith.constant 0.000000e+00 : bf16
    %19 = vector.broadcast %cst_18 : bf16 to vector<2x3x8xbf16>
    %20 = tpu.concatenate %18, %17, %19 in 1 : vector<2x4x8xbf16>, vector<2x16x8xbf16>, vector<2x3x8xbf16> -> vector<2x23x8xbf16>
    %cst_19 = arith.constant -1.000260e+30 : bf16
    %21 = vector.broadcast %cst_19 : bf16 to vector<2x1x8xbf16>
    %22 = tpu.concatenate %21, %17, %21 in 1 : vector<2x1x8xbf16>, vector<2x16x8xbf16>, vector<2x1x8xbf16> -> vector<2x18x8xbf16>
    %23 = vector.extract_strided_slice %22 {offsets = [0, 0, 0], sizes = [2, 16, 8], strides = [1, 1, 1]} : vector<2x18x8xbf16> to vector<2x16x8xbf16>
    %24 = vector.extract_strided_slice %22 {offsets = [0, 1, 0], sizes = [2, 16, 8], strides = [1, 1, 1]} : vector<2x18x8xbf16> to vector<2x16x8xbf16>
    %25 = arith.maximumf %23, %24 : vector<2x16x8xbf16>
    %26 = vector.extract_strided_slice %22 {offsets = [0, 2, 0], sizes = [2, 16, 8], strides = [1, 1, 1]} : vector<2x18x8xbf16> to vector<2x16x8xbf16>
    %27 = arith.maximumf %25, %26 : vector<2x16x8xbf16>
    %28 = vector.extract_strided_slice %20 {offsets = [0, 0, 0], sizes = [2, 16, 8], strides = [1, 1, 1]} : vector<2x23x8xbf16> to vector<2x16x8xbf16>
    %29 = vector.extract_strided_slice %20 {offsets = [0, 1, 0], sizes = [2, 16, 8], strides = [1, 1, 1]} : vector<2x23x8xbf16> to vector<2x16x8xbf16>
    %30 = vector.extract_strided_slice %20 {offsets = [0, 2, 0], sizes = [2, 16, 8], strides = [1, 1, 1]} : vector<2x23x8xbf16> to vector<2x16x8xbf16>
    %31 = vector.extract_strided_slice %20 {offsets = [0, 3, 0], sizes = [2, 16, 8], strides = [1, 1, 1]} : vector<2x23x8xbf16> to vector<2x16x8xbf16>
    %32 = vector.extract_strided_slice %20 {offsets = [0, 4, 0], sizes = [2, 16, 8], strides = [1, 1, 1]} : vector<2x23x8xbf16> to vector<2x16x8xbf16>
    %33 = vector.extract_strided_slice %20 {offsets = [0, 5, 0], sizes = [2, 16, 8], strides = [1, 1, 1]} : vector<2x23x8xbf16> to vector<2x16x8xbf16>
    %34 = vector.extract_strided_slice %20 {offsets = [0, 6, 0], sizes = [2, 16, 8], strides = [1, 1, 1]} : vector<2x23x8xbf16> to vector<2x16x8xbf16>
    %35 = vector.extract_strided_slice %20 {offsets = [0, 7, 0], sizes = [2, 16, 8], strides = [1, 1, 1]} : vector<2x23x8xbf16> to vector<2x16x8xbf16>
    %36 = tpu.concatenate %28, %29, %30, %31, %32, %33, %34, %35, %27 in 2 : vector<2x16x8xbf16>, vector<2x16x8xbf16>, vector<2x16x8xbf16>, vector<2x16x8xbf16>, vector<2x16x8xbf16>, vector<2x16x8xbf16>, vector<2x16x8xbf16>, vector<2x16x8xbf16>, vector<2x16x8xbf16> -> vector<2x16x72xbf16>
    %cst_20 = arith.constant dense<0.000000e+00> : vector<2x16x16xf32>
    %37 = tpu.matmul %36, %4, %cst_20 {dimension_numbers = #tpu.dot_dimension_numbers<[2], [0], [0, 1], [1], [0, 0, 0, 1, 1, 1], [], []>} : vector<2x16x72xbf16>, vector<72x16xbf16>, vector<2x16x16xf32> -> vector<2x16x16xf32>
    %38 = vector.shape_cast %8 : vector<1x16xf32> to vector<1x1x16xf32>
    %39 = vector.broadcast %38 : vector<1x1x16xf32> to vector<2x16x16xf32>
    %40 = arith.addf %37, %39 : vector<2x16x16xf32>
    %cst_21 = arith.constant dense<0.000000e+00> : vector<16xf32>
    %41 = vector.multi_reduction <add>, %40, %cst_21 [0, 1] : vector<2x16x16xf32> to vector<16xf32>
    %42 = vector.shape_cast %41 : vector<16xf32> to vector<1x1x16xf32>
    %43 = arith.mulf %40, %40 : vector<2x16x16xf32>
    %cst_22 = arith.constant dense<0.000000e+00> : vector<16xf32>
    %44 = vector.multi_reduction <add>, %43, %cst_22 [0, 1] : vector<2x16x16xf32> to vector<16xf32>
    %45 = vector.shape_cast %44 : vector<16xf32> to vector<1x1x16xf32>
    %cst_23 = arith.constant 3.200000e+01 : f32
    %46 = vector.broadcast %cst_23 : f32 to vector<1x1x16xf32>
    %47 = arith.divf %42, %46 : vector<1x1x16xf32>
    %cst_24 = arith.constant 3.200000e+01 : f32
    %48 = vector.broadcast %cst_24 : f32 to vector<1x1x16xf32>
    %49 = arith.divf %45, %48 : vector<1x1x16xf32>
    %50 = arith.mulf %47, %47 : vector<1x1x16xf32>
    %51 = arith.subf %49, %50 : vector<1x1x16xf32>
    %cst_25 = arith.constant 0.000000e+00 : f32
    %52 = vector.broadcast %cst_25 : f32 to vector<1x1x16xf32>
    %53 = arith.maximumf %51, %52 : vector<1x1x16xf32>
    %54 = vector.broadcast %47 : vector<1x1x16xf32> to vector<2x16x16xf32>
    %55 = arith.subf %40, %54 : vector<2x16x16xf32>
    %cst_26 = arith.constant 9.99999974E-6 : f32
    %56 = vector.broadcast %cst_26 : f32 to vector<1x1x16xf32>
    %57 = arith.addf %53, %56 : vector<1x1x16xf32>
    %58 = math.rsqrt %57 : vector<1x1x16xf32>
    %59 = vector.broadcast %58 : vector<1x1x16xf32> to vector<2x16x16xf32>
    %60 = arith.mulf %55, %59 : vector<2x16x16xf32>
    %61 = vector.shape_cast %10 : vector<1x16xf32> to vector<1x1x16xf32>
    %62 = vector.broadcast %61 : vector<1x1x16xf32> to vector<2x16x16xf32>
    %63 = arith.mulf %60, %62 : vector<2x16x16xf32>
    %64 = vector.shape_cast %12 : vector<1x16xf32> to vector<1x1x16xf32>
    %65 = vector.broadcast %64 : vector<1x1x16xf32> to vector<2x16x16xf32>
    %66 = arith.addf %63, %65 : vector<2x16x16xf32>
    %cst_27 = arith.constant 0.000000e+00 : f32
    %67 = vector.broadcast %cst_27 : f32 to vector<2x16x16xf32>
    %68 = arith.maximumf %66, %67 : vector<2x16x16xf32>
    %69 = arith.truncf %68 : vector<2x16x16xf32> to vector<2x16x16xbf16>
    %c1_28 = arith.constant 1 : index
    %c0_29 = arith.constant 0 : index
    %c0_30 = arith.constant 0 : index
    %70 = vector.load %arg1[%c1_28, %c0_29, %c0_30] : memref<6x16x8xbf16, #tpu.memory_space<vmem>>, vector<1x16x8xbf16>
    %71 = vector.shape_cast %70 : vector<1x16x8xbf16> to vector<16x8xbf16>
    %c1_31 = arith.constant 1 : index
    %c0_32 = arith.constant 0 : index
    %c0_33 = arith.constant 0 : index
    %72 = vector.load %arg2[%c1_31, %c0_32, %c0_33] : memref<6x72x16xbf16, #tpu.memory_space<vmem>>, vector<1x72x16xbf16>
    %73 = vector.shape_cast %72 : vector<1x72x16xbf16> to vector<72x16xbf16>
    %c1_34 = arith.constant 1 : index
    %c0_35 = arith.constant 0 : index
    %c0_36 = arith.constant 0 : index
    %74 = vector.load %arg3[%c1_34, %c0_35, %c0_36] : memref<6x4x16xf32, #tpu.memory_space<vmem>>, vector<1x1x8xf32>
    %75 = vector.shape_cast %74 : vector<1x1x8xf32> to vector<1x8xf32>
    %c1_37 = arith.constant 1 : index
    %c1_38 = arith.constant 1 : index
    %c0_39 = arith.constant 0 : index
    %76 = vector.load %arg3[%c1_37, %c1_38, %c0_39] : memref<6x4x16xf32, #tpu.memory_space<vmem>>, vector<1x1x16xf32>
    %77 = vector.shape_cast %76 : vector<1x1x16xf32> to vector<1x16xf32>
    %c1_40 = arith.constant 1 : index
    %c2_41 = arith.constant 2 : index
    %c0_42 = arith.constant 0 : index
    %78 = vector.load %arg3[%c1_40, %c2_41, %c0_42] : memref<6x4x16xf32, #tpu.memory_space<vmem>>, vector<1x1x16xf32>
    %79 = vector.shape_cast %78 : vector<1x1x16xf32> to vector<1x16xf32>
    %c1_43 = arith.constant 1 : index
    %c3_44 = arith.constant 3 : index
    %c0_45 = arith.constant 0 : index
    %80 = vector.load %arg3[%c1_43, %c3_44, %c0_45] : memref<6x4x16xf32, #tpu.memory_space<vmem>>, vector<1x1x16xf32>
    %81 = vector.shape_cast %80 : vector<1x1x16xf32> to vector<1x16xf32>
    %cst_46 = arith.constant dense<0.000000e+00> : vector<2x16x8xf32>
    %82 = tpu.matmul %69, %71, %cst_46 {dimension_numbers = #tpu.dot_dimension_numbers<[2], [0], [0, 1], [1], [0, 0, 0, 1, 1, 1], [], []>} : vector<2x16x16xbf16>, vector<16x8xbf16>, vector<2x16x8xf32> -> vector<2x16x8xf32>
    %83 = vector.shape_cast %75 : vector<1x8xf32> to vector<1x1x8xf32>
    %84 = vector.broadcast %83 : vector<1x1x8xf32> to vector<2x16x8xf32>
    %85 = arith.addf %82, %84 : vector<2x16x8xf32>
    %86 = arith.truncf %85 : vector<2x16x8xf32> to vector<2x16x8xbf16>
    %cst_47 = arith.constant 0.000000e+00 : bf16
    %87 = vector.broadcast %cst_47 : bf16 to vector<2x4x8xbf16>
    %cst_48 = arith.constant 0.000000e+00 : bf16
    %88 = vector.broadcast %cst_48 : bf16 to vector<2x3x8xbf16>
    %89 = tpu.concatenate %87, %86, %88 in 1 : vector<2x4x8xbf16>, vector<2x16x8xbf16>, vector<2x3x8xbf16> -> vector<2x23x8xbf16>
    %cst_49 = arith.constant -1.000260e+30 : bf16
    %90 = vector.broadcast %cst_49 : bf16 to vector<2x1x8xbf16>
    %91 = tpu.concatenate %90, %86, %90 in 1 : vector<2x1x8xbf16>, vector<2x16x8xbf16>, vector<2x1x8xbf16> -> vector<2x18x8xbf16>
    %92 = vector.extract_strided_slice %91 {offsets = [0, 0, 0], sizes = [2, 16, 8], strides = [1, 1, 1]} : vector<2x18x8xbf16> to vector<2x16x8xbf16>
    %93 = vector.extract_strided_slice %91 {offsets = [0, 1, 0], sizes = [2, 16, 8], strides = [1, 1, 1]} : vector<2x18x8xbf16> to vector<2x16x8xbf16>
    %94 = arith.maximumf %92, %93 : vector<2x16x8xbf16>
    %95 = vector.extract_strided_slice %91 {offsets = [0, 2, 0], sizes = [2, 16, 8], strides = [1, 1, 1]} : vector<2x18x8xbf16> to vector<2x16x8xbf16>
    %96 = arith.maximumf %94, %95 : vector<2x16x8xbf16>
    %97 = vector.extract_strided_slice %89 {offsets = [0, 0, 0], sizes = [2, 16, 8], strides = [1, 1, 1]} : vector<2x23x8xbf16> to vector<2x16x8xbf16>
    %98 = vector.extract_strided_slice %89 {offsets = [0, 1, 0], sizes = [2, 16, 8], strides = [1, 1, 1]} : vector<2x23x8xbf16> to vector<2x16x8xbf16>
    %99 = vector.extract_strided_slice %89 {offsets = [0, 2, 0], sizes = [2, 16, 8], strides = [1, 1, 1]} : vector<2x23x8xbf16> to vector<2x16x8xbf16>
    %100 = vector.extract_strided_slice %89 {offsets = [0, 3, 0], sizes = [2, 16, 8], strides = [1, 1, 1]} : vector<2x23x8xbf16> to vector<2x16x8xbf16>
    %101 = vector.extract_strided_slice %89 {offsets = [0, 4, 0], sizes = [2, 16, 8], strides = [1, 1, 1]} : vector<2x23x8xbf16> to vector<2x16x8xbf16>
    %102 = vector.extract_strided_slice %89 {offsets = [0, 5, 0], sizes = [2, 16, 8], strides = [1, 1, 1]} : vector<2x23x8xbf16> to vector<2x16x8xbf16>
    %103 = vector.extract_strided_slice %89 {offsets = [0, 6, 0], sizes = [2, 16, 8], strides = [1, 1, 1]} : vector<2x23x8xbf16> to vector<2x16x8xbf16>
    %104 = vector.extract_strided_slice %89 {offsets = [0, 7, 0], sizes = [2, 16, 8], strides = [1, 1, 1]} : vector<2x23x8xbf16> to vector<2x16x8xbf16>
    %105 = tpu.concatenate %97, %98, %99, %100, %101, %102, %103, %104, %96 in 2 : vector<2x16x8xbf16>, vector<2x16x8xbf16>, vector<2x16x8xbf16>, vector<2x16x8xbf16>, vector<2x16x8xbf16>, vector<2x16x8xbf16>, vector<2x16x8xbf16>, vector<2x16x8xbf16>, vector<2x16x8xbf16> -> vector<2x16x72xbf16>
    %cst_50 = arith.constant dense<0.000000e+00> : vector<2x16x16xf32>
    %106 = tpu.matmul %105, %73, %cst_50 {dimension_numbers = #tpu.dot_dimension_numbers<[2], [0], [0, 1], [1], [0, 0, 0, 1, 1, 1], [], []>} : vector<2x16x72xbf16>, vector<72x16xbf16>, vector<2x16x16xf32> -> vector<2x16x16xf32>
    %107 = vector.shape_cast %77 : vector<1x16xf32> to vector<1x1x16xf32>
    %108 = vector.broadcast %107 : vector<1x1x16xf32> to vector<2x16x16xf32>
    %109 = arith.addf %106, %108 : vector<2x16x16xf32>
    %cst_51 = arith.constant dense<0.000000e+00> : vector<16xf32>
    %110 = vector.multi_reduction <add>, %109, %cst_51 [0, 1] : vector<2x16x16xf32> to vector<16xf32>
    %111 = vector.shape_cast %110 : vector<16xf32> to vector<1x1x16xf32>
    %112 = arith.mulf %109, %109 : vector<2x16x16xf32>
    %cst_52 = arith.constant dense<0.000000e+00> : vector<16xf32>
    %113 = vector.multi_reduction <add>, %112, %cst_52 [0, 1] : vector<2x16x16xf32> to vector<16xf32>
    %114 = vector.shape_cast %113 : vector<16xf32> to vector<1x1x16xf32>
    %cst_53 = arith.constant 3.200000e+01 : f32
    %115 = vector.broadcast %cst_53 : f32 to vector<1x1x16xf32>
    %116 = arith.divf %111, %115 : vector<1x1x16xf32>
    %cst_54 = arith.constant 3.200000e+01 : f32
    %117 = vector.broadcast %cst_54 : f32 to vector<1x1x16xf32>
    %118 = arith.divf %114, %117 : vector<1x1x16xf32>
    %119 = arith.mulf %116, %116 : vector<1x1x16xf32>
    %120 = arith.subf %118, %119 : vector<1x1x16xf32>
    %cst_55 = arith.constant 0.000000e+00 : f32
    %121 = vector.broadcast %cst_55 : f32 to vector<1x1x16xf32>
    %122 = arith.maximumf %120, %121 : vector<1x1x16xf32>
    %123 = vector.broadcast %116 : vector<1x1x16xf32> to vector<2x16x16xf32>
    %124 = arith.subf %109, %123 : vector<2x16x16xf32>
    %cst_56 = arith.constant 9.99999974E-6 : f32
    %125 = vector.broadcast %cst_56 : f32 to vector<1x1x16xf32>
    %126 = arith.addf %122, %125 : vector<1x1x16xf32>
    %127 = math.rsqrt %126 : vector<1x1x16xf32>
    %128 = vector.broadcast %127 : vector<1x1x16xf32> to vector<2x16x16xf32>
    %129 = arith.mulf %124, %128 : vector<2x16x16xf32>
    %130 = vector.shape_cast %79 : vector<1x16xf32> to vector<1x1x16xf32>
    %131 = vector.broadcast %130 : vector<1x1x16xf32> to vector<2x16x16xf32>
    %132 = arith.mulf %129, %131 : vector<2x16x16xf32>
    %133 = vector.shape_cast %81 : vector<1x16xf32> to vector<1x1x16xf32>
    %134 = vector.broadcast %133 : vector<1x1x16xf32> to vector<2x16x16xf32>
    %135 = arith.addf %132, %134 : vector<2x16x16xf32>
    %cst_57 = arith.constant 0.000000e+00 : f32
    %136 = vector.broadcast %cst_57 : f32 to vector<2x16x16xf32>
    %137 = arith.maximumf %135, %136 : vector<2x16x16xf32>
    %138 = arith.truncf %137 : vector<2x16x16xf32> to vector<2x16x16xbf16>
    %c2_58 = arith.constant 2 : index
    %c0_59 = arith.constant 0 : index
    %c0_60 = arith.constant 0 : index
    %139 = vector.load %arg1[%c2_58, %c0_59, %c0_60] : memref<6x16x8xbf16, #tpu.memory_space<vmem>>, vector<1x16x8xbf16>
    %140 = vector.shape_cast %139 : vector<1x16x8xbf16> to vector<16x8xbf16>
    %c2_61 = arith.constant 2 : index
    %c0_62 = arith.constant 0 : index
    %c0_63 = arith.constant 0 : index
    %141 = vector.load %arg2[%c2_61, %c0_62, %c0_63] : memref<6x72x16xbf16, #tpu.memory_space<vmem>>, vector<1x72x16xbf16>
    %142 = vector.shape_cast %141 : vector<1x72x16xbf16> to vector<72x16xbf16>
    %c2_64 = arith.constant 2 : index
    %c0_65 = arith.constant 0 : index
    %c0_66 = arith.constant 0 : index
    %143 = vector.load %arg3[%c2_64, %c0_65, %c0_66] : memref<6x4x16xf32, #tpu.memory_space<vmem>>, vector<1x1x8xf32>
    %144 = vector.shape_cast %143 : vector<1x1x8xf32> to vector<1x8xf32>
    %c2_67 = arith.constant 2 : index
    %c1_68 = arith.constant 1 : index
    %c0_69 = arith.constant 0 : index
    %145 = vector.load %arg3[%c2_67, %c1_68, %c0_69] : memref<6x4x16xf32, #tpu.memory_space<vmem>>, vector<1x1x16xf32>
    %146 = vector.shape_cast %145 : vector<1x1x16xf32> to vector<1x16xf32>
    %c2_70 = arith.constant 2 : index
    %c2_71 = arith.constant 2 : index
    %c0_72 = arith.constant 0 : index
    %147 = vector.load %arg3[%c2_70, %c2_71, %c0_72] : memref<6x4x16xf32, #tpu.memory_space<vmem>>, vector<1x1x16xf32>
    %148 = vector.shape_cast %147 : vector<1x1x16xf32> to vector<1x16xf32>
    %c2_73 = arith.constant 2 : index
    %c3_74 = arith.constant 3 : index
    %c0_75 = arith.constant 0 : index
    %149 = vector.load %arg3[%c2_73, %c3_74, %c0_75] : memref<6x4x16xf32, #tpu.memory_space<vmem>>, vector<1x1x16xf32>
    %150 = vector.shape_cast %149 : vector<1x1x16xf32> to vector<1x16xf32>
    %cst_76 = arith.constant dense<0.000000e+00> : vector<2x16x8xf32>
    %151 = tpu.matmul %138, %140, %cst_76 {dimension_numbers = #tpu.dot_dimension_numbers<[2], [0], [0, 1], [1], [0, 0, 0, 1, 1, 1], [], []>} : vector<2x16x16xbf16>, vector<16x8xbf16>, vector<2x16x8xf32> -> vector<2x16x8xf32>
    %152 = vector.shape_cast %144 : vector<1x8xf32> to vector<1x1x8xf32>
    %153 = vector.broadcast %152 : vector<1x1x8xf32> to vector<2x16x8xf32>
    %154 = arith.addf %151, %153 : vector<2x16x8xf32>
    %155 = arith.truncf %154 : vector<2x16x8xf32> to vector<2x16x8xbf16>
    %cst_77 = arith.constant 0.000000e+00 : bf16
    %156 = vector.broadcast %cst_77 : bf16 to vector<2x4x8xbf16>
    %cst_78 = arith.constant 0.000000e+00 : bf16
    %157 = vector.broadcast %cst_78 : bf16 to vector<2x3x8xbf16>
    %158 = tpu.concatenate %156, %155, %157 in 1 : vector<2x4x8xbf16>, vector<2x16x8xbf16>, vector<2x3x8xbf16> -> vector<2x23x8xbf16>
    %cst_79 = arith.constant -1.000260e+30 : bf16
    %159 = vector.broadcast %cst_79 : bf16 to vector<2x1x8xbf16>
    %160 = tpu.concatenate %159, %155, %159 in 1 : vector<2x1x8xbf16>, vector<2x16x8xbf16>, vector<2x1x8xbf16> -> vector<2x18x8xbf16>
    %161 = vector.extract_strided_slice %160 {offsets = [0, 0, 0], sizes = [2, 16, 8], strides = [1, 1, 1]} : vector<2x18x8xbf16> to vector<2x16x8xbf16>
    %162 = vector.extract_strided_slice %160 {offsets = [0, 1, 0], sizes = [2, 16, 8], strides = [1, 1, 1]} : vector<2x18x8xbf16> to vector<2x16x8xbf16>
    %163 = arith.maximumf %161, %162 : vector<2x16x8xbf16>
    %164 = vector.extract_strided_slice %160 {offsets = [0, 2, 0], sizes = [2, 16, 8], strides = [1, 1, 1]} : vector<2x18x8xbf16> to vector<2x16x8xbf16>
    %165 = arith.maximumf %163, %164 : vector<2x16x8xbf16>
    %166 = vector.extract_strided_slice %158 {offsets = [0, 0, 0], sizes = [2, 16, 8], strides = [1, 1, 1]} : vector<2x23x8xbf16> to vector<2x16x8xbf16>
    %167 = vector.extract_strided_slice %158 {offsets = [0, 1, 0], sizes = [2, 16, 8], strides = [1, 1, 1]} : vector<2x23x8xbf16> to vector<2x16x8xbf16>
    %168 = vector.extract_strided_slice %158 {offsets = [0, 2, 0], sizes = [2, 16, 8], strides = [1, 1, 1]} : vector<2x23x8xbf16> to vector<2x16x8xbf16>
    %169 = vector.extract_strided_slice %158 {offsets = [0, 3, 0], sizes = [2, 16, 8], strides = [1, 1, 1]} : vector<2x23x8xbf16> to vector<2x16x8xbf16>
    %170 = vector.extract_strided_slice %158 {offsets = [0, 4, 0], sizes = [2, 16, 8], strides = [1, 1, 1]} : vector<2x23x8xbf16> to vector<2x16x8xbf16>
    %171 = vector.extract_strided_slice %158 {offsets = [0, 5, 0], sizes = [2, 16, 8], strides = [1, 1, 1]} : vector<2x23x8xbf16> to vector<2x16x8xbf16>
    %172 = vector.extract_strided_slice %158 {offsets = [0, 6, 0], sizes = [2, 16, 8], strides = [1, 1, 1]} : vector<2x23x8xbf16> to vector<2x16x8xbf16>
    %173 = vector.extract_strided_slice %158 {offsets = [0, 7, 0], sizes = [2, 16, 8], strides = [1, 1, 1]} : vector<2x23x8xbf16> to vector<2x16x8xbf16>
    %174 = tpu.concatenate %166, %167, %168, %169, %170, %171, %172, %173, %165 in 2 : vector<2x16x8xbf16>, vector<2x16x8xbf16>, vector<2x16x8xbf16>, vector<2x16x8xbf16>, vector<2x16x8xbf16>, vector<2x16x8xbf16>, vector<2x16x8xbf16>, vector<2x16x8xbf16>, vector<2x16x8xbf16> -> vector<2x16x72xbf16>
    %cst_80 = arith.constant dense<0.000000e+00> : vector<2x16x16xf32>
    %175 = tpu.matmul %174, %142, %cst_80 {dimension_numbers = #tpu.dot_dimension_numbers<[2], [0], [0, 1], [1], [0, 0, 0, 1, 1, 1], [], []>} : vector<2x16x72xbf16>, vector<72x16xbf16>, vector<2x16x16xf32> -> vector<2x16x16xf32>
    %176 = vector.shape_cast %146 : vector<1x16xf32> to vector<1x1x16xf32>
    %177 = vector.broadcast %176 : vector<1x1x16xf32> to vector<2x16x16xf32>
    %178 = arith.addf %175, %177 : vector<2x16x16xf32>
    %cst_81 = arith.constant dense<0.000000e+00> : vector<16xf32>
    %179 = vector.multi_reduction <add>, %178, %cst_81 [0, 1] : vector<2x16x16xf32> to vector<16xf32>
    %180 = vector.shape_cast %179 : vector<16xf32> to vector<1x1x16xf32>
    %181 = arith.mulf %178, %178 : vector<2x16x16xf32>
    %cst_82 = arith.constant dense<0.000000e+00> : vector<16xf32>
    %182 = vector.multi_reduction <add>, %181, %cst_82 [0, 1] : vector<2x16x16xf32> to vector<16xf32>
    %183 = vector.shape_cast %182 : vector<16xf32> to vector<1x1x16xf32>
    %cst_83 = arith.constant 3.200000e+01 : f32
    %184 = vector.broadcast %cst_83 : f32 to vector<1x1x16xf32>
    %185 = arith.divf %180, %184 : vector<1x1x16xf32>
    %cst_84 = arith.constant 3.200000e+01 : f32
    %186 = vector.broadcast %cst_84 : f32 to vector<1x1x16xf32>
    %187 = arith.divf %183, %186 : vector<1x1x16xf32>
    %188 = arith.mulf %185, %185 : vector<1x1x16xf32>
    %189 = arith.subf %187, %188 : vector<1x1x16xf32>
    %cst_85 = arith.constant 0.000000e+00 : f32
    %190 = vector.broadcast %cst_85 : f32 to vector<1x1x16xf32>
    %191 = arith.maximumf %189, %190 : vector<1x1x16xf32>
    %192 = vector.broadcast %185 : vector<1x1x16xf32> to vector<2x16x16xf32>
    %193 = arith.subf %178, %192 : vector<2x16x16xf32>
    %cst_86 = arith.constant 9.99999974E-6 : f32
    %194 = vector.broadcast %cst_86 : f32 to vector<1x1x16xf32>
    %195 = arith.addf %191, %194 : vector<1x1x16xf32>
    %196 = math.rsqrt %195 : vector<1x1x16xf32>
    %197 = vector.broadcast %196 : vector<1x1x16xf32> to vector<2x16x16xf32>
    %198 = arith.mulf %193, %197 : vector<2x16x16xf32>
    %199 = vector.shape_cast %148 : vector<1x16xf32> to vector<1x1x16xf32>
    %200 = vector.broadcast %199 : vector<1x1x16xf32> to vector<2x16x16xf32>
    %201 = arith.mulf %198, %200 : vector<2x16x16xf32>
    %202 = vector.shape_cast %150 : vector<1x16xf32> to vector<1x1x16xf32>
    %203 = vector.broadcast %202 : vector<1x1x16xf32> to vector<2x16x16xf32>
    %204 = arith.addf %201, %203 : vector<2x16x16xf32>
    %cst_87 = arith.constant 0.000000e+00 : f32
    %205 = vector.broadcast %cst_87 : f32 to vector<2x16x16xf32>
    %206 = arith.maximumf %204, %205 : vector<2x16x16xf32>
    %c0_88 = arith.constant 0 : index
    %c0_89 = arith.constant 0 : index
    %c0_90 = arith.constant 0 : index
    %207 = vector.load %arg4[%c0_88, %c0_89, %c0_90] : memref<2x16x16xbf16, #tpu.memory_space<vmem>>, vector<1x4x16xbf16>
    %208 = vector.shape_cast %207 : vector<1x4x16xbf16> to vector<4x16xbf16>
    %c0_91 = arith.constant 0 : index
    %c0_92 = arith.constant 0 : index
    %c0_93 = arith.constant 0 : index
    %209 = vector.load %arg5[%c0_91, %c0_92, %c0_93] : memref<2x2x16xf32, #tpu.memory_space<vmem>>, vector<1x1x16xf32>
    %210 = vector.shape_cast %209 : vector<1x1x16xf32> to vector<1x16xf32>
    %c0_94 = arith.constant 0 : index
    %c1_95 = arith.constant 1 : index
    %c0_96 = arith.constant 0 : index
    %211 = vector.load %arg5[%c0_94, %c1_95, %c0_96] : memref<2x2x16xf32, #tpu.memory_space<vmem>>, vector<1x1x16xf32>
    %212 = vector.shape_cast %211 : vector<1x1x16xf32> to vector<1x16xf32>
    %cst_97 = arith.constant dense<0.000000e+00> : vector<2x16x16xf32>
    %213 = tpu.matmul %0, %208, %cst_97 {dimension_numbers = #tpu.dot_dimension_numbers<[2], [0], [0, 1], [1], [0, 0, 0, 1, 1, 1], [], []>} : vector<2x16x4xbf16>, vector<4x16xbf16>, vector<2x16x16xf32> -> vector<2x16x16xf32>
    %cst_98 = arith.constant dense<0.000000e+00> : vector<16xf32>
    %214 = vector.multi_reduction <add>, %213, %cst_98 [0, 1] : vector<2x16x16xf32> to vector<16xf32>
    %215 = vector.shape_cast %214 : vector<16xf32> to vector<1x1x16xf32>
    %216 = arith.mulf %213, %213 : vector<2x16x16xf32>
    %cst_99 = arith.constant dense<0.000000e+00> : vector<16xf32>
    %217 = vector.multi_reduction <add>, %216, %cst_99 [0, 1] : vector<2x16x16xf32> to vector<16xf32>
    %218 = vector.shape_cast %217 : vector<16xf32> to vector<1x1x16xf32>
    %cst_100 = arith.constant 3.200000e+01 : f32
    %219 = vector.broadcast %cst_100 : f32 to vector<1x1x16xf32>
    %220 = arith.divf %215, %219 : vector<1x1x16xf32>
    %cst_101 = arith.constant 3.200000e+01 : f32
    %221 = vector.broadcast %cst_101 : f32 to vector<1x1x16xf32>
    %222 = arith.divf %218, %221 : vector<1x1x16xf32>
    %223 = arith.mulf %220, %220 : vector<1x1x16xf32>
    %224 = arith.subf %222, %223 : vector<1x1x16xf32>
    %cst_102 = arith.constant 0.000000e+00 : f32
    %225 = vector.broadcast %cst_102 : f32 to vector<1x1x16xf32>
    %226 = arith.maximumf %224, %225 : vector<1x1x16xf32>
    %227 = vector.broadcast %220 : vector<1x1x16xf32> to vector<2x16x16xf32>
    %228 = arith.subf %213, %227 : vector<2x16x16xf32>
    %cst_103 = arith.constant 9.99999974E-6 : f32
    %229 = vector.broadcast %cst_103 : f32 to vector<1x1x16xf32>
    %230 = arith.addf %226, %229 : vector<1x1x16xf32>
    %231 = math.rsqrt %230 : vector<1x1x16xf32>
    %232 = vector.broadcast %231 : vector<1x1x16xf32> to vector<2x16x16xf32>
    %233 = arith.mulf %228, %232 : vector<2x16x16xf32>
    %234 = vector.shape_cast %210 : vector<1x16xf32> to vector<1x1x16xf32>
    %235 = vector.broadcast %234 : vector<1x1x16xf32> to vector<2x16x16xf32>
    %236 = arith.mulf %233, %235 : vector<2x16x16xf32>
    %237 = vector.shape_cast %212 : vector<1x16xf32> to vector<1x1x16xf32>
    %238 = vector.broadcast %237 : vector<1x1x16xf32> to vector<2x16x16xf32>
    %239 = arith.addf %236, %238 : vector<2x16x16xf32>
    %240 = arith.addf %239, %206 : vector<2x16x16xf32>
    %cst_104 = arith.constant 0.000000e+00 : f32
    %241 = vector.broadcast %cst_104 : f32 to vector<2x16x16xf32>
    %242 = arith.maximumf %240, %241 : vector<2x16x16xf32>
    %243 = arith.truncf %242 : vector<2x16x16xf32> to vector<2x16x16xbf16>
    %244 = arith.truncf %242 : vector<2x16x16xf32> to vector<2x16x16xbf16>
    %c3_105 = arith.constant 3 : index
    %c0_106 = arith.constant 0 : index
    %c0_107 = arith.constant 0 : index
    %245 = vector.load %arg1[%c3_105, %c0_106, %c0_107] : memref<6x16x8xbf16, #tpu.memory_space<vmem>>, vector<1x16x8xbf16>
    %246 = vector.shape_cast %245 : vector<1x16x8xbf16> to vector<16x8xbf16>
    %c3_108 = arith.constant 3 : index
    %c0_109 = arith.constant 0 : index
    %c0_110 = arith.constant 0 : index
    %247 = vector.load %arg2[%c3_108, %c0_109, %c0_110] : memref<6x72x16xbf16, #tpu.memory_space<vmem>>, vector<1x72x16xbf16>
    %248 = vector.shape_cast %247 : vector<1x72x16xbf16> to vector<72x16xbf16>
    %c3_111 = arith.constant 3 : index
    %c0_112 = arith.constant 0 : index
    %c0_113 = arith.constant 0 : index
    %249 = vector.load %arg3[%c3_111, %c0_112, %c0_113] : memref<6x4x16xf32, #tpu.memory_space<vmem>>, vector<1x1x8xf32>
    %250 = vector.shape_cast %249 : vector<1x1x8xf32> to vector<1x8xf32>
    %c3_114 = arith.constant 3 : index
    %c1_115 = arith.constant 1 : index
    %c0_116 = arith.constant 0 : index
    %251 = vector.load %arg3[%c3_114, %c1_115, %c0_116] : memref<6x4x16xf32, #tpu.memory_space<vmem>>, vector<1x1x16xf32>
    %252 = vector.shape_cast %251 : vector<1x1x16xf32> to vector<1x16xf32>
    %c3_117 = arith.constant 3 : index
    %c2_118 = arith.constant 2 : index
    %c0_119 = arith.constant 0 : index
    %253 = vector.load %arg3[%c3_117, %c2_118, %c0_119] : memref<6x4x16xf32, #tpu.memory_space<vmem>>, vector<1x1x16xf32>
    %254 = vector.shape_cast %253 : vector<1x1x16xf32> to vector<1x16xf32>
    %c3_120 = arith.constant 3 : index
    %c3_121 = arith.constant 3 : index
    %c0_122 = arith.constant 0 : index
    %255 = vector.load %arg3[%c3_120, %c3_121, %c0_122] : memref<6x4x16xf32, #tpu.memory_space<vmem>>, vector<1x1x16xf32>
    %256 = vector.shape_cast %255 : vector<1x1x16xf32> to vector<1x16xf32>
    %cst_123 = arith.constant dense<0.000000e+00> : vector<2x16x8xf32>
    %257 = tpu.matmul %244, %246, %cst_123 {dimension_numbers = #tpu.dot_dimension_numbers<[2], [0], [0, 1], [1], [0, 0, 0, 1, 1, 1], [], []>} : vector<2x16x16xbf16>, vector<16x8xbf16>, vector<2x16x8xf32> -> vector<2x16x8xf32>
    %258 = vector.shape_cast %250 : vector<1x8xf32> to vector<1x1x8xf32>
    %259 = vector.broadcast %258 : vector<1x1x8xf32> to vector<2x16x8xf32>
    %260 = arith.addf %257, %259 : vector<2x16x8xf32>
    %261 = arith.truncf %260 : vector<2x16x8xf32> to vector<2x16x8xbf16>
    %cst_124 = arith.constant 0.000000e+00 : bf16
    %262 = vector.broadcast %cst_124 : bf16 to vector<2x4x8xbf16>
    %cst_125 = arith.constant 0.000000e+00 : bf16
    %263 = vector.broadcast %cst_125 : bf16 to vector<2x3x8xbf16>
    %264 = tpu.concatenate %262, %261, %263 in 1 : vector<2x4x8xbf16>, vector<2x16x8xbf16>, vector<2x3x8xbf16> -> vector<2x23x8xbf16>
    %cst_126 = arith.constant -1.000260e+30 : bf16
    %265 = vector.broadcast %cst_126 : bf16 to vector<2x1x8xbf16>
    %266 = tpu.concatenate %265, %261, %265 in 1 : vector<2x1x8xbf16>, vector<2x16x8xbf16>, vector<2x1x8xbf16> -> vector<2x18x8xbf16>
    %267 = vector.extract_strided_slice %266 {offsets = [0, 0, 0], sizes = [2, 16, 8], strides = [1, 1, 1]} : vector<2x18x8xbf16> to vector<2x16x8xbf16>
    %268 = vector.extract_strided_slice %266 {offsets = [0, 1, 0], sizes = [2, 16, 8], strides = [1, 1, 1]} : vector<2x18x8xbf16> to vector<2x16x8xbf16>
    %269 = arith.maximumf %267, %268 : vector<2x16x8xbf16>
    %270 = vector.extract_strided_slice %266 {offsets = [0, 2, 0], sizes = [2, 16, 8], strides = [1, 1, 1]} : vector<2x18x8xbf16> to vector<2x16x8xbf16>
    %271 = arith.maximumf %269, %270 : vector<2x16x8xbf16>
    %272 = vector.extract_strided_slice %264 {offsets = [0, 0, 0], sizes = [2, 16, 8], strides = [1, 1, 1]} : vector<2x23x8xbf16> to vector<2x16x8xbf16>
    %273 = vector.extract_strided_slice %264 {offsets = [0, 1, 0], sizes = [2, 16, 8], strides = [1, 1, 1]} : vector<2x23x8xbf16> to vector<2x16x8xbf16>
    %274 = vector.extract_strided_slice %264 {offsets = [0, 2, 0], sizes = [2, 16, 8], strides = [1, 1, 1]} : vector<2x23x8xbf16> to vector<2x16x8xbf16>
    %275 = vector.extract_strided_slice %264 {offsets = [0, 3, 0], sizes = [2, 16, 8], strides = [1, 1, 1]} : vector<2x23x8xbf16> to vector<2x16x8xbf16>
    %276 = vector.extract_strided_slice %264 {offsets = [0, 4, 0], sizes = [2, 16, 8], strides = [1, 1, 1]} : vector<2x23x8xbf16> to vector<2x16x8xbf16>
    %277 = vector.extract_strided_slice %264 {offsets = [0, 5, 0], sizes = [2, 16, 8], strides = [1, 1, 1]} : vector<2x23x8xbf16> to vector<2x16x8xbf16>
    %278 = vector.extract_strided_slice %264 {offsets = [0, 6, 0], sizes = [2, 16, 8], strides = [1, 1, 1]} : vector<2x23x8xbf16> to vector<2x16x8xbf16>
    %279 = vector.extract_strided_slice %264 {offsets = [0, 7, 0], sizes = [2, 16, 8], strides = [1, 1, 1]} : vector<2x23x8xbf16> to vector<2x16x8xbf16>
    %280 = tpu.concatenate %272, %273, %274, %275, %276, %277, %278, %279, %271 in 2 : vector<2x16x8xbf16>, vector<2x16x8xbf16>, vector<2x16x8xbf16>, vector<2x16x8xbf16>, vector<2x16x8xbf16>, vector<2x16x8xbf16>, vector<2x16x8xbf16>, vector<2x16x8xbf16>, vector<2x16x8xbf16> -> vector<2x16x72xbf16>
    %cst_127 = arith.constant dense<0.000000e+00> : vector<2x16x16xf32>
    %281 = tpu.matmul %280, %248, %cst_127 {dimension_numbers = #tpu.dot_dimension_numbers<[2], [0], [0, 1], [1], [0, 0, 0, 1, 1, 1], [], []>} : vector<2x16x72xbf16>, vector<72x16xbf16>, vector<2x16x16xf32> -> vector<2x16x16xf32>
    %282 = vector.shape_cast %252 : vector<1x16xf32> to vector<1x1x16xf32>
    %283 = vector.broadcast %282 : vector<1x1x16xf32> to vector<2x16x16xf32>
    %284 = arith.addf %281, %283 : vector<2x16x16xf32>
    %cst_128 = arith.constant dense<0.000000e+00> : vector<16xf32>
    %285 = vector.multi_reduction <add>, %284, %cst_128 [0, 1] : vector<2x16x16xf32> to vector<16xf32>
    %286 = vector.shape_cast %285 : vector<16xf32> to vector<1x1x16xf32>
    %287 = arith.mulf %284, %284 : vector<2x16x16xf32>
    %cst_129 = arith.constant dense<0.000000e+00> : vector<16xf32>
    %288 = vector.multi_reduction <add>, %287, %cst_129 [0, 1] : vector<2x16x16xf32> to vector<16xf32>
    %289 = vector.shape_cast %288 : vector<16xf32> to vector<1x1x16xf32>
    %cst_130 = arith.constant 3.200000e+01 : f32
    %290 = vector.broadcast %cst_130 : f32 to vector<1x1x16xf32>
    %291 = arith.divf %286, %290 : vector<1x1x16xf32>
    %cst_131 = arith.constant 3.200000e+01 : f32
    %292 = vector.broadcast %cst_131 : f32 to vector<1x1x16xf32>
    %293 = arith.divf %289, %292 : vector<1x1x16xf32>
    %294 = arith.mulf %291, %291 : vector<1x1x16xf32>
    %295 = arith.subf %293, %294 : vector<1x1x16xf32>
    %cst_132 = arith.constant 0.000000e+00 : f32
    %296 = vector.broadcast %cst_132 : f32 to vector<1x1x16xf32>
    %297 = arith.maximumf %295, %296 : vector<1x1x16xf32>
    %298 = vector.broadcast %291 : vector<1x1x16xf32> to vector<2x16x16xf32>
    %299 = arith.subf %284, %298 : vector<2x16x16xf32>
    %cst_133 = arith.constant 9.99999974E-6 : f32
    %300 = vector.broadcast %cst_133 : f32 to vector<1x1x16xf32>
    %301 = arith.addf %297, %300 : vector<1x1x16xf32>
    %302 = math.rsqrt %301 : vector<1x1x16xf32>
    %303 = vector.broadcast %302 : vector<1x1x16xf32> to vector<2x16x16xf32>
    %304 = arith.mulf %299, %303 : vector<2x16x16xf32>
    %305 = vector.shape_cast %254 : vector<1x16xf32> to vector<1x1x16xf32>
    %306 = vector.broadcast %305 : vector<1x1x16xf32> to vector<2x16x16xf32>
    %307 = arith.mulf %304, %306 : vector<2x16x16xf32>
    %308 = vector.shape_cast %256 : vector<1x16xf32> to vector<1x1x16xf32>
    %309 = vector.broadcast %308 : vector<1x1x16xf32> to vector<2x16x16xf32>
    %310 = arith.addf %307, %309 : vector<2x16x16xf32>
    %cst_134 = arith.constant 0.000000e+00 : f32
    %311 = vector.broadcast %cst_134 : f32 to vector<2x16x16xf32>
    %312 = arith.maximumf %310, %311 : vector<2x16x16xf32>
    %313 = arith.truncf %312 : vector<2x16x16xf32> to vector<2x16x16xbf16>
    %c4 = arith.constant 4 : index
    %c0_135 = arith.constant 0 : index
    %c0_136 = arith.constant 0 : index
    %314 = vector.load %arg1[%c4, %c0_135, %c0_136] : memref<6x16x8xbf16, #tpu.memory_space<vmem>>, vector<1x16x8xbf16>
    %315 = vector.shape_cast %314 : vector<1x16x8xbf16> to vector<16x8xbf16>
    %c4_137 = arith.constant 4 : index
    %c0_138 = arith.constant 0 : index
    %c0_139 = arith.constant 0 : index
    %316 = vector.load %arg2[%c4_137, %c0_138, %c0_139] : memref<6x72x16xbf16, #tpu.memory_space<vmem>>, vector<1x72x16xbf16>
    %317 = vector.shape_cast %316 : vector<1x72x16xbf16> to vector<72x16xbf16>
    %c4_140 = arith.constant 4 : index
    %c0_141 = arith.constant 0 : index
    %c0_142 = arith.constant 0 : index
    %318 = vector.load %arg3[%c4_140, %c0_141, %c0_142] : memref<6x4x16xf32, #tpu.memory_space<vmem>>, vector<1x1x8xf32>
    %319 = vector.shape_cast %318 : vector<1x1x8xf32> to vector<1x8xf32>
    %c4_143 = arith.constant 4 : index
    %c1_144 = arith.constant 1 : index
    %c0_145 = arith.constant 0 : index
    %320 = vector.load %arg3[%c4_143, %c1_144, %c0_145] : memref<6x4x16xf32, #tpu.memory_space<vmem>>, vector<1x1x16xf32>
    %321 = vector.shape_cast %320 : vector<1x1x16xf32> to vector<1x16xf32>
    %c4_146 = arith.constant 4 : index
    %c2_147 = arith.constant 2 : index
    %c0_148 = arith.constant 0 : index
    %322 = vector.load %arg3[%c4_146, %c2_147, %c0_148] : memref<6x4x16xf32, #tpu.memory_space<vmem>>, vector<1x1x16xf32>
    %323 = vector.shape_cast %322 : vector<1x1x16xf32> to vector<1x16xf32>
    %c4_149 = arith.constant 4 : index
    %c3_150 = arith.constant 3 : index
    %c0_151 = arith.constant 0 : index
    %324 = vector.load %arg3[%c4_149, %c3_150, %c0_151] : memref<6x4x16xf32, #tpu.memory_space<vmem>>, vector<1x1x16xf32>
    %325 = vector.shape_cast %324 : vector<1x1x16xf32> to vector<1x16xf32>
    %cst_152 = arith.constant dense<0.000000e+00> : vector<2x16x8xf32>
    %326 = tpu.matmul %313, %315, %cst_152 {dimension_numbers = #tpu.dot_dimension_numbers<[2], [0], [0, 1], [1], [0, 0, 0, 1, 1, 1], [], []>} : vector<2x16x16xbf16>, vector<16x8xbf16>, vector<2x16x8xf32> -> vector<2x16x8xf32>
    %327 = vector.shape_cast %319 : vector<1x8xf32> to vector<1x1x8xf32>
    %328 = vector.broadcast %327 : vector<1x1x8xf32> to vector<2x16x8xf32>
    %329 = arith.addf %326, %328 : vector<2x16x8xf32>
    %330 = arith.truncf %329 : vector<2x16x8xf32> to vector<2x16x8xbf16>
    %cst_153 = arith.constant 0.000000e+00 : bf16
    %331 = vector.broadcast %cst_153 : bf16 to vector<2x4x8xbf16>
    %cst_154 = arith.constant 0.000000e+00 : bf16
    %332 = vector.broadcast %cst_154 : bf16 to vector<2x3x8xbf16>
    %333 = tpu.concatenate %331, %330, %332 in 1 : vector<2x4x8xbf16>, vector<2x16x8xbf16>, vector<2x3x8xbf16> -> vector<2x23x8xbf16>
    %cst_155 = arith.constant -1.000260e+30 : bf16
    %334 = vector.broadcast %cst_155 : bf16 to vector<2x1x8xbf16>
    %335 = tpu.concatenate %334, %330, %334 in 1 : vector<2x1x8xbf16>, vector<2x16x8xbf16>, vector<2x1x8xbf16> -> vector<2x18x8xbf16>
    %336 = vector.extract_strided_slice %335 {offsets = [0, 0, 0], sizes = [2, 16, 8], strides = [1, 1, 1]} : vector<2x18x8xbf16> to vector<2x16x8xbf16>
    %337 = vector.extract_strided_slice %335 {offsets = [0, 1, 0], sizes = [2, 16, 8], strides = [1, 1, 1]} : vector<2x18x8xbf16> to vector<2x16x8xbf16>
    %338 = arith.maximumf %336, %337 : vector<2x16x8xbf16>
    %339 = vector.extract_strided_slice %335 {offsets = [0, 2, 0], sizes = [2, 16, 8], strides = [1, 1, 1]} : vector<2x18x8xbf16> to vector<2x16x8xbf16>
    %340 = arith.maximumf %338, %339 : vector<2x16x8xbf16>
    %341 = vector.extract_strided_slice %333 {offsets = [0, 0, 0], sizes = [2, 16, 8], strides = [1, 1, 1]} : vector<2x23x8xbf16> to vector<2x16x8xbf16>
    %342 = vector.extract_strided_slice %333 {offsets = [0, 1, 0], sizes = [2, 16, 8], strides = [1, 1, 1]} : vector<2x23x8xbf16> to vector<2x16x8xbf16>
    %343 = vector.extract_strided_slice %333 {offsets = [0, 2, 0], sizes = [2, 16, 8], strides = [1, 1, 1]} : vector<2x23x8xbf16> to vector<2x16x8xbf16>
    %344 = vector.extract_strided_slice %333 {offsets = [0, 3, 0], sizes = [2, 16, 8], strides = [1, 1, 1]} : vector<2x23x8xbf16> to vector<2x16x8xbf16>
    %345 = vector.extract_strided_slice %333 {offsets = [0, 4, 0], sizes = [2, 16, 8], strides = [1, 1, 1]} : vector<2x23x8xbf16> to vector<2x16x8xbf16>
    %346 = vector.extract_strided_slice %333 {offsets = [0, 5, 0], sizes = [2, 16, 8], strides = [1, 1, 1]} : vector<2x23x8xbf16> to vector<2x16x8xbf16>
    %347 = vector.extract_strided_slice %333 {offsets = [0, 6, 0], sizes = [2, 16, 8], strides = [1, 1, 1]} : vector<2x23x8xbf16> to vector<2x16x8xbf16>
    %348 = vector.extract_strided_slice %333 {offsets = [0, 7, 0], sizes = [2, 16, 8], strides = [1, 1, 1]} : vector<2x23x8xbf16> to vector<2x16x8xbf16>
    %349 = tpu.concatenate %341, %342, %343, %344, %345, %346, %347, %348, %340 in 2 : vector<2x16x8xbf16>, vector<2x16x8xbf16>, vector<2x16x8xbf16>, vector<2x16x8xbf16>, vector<2x16x8xbf16>, vector<2x16x8xbf16>, vector<2x16x8xbf16>, vector<2x16x8xbf16>, vector<2x16x8xbf16> -> vector<2x16x72xbf16>
    %cst_156 = arith.constant dense<0.000000e+00> : vector<2x16x16xf32>
    %350 = tpu.matmul %349, %317, %cst_156 {dimension_numbers = #tpu.dot_dimension_numbers<[2], [0], [0, 1], [1], [0, 0, 0, 1, 1, 1], [], []>} : vector<2x16x72xbf16>, vector<72x16xbf16>, vector<2x16x16xf32> -> vector<2x16x16xf32>
    %351 = vector.shape_cast %321 : vector<1x16xf32> to vector<1x1x16xf32>
    %352 = vector.broadcast %351 : vector<1x1x16xf32> to vector<2x16x16xf32>
    %353 = arith.addf %350, %352 : vector<2x16x16xf32>
    %cst_157 = arith.constant dense<0.000000e+00> : vector<16xf32>
    %354 = vector.multi_reduction <add>, %353, %cst_157 [0, 1] : vector<2x16x16xf32> to vector<16xf32>
    %355 = vector.shape_cast %354 : vector<16xf32> to vector<1x1x16xf32>
    %356 = arith.mulf %353, %353 : vector<2x16x16xf32>
    %cst_158 = arith.constant dense<0.000000e+00> : vector<16xf32>
    %357 = vector.multi_reduction <add>, %356, %cst_158 [0, 1] : vector<2x16x16xf32> to vector<16xf32>
    %358 = vector.shape_cast %357 : vector<16xf32> to vector<1x1x16xf32>
    %cst_159 = arith.constant 3.200000e+01 : f32
    %359 = vector.broadcast %cst_159 : f32 to vector<1x1x16xf32>
    %360 = arith.divf %355, %359 : vector<1x1x16xf32>
    %cst_160 = arith.constant 3.200000e+01 : f32
    %361 = vector.broadcast %cst_160 : f32 to vector<1x1x16xf32>
    %362 = arith.divf %358, %361 : vector<1x1x16xf32>
    %363 = arith.mulf %360, %360 : vector<1x1x16xf32>
    %364 = arith.subf %362, %363 : vector<1x1x16xf32>
    %cst_161 = arith.constant 0.000000e+00 : f32
    %365 = vector.broadcast %cst_161 : f32 to vector<1x1x16xf32>
    %366 = arith.maximumf %364, %365 : vector<1x1x16xf32>
    %367 = vector.broadcast %360 : vector<1x1x16xf32> to vector<2x16x16xf32>
    %368 = arith.subf %353, %367 : vector<2x16x16xf32>
    %cst_162 = arith.constant 9.99999974E-6 : f32
    %369 = vector.broadcast %cst_162 : f32 to vector<1x1x16xf32>
    %370 = arith.addf %366, %369 : vector<1x1x16xf32>
    %371 = math.rsqrt %370 : vector<1x1x16xf32>
    %372 = vector.broadcast %371 : vector<1x1x16xf32> to vector<2x16x16xf32>
    %373 = arith.mulf %368, %372 : vector<2x16x16xf32>
    %374 = vector.shape_cast %323 : vector<1x16xf32> to vector<1x1x16xf32>
    %375 = vector.broadcast %374 : vector<1x1x16xf32> to vector<2x16x16xf32>
    %376 = arith.mulf %373, %375 : vector<2x16x16xf32>
    %377 = vector.shape_cast %325 : vector<1x16xf32> to vector<1x1x16xf32>
    %378 = vector.broadcast %377 : vector<1x1x16xf32> to vector<2x16x16xf32>
    %379 = arith.addf %376, %378 : vector<2x16x16xf32>
    %cst_163 = arith.constant 0.000000e+00 : f32
    %380 = vector.broadcast %cst_163 : f32 to vector<2x16x16xf32>
    %381 = arith.maximumf %379, %380 : vector<2x16x16xf32>
    %382 = arith.truncf %381 : vector<2x16x16xf32> to vector<2x16x16xbf16>
    %c5 = arith.constant 5 : index
    %c0_164 = arith.constant 0 : index
    %c0_165 = arith.constant 0 : index
    %383 = vector.load %arg1[%c5, %c0_164, %c0_165] : memref<6x16x8xbf16, #tpu.memory_space<vmem>>, vector<1x16x8xbf16>
    %384 = vector.shape_cast %383 : vector<1x16x8xbf16> to vector<16x8xbf16>
    %c5_166 = arith.constant 5 : index
    %c0_167 = arith.constant 0 : index
    %c0_168 = arith.constant 0 : index
    %385 = vector.load %arg2[%c5_166, %c0_167, %c0_168] : memref<6x72x16xbf16, #tpu.memory_space<vmem>>, vector<1x72x16xbf16>
    %386 = vector.shape_cast %385 : vector<1x72x16xbf16> to vector<72x16xbf16>
    %c5_169 = arith.constant 5 : index
    %c0_170 = arith.constant 0 : index
    %c0_171 = arith.constant 0 : index
    %387 = vector.load %arg3[%c5_169, %c0_170, %c0_171] : memref<6x4x16xf32, #tpu.memory_space<vmem>>, vector<1x1x8xf32>
    %388 = vector.shape_cast %387 : vector<1x1x8xf32> to vector<1x8xf32>
    %c5_172 = arith.constant 5 : index
    %c1_173 = arith.constant 1 : index
    %c0_174 = arith.constant 0 : index
    %389 = vector.load %arg3[%c5_172, %c1_173, %c0_174] : memref<6x4x16xf32, #tpu.memory_space<vmem>>, vector<1x1x16xf32>
    %390 = vector.shape_cast %389 : vector<1x1x16xf32> to vector<1x16xf32>
    %c5_175 = arith.constant 5 : index
    %c2_176 = arith.constant 2 : index
    %c0_177 = arith.constant 0 : index
    %391 = vector.load %arg3[%c5_175, %c2_176, %c0_177] : memref<6x4x16xf32, #tpu.memory_space<vmem>>, vector<1x1x16xf32>
    %392 = vector.shape_cast %391 : vector<1x1x16xf32> to vector<1x16xf32>
    %c5_178 = arith.constant 5 : index
    %c3_179 = arith.constant 3 : index
    %c0_180 = arith.constant 0 : index
    %393 = vector.load %arg3[%c5_178, %c3_179, %c0_180] : memref<6x4x16xf32, #tpu.memory_space<vmem>>, vector<1x1x16xf32>
    %394 = vector.shape_cast %393 : vector<1x1x16xf32> to vector<1x16xf32>
    %cst_181 = arith.constant dense<0.000000e+00> : vector<2x16x8xf32>
    %395 = tpu.matmul %382, %384, %cst_181 {dimension_numbers = #tpu.dot_dimension_numbers<[2], [0], [0, 1], [1], [0, 0, 0, 1, 1, 1], [], []>} : vector<2x16x16xbf16>, vector<16x8xbf16>, vector<2x16x8xf32> -> vector<2x16x8xf32>
    %396 = vector.shape_cast %388 : vector<1x8xf32> to vector<1x1x8xf32>
    %397 = vector.broadcast %396 : vector<1x1x8xf32> to vector<2x16x8xf32>
    %398 = arith.addf %395, %397 : vector<2x16x8xf32>
    %399 = arith.truncf %398 : vector<2x16x8xf32> to vector<2x16x8xbf16>
    %cst_182 = arith.constant 0.000000e+00 : bf16
    %400 = vector.broadcast %cst_182 : bf16 to vector<2x4x8xbf16>
    %cst_183 = arith.constant 0.000000e+00 : bf16
    %401 = vector.broadcast %cst_183 : bf16 to vector<2x3x8xbf16>
    %402 = tpu.concatenate %400, %399, %401 in 1 : vector<2x4x8xbf16>, vector<2x16x8xbf16>, vector<2x3x8xbf16> -> vector<2x23x8xbf16>
    %cst_184 = arith.constant -1.000260e+30 : bf16
    %403 = vector.broadcast %cst_184 : bf16 to vector<2x1x8xbf16>
    %404 = tpu.concatenate %403, %399, %403 in 1 : vector<2x1x8xbf16>, vector<2x16x8xbf16>, vector<2x1x8xbf16> -> vector<2x18x8xbf16>
    %405 = vector.extract_strided_slice %404 {offsets = [0, 0, 0], sizes = [2, 16, 8], strides = [1, 1, 1]} : vector<2x18x8xbf16> to vector<2x16x8xbf16>
    %406 = vector.extract_strided_slice %404 {offsets = [0, 1, 0], sizes = [2, 16, 8], strides = [1, 1, 1]} : vector<2x18x8xbf16> to vector<2x16x8xbf16>
    %407 = arith.maximumf %405, %406 : vector<2x16x8xbf16>
    %408 = vector.extract_strided_slice %404 {offsets = [0, 2, 0], sizes = [2, 16, 8], strides = [1, 1, 1]} : vector<2x18x8xbf16> to vector<2x16x8xbf16>
    %409 = arith.maximumf %407, %408 : vector<2x16x8xbf16>
    %410 = vector.extract_strided_slice %402 {offsets = [0, 0, 0], sizes = [2, 16, 8], strides = [1, 1, 1]} : vector<2x23x8xbf16> to vector<2x16x8xbf16>
    %411 = vector.extract_strided_slice %402 {offsets = [0, 1, 0], sizes = [2, 16, 8], strides = [1, 1, 1]} : vector<2x23x8xbf16> to vector<2x16x8xbf16>
    %412 = vector.extract_strided_slice %402 {offsets = [0, 2, 0], sizes = [2, 16, 8], strides = [1, 1, 1]} : vector<2x23x8xbf16> to vector<2x16x8xbf16>
    %413 = vector.extract_strided_slice %402 {offsets = [0, 3, 0], sizes = [2, 16, 8], strides = [1, 1, 1]} : vector<2x23x8xbf16> to vector<2x16x8xbf16>
    %414 = vector.extract_strided_slice %402 {offsets = [0, 4, 0], sizes = [2, 16, 8], strides = [1, 1, 1]} : vector<2x23x8xbf16> to vector<2x16x8xbf16>
    %415 = vector.extract_strided_slice %402 {offsets = [0, 5, 0], sizes = [2, 16, 8], strides = [1, 1, 1]} : vector<2x23x8xbf16> to vector<2x16x8xbf16>
    %416 = vector.extract_strided_slice %402 {offsets = [0, 6, 0], sizes = [2, 16, 8], strides = [1, 1, 1]} : vector<2x23x8xbf16> to vector<2x16x8xbf16>
    %417 = vector.extract_strided_slice %402 {offsets = [0, 7, 0], sizes = [2, 16, 8], strides = [1, 1, 1]} : vector<2x23x8xbf16> to vector<2x16x8xbf16>
    %418 = tpu.concatenate %410, %411, %412, %413, %414, %415, %416, %417, %409 in 2 : vector<2x16x8xbf16>, vector<2x16x8xbf16>, vector<2x16x8xbf16>, vector<2x16x8xbf16>, vector<2x16x8xbf16>, vector<2x16x8xbf16>, vector<2x16x8xbf16>, vector<2x16x8xbf16>, vector<2x16x8xbf16> -> vector<2x16x72xbf16>
    %cst_185 = arith.constant dense<0.000000e+00> : vector<2x16x16xf32>
    %419 = tpu.matmul %418, %386, %cst_185 {dimension_numbers = #tpu.dot_dimension_numbers<[2], [0], [0, 1], [1], [0, 0, 0, 1, 1, 1], [], []>} : vector<2x16x72xbf16>, vector<72x16xbf16>, vector<2x16x16xf32> -> vector<2x16x16xf32>
    %420 = vector.shape_cast %390 : vector<1x16xf32> to vector<1x1x16xf32>
    %421 = vector.broadcast %420 : vector<1x1x16xf32> to vector<2x16x16xf32>
    %422 = arith.addf %419, %421 : vector<2x16x16xf32>
    %cst_186 = arith.constant dense<0.000000e+00> : vector<16xf32>
    %423 = vector.multi_reduction <add>, %422, %cst_186 [0, 1] : vector<2x16x16xf32> to vector<16xf32>
    %424 = vector.shape_cast %423 : vector<16xf32> to vector<1x1x16xf32>
    %425 = arith.mulf %422, %422 : vector<2x16x16xf32>
    %cst_187 = arith.constant dense<0.000000e+00> : vector<16xf32>
    %426 = vector.multi_reduction <add>, %425, %cst_187 [0, 1] : vector<2x16x16xf32> to vector<16xf32>
    %427 = vector.shape_cast %426 : vector<16xf32> to vector<1x1x16xf32>
    %cst_188 = arith.constant 3.200000e+01 : f32
    %428 = vector.broadcast %cst_188 : f32 to vector<1x1x16xf32>
    %429 = arith.divf %424, %428 : vector<1x1x16xf32>
    %cst_189 = arith.constant 3.200000e+01 : f32
    %430 = vector.broadcast %cst_189 : f32 to vector<1x1x16xf32>
    %431 = arith.divf %427, %430 : vector<1x1x16xf32>
    %432 = arith.mulf %429, %429 : vector<1x1x16xf32>
    %433 = arith.subf %431, %432 : vector<1x1x16xf32>
    %cst_190 = arith.constant 0.000000e+00 : f32
    %434 = vector.broadcast %cst_190 : f32 to vector<1x1x16xf32>
    %435 = arith.maximumf %433, %434 : vector<1x1x16xf32>
    %436 = vector.broadcast %429 : vector<1x1x16xf32> to vector<2x16x16xf32>
    %437 = arith.subf %422, %436 : vector<2x16x16xf32>
    %cst_191 = arith.constant 9.99999974E-6 : f32
    %438 = vector.broadcast %cst_191 : f32 to vector<1x1x16xf32>
    %439 = arith.addf %435, %438 : vector<1x1x16xf32>
    %440 = math.rsqrt %439 : vector<1x1x16xf32>
    %441 = vector.broadcast %440 : vector<1x1x16xf32> to vector<2x16x16xf32>
    %442 = arith.mulf %437, %441 : vector<2x16x16xf32>
    %443 = vector.shape_cast %392 : vector<1x16xf32> to vector<1x1x16xf32>
    %444 = vector.broadcast %443 : vector<1x1x16xf32> to vector<2x16x16xf32>
    %445 = arith.mulf %442, %444 : vector<2x16x16xf32>
    %446 = vector.shape_cast %394 : vector<1x16xf32> to vector<1x1x16xf32>
    %447 = vector.broadcast %446 : vector<1x1x16xf32> to vector<2x16x16xf32>
    %448 = arith.addf %445, %447 : vector<2x16x16xf32>
    %cst_192 = arith.constant 0.000000e+00 : f32
    %449 = vector.broadcast %cst_192 : f32 to vector<2x16x16xf32>
    %450 = arith.maximumf %448, %449 : vector<2x16x16xf32>
    %c1_193 = arith.constant 1 : index
    %c0_194 = arith.constant 0 : index
    %c0_195 = arith.constant 0 : index
    %451 = vector.load %arg4[%c1_193, %c0_194, %c0_195] : memref<2x16x16xbf16, #tpu.memory_space<vmem>>, vector<1x16x16xbf16>
    %452 = vector.shape_cast %451 : vector<1x16x16xbf16> to vector<16x16xbf16>
    %c1_196 = arith.constant 1 : index
    %c0_197 = arith.constant 0 : index
    %c0_198 = arith.constant 0 : index
    %453 = vector.load %arg5[%c1_196, %c0_197, %c0_198] : memref<2x2x16xf32, #tpu.memory_space<vmem>>, vector<1x1x16xf32>
    %454 = vector.shape_cast %453 : vector<1x1x16xf32> to vector<1x16xf32>
    %c1_199 = arith.constant 1 : index
    %c1_200 = arith.constant 1 : index
    %c0_201 = arith.constant 0 : index
    %455 = vector.load %arg5[%c1_199, %c1_200, %c0_201] : memref<2x2x16xf32, #tpu.memory_space<vmem>>, vector<1x1x16xf32>
    %456 = vector.shape_cast %455 : vector<1x1x16xf32> to vector<1x16xf32>
    %cst_202 = arith.constant dense<0.000000e+00> : vector<2x16x16xf32>
    %457 = tpu.matmul %243, %452, %cst_202 {dimension_numbers = #tpu.dot_dimension_numbers<[2], [0], [0, 1], [1], [0, 0, 0, 1, 1, 1], [], []>} : vector<2x16x16xbf16>, vector<16x16xbf16>, vector<2x16x16xf32> -> vector<2x16x16xf32>
    %cst_203 = arith.constant dense<0.000000e+00> : vector<16xf32>
    %458 = vector.multi_reduction <add>, %457, %cst_203 [0, 1] : vector<2x16x16xf32> to vector<16xf32>
    %459 = vector.shape_cast %458 : vector<16xf32> to vector<1x1x16xf32>
    %460 = arith.mulf %457, %457 : vector<2x16x16xf32>
    %cst_204 = arith.constant dense<0.000000e+00> : vector<16xf32>
    %461 = vector.multi_reduction <add>, %460, %cst_204 [0, 1] : vector<2x16x16xf32> to vector<16xf32>
    %462 = vector.shape_cast %461 : vector<16xf32> to vector<1x1x16xf32>
    %cst_205 = arith.constant 3.200000e+01 : f32
    %463 = vector.broadcast %cst_205 : f32 to vector<1x1x16xf32>
    %464 = arith.divf %459, %463 : vector<1x1x16xf32>
    %cst_206 = arith.constant 3.200000e+01 : f32
    %465 = vector.broadcast %cst_206 : f32 to vector<1x1x16xf32>
    %466 = arith.divf %462, %465 : vector<1x1x16xf32>
    %467 = arith.mulf %464, %464 : vector<1x1x16xf32>
    %468 = arith.subf %466, %467 : vector<1x1x16xf32>
    %cst_207 = arith.constant 0.000000e+00 : f32
    %469 = vector.broadcast %cst_207 : f32 to vector<1x1x16xf32>
    %470 = arith.maximumf %468, %469 : vector<1x1x16xf32>
    %471 = vector.broadcast %464 : vector<1x1x16xf32> to vector<2x16x16xf32>
    %472 = arith.subf %457, %471 : vector<2x16x16xf32>
    %cst_208 = arith.constant 9.99999974E-6 : f32
    %473 = vector.broadcast %cst_208 : f32 to vector<1x1x16xf32>
    %474 = arith.addf %470, %473 : vector<1x1x16xf32>
    %475 = math.rsqrt %474 : vector<1x1x16xf32>
    %476 = vector.broadcast %475 : vector<1x1x16xf32> to vector<2x16x16xf32>
    %477 = arith.mulf %472, %476 : vector<2x16x16xf32>
    %478 = vector.shape_cast %454 : vector<1x16xf32> to vector<1x1x16xf32>
    %479 = vector.broadcast %478 : vector<1x1x16xf32> to vector<2x16x16xf32>
    %480 = arith.mulf %477, %479 : vector<2x16x16xf32>
    %481 = vector.shape_cast %456 : vector<1x16xf32> to vector<1x1x16xf32>
    %482 = vector.broadcast %481 : vector<1x1x16xf32> to vector<2x16x16xf32>
    %483 = arith.addf %480, %482 : vector<2x16x16xf32>
    %484 = arith.addf %483, %450 : vector<2x16x16xf32>
    %cst_209 = arith.constant 0.000000e+00 : f32
    %485 = vector.broadcast %cst_209 : f32 to vector<2x16x16xf32>
    %486 = arith.maximumf %484, %485 : vector<2x16x16xf32>
    %c0_210 = arith.constant 0 : index
    %c0_211 = arith.constant 0 : index
    %c0_212 = arith.constant 0 : index
    %487 = vector.load %arg6[%c0_210, %c0_211, %c0_212] : memref<2x16x16xf32, #tpu.memory_space<vmem>>, vector<2x16x16xf32>
    tpu.vector_store %arg6[%c0_210, %c0_211, %c0_212], %486 {strides = array<i32>} : memref<2x16x16xf32, #tpu.memory_space<vmem>>, vector<2x16x16xf32>,
    return
  }
}

</mosaic_0001>

<bundles_post_ra>
// kernel: inception_time_forward.1
= control target key start
LH: loop header
LB: loop body
LE: loop exit
PB: predicated region body
PF: predicated region fallthrough
CT: control target
= control target key end

     0   :  { %vm65_vm0 = vcmask 1041408   ;;  %vm4916_vm1 = vcmask 31744   ;;  %s4909_s0 = inlined_call_operand.vmem [shape: bf16[2,16,4], index: 0, kind: input, shape index: {}]   ;;  %s4910_s1 = inlined_call_operand.vmem [shape: bf16[6,16,8], index: 1, kind: input, shape index: {}]   ;;  %s4911_s2 = inlined_call_operand.vmem [shape: bf16[6,72,16], index: 2, kind: input, shape index: {}]   ;;  %s4912_s3 = inlined_call_operand.vmem [shape: f32[6,4,16], index: 3, kind: input, shape index: {}]   ;;  %s4913_s4 = inlined_call_operand.vmem [shape: bf16[2,16,16], index: 4, kind: input, shape index: {}]   ;;  %s4914_s5 = inlined_call_operand.vmem [shape: f32[2,2,16], index: 5, kind: input, shape index: {}]   ;;  %s4915_s6 = inlined_call_operand.hbm [shape: f32[2,16,16], index: 6, kind: output, shape index: {}]  }
   0x1   :  { %v30_v0 = vld [vmem:[%s4910_s1] sm:$0x3]  ;;  %v3521_v3 = vld [vmem:[%s4909_s0 + $0x8] sm:$0xff]  }
   0x2   :  { %v3520_v1 = vld [vmem:[%s4909_s0] sm:$0xff]   ;;  %3502 = vmatprep.subr.msk.bf16.mxu1 %vm65_vm0, %v30_v0  ;;  %v67_v2 = vsel %vm65_vm0, %v30_v0, 0 }
   0x3   :  { %3371 = vmatpush3.bf16.msra.mxu1 %v67_v2  ;;  %3372 = vmatprep.mubr.msk.bf16.mxu1 %vm4916_vm1, %v3520_v1 }
   0x6   :  { %3373 = vmatmul.mubr.msk.bf16.vlgmr.msra.gmra.mrb[0].mxu1 %vm4916_vm1, %v3521_v3 }
   0x7   :  { %11 = vsyncpa [#allocation3], 0  ;;  %v3131_v5 = vld [vmem:[%s4912_s3] ss:$0 sm:$0xff]  ;;  %vm149_vm2 = vcmask 1040384   ;;  %vm189_vm5 = vcmask 1046528  }
   0x8   :  { %vm150_vm3 = vsmask.f32 256  ;;  %v3522_v26 = vld [vmem:[%s4911_s2] sm:$0xff]   ;;  %vm261_vm6 = vcmask 1045504   ;;  %vm4921_vm7 = vcmask 1044480   ;;  %s3600_s7 = smov 16  }
   0x9   :  { %vm3665_vm4 = vmand %vm149_vm2, %vm150_vm3  ;;  %3376 = vmatprep.subr.bf16.mxu1 %v3522_v26  ;;  %vm156_vm8 = vsmask.f32 7424  ;;  %v3523_v39 = vld [vmem:[%s4911_s2 + $0x8] sm:$0xff]   ;;  %s3601_s10 = smov 32   ;;  %vm4920_vm9 = vsmask.f32 6400 }
   0xa   :  { %3377 = vmatpush3.bf16.msra.mxu1 %v3522_v26  ;;  %v3524_v56 = vld [vmem:[%s4911_s2 + $0x10] sm:$0xff]   ;;  %s3602_s13 = smov 48   ;;  %vm4919_vm10 = vsmask.f32 5376  ;;  %s3603_s16 = smov 8   ;;  %vm403_vm12 = vcmask 1043456  }
   0xb   :  { %3378 = vmatprep.subr.bf16.mxu1 %v3523_v39  ;;  %s3604_s17 = smov 24   ;;  %vm4918_vm11 = vsmask.f32 4352  ;;  %s3605_s18 = smov 40   ;;  %vm4917_vm13 = vcmask 64512   ;;  %vm332_vm14 = vcmask 130048  }
   0xc   :  { %s3606_s21 = smov 56   ;;  %s3607_s22 = smov 64   ;;  %vm337_vm15 = vcmask 195584   ;;  %vm342_vm2 = vcmask 261120   ;;  %vm347_vm3 = vcmask 326656   ;;  %vm352_vm1 = vcmask 392192  }
   0xe   :  { %3379 = vmatpush3.bf16.msra.mxu1 %v3523_v39 }
   0xf   :  { %3380 = vmatprep.subr.bf16.mxu1 %v3524_v56 }
  0x12   :  { %3381 = vmatpush3.bf16.msra.mxu1 %v3524_v56 }
  0xd9   :  { %v3374_v4 = vpop.f32.mrb[0].mxu1 }
  0xda   :  { %v103_v6 = vpop.f32.mrb[1].mxu1  ;;  %v112_v8 = vadd.f32 %v3374_v4, %v3131_v5 }
  0xdb   :  { %v3375_v7 = vpop.f32.mrb[2].mxu1  ;;  %v104_v11 = vadd.f32 %v3131_v5, %v103_v6 }
  0xdc   :  { %v115_v9 = vadd.f32 %v3375_v7, %v3131_v5  ;;  %v106_v10 = vpop.f32.mrb[3].mxu1 }
  0xdd   :  { %v107_v12 = vadd.f32 %v3131_v5, %v106_v10 }
  0xde   :  { %v119_v13 = vpack.c.bf16 %v115_v9, %v112_v8  ;;  %v3525_v9 = vld [vmem:[%s4911_s2 + $0x18] sm:$0xff]  }
  0xdf   :  { %v118_v14 = vpack.c.bf16 %v107_v12, %v104_v11  ;;  %3382 = vmatprep.subr.bf16.mxu1 %v3525_v9 }
  0xe0   :  { %v123_v15 = vrot.slane %v119_v13, 6  ;;  %v139_v16 = vshrl.u32 %v119_v13, 16  ;;  %v142_v29 = vshll.u32 %v119_v13, 16  ;;  %3383 = vmatpush3.bf16.msra.mxu1 %v3525_v9 }
  0xe1   :  { %v122_v17 = vrot.slane %v118_v14, 6  ;;  %v132_v18 = vshrl.u32 %v118_v14, 16  ;;  %v135_v41 = vshll.u32 %v118_v14, 16 }
  0xe2   :  { %v3662_v19 = vsel %vm65_vm0, 0, %v123_v15  ;;  %v130_v20 = vsel %vm65_vm0, %v123_v15, 0  ;;  %v141_v21 = vrot.slane %v139_v16, 7 }
  0xe3   :  { %v3670_v23 = vsel %vm65_vm0, 0, %v122_v17  ;;  %v3673_v24 = vsel %vm65_vm0, %v122_v17, 0  ;;  %v231_v25 = vrot.slane %v3662_v19, 1  ;;  %v232_v27 = vrot.slane %v130_v20, 1 }
  0xe4   :  { %v262_v28 = vrot.slane %v3670_v23, 2  ;;  %v3680_v30 = vrot.slane %v132_v18, 7  ;;  %v263_v31 = vrot.slane %v3673_v24, 2  ;;  %v3685_v32 = vsel %vm3665_vm4, %v141_v21, 4048220490 }
  0xe5   :  { %v233_v33 = vsel %vm189_vm5, %v231_v25, %v232_v27  ;;  %v265_v34 = vrot.slane %v3662_v19, 2  ;;  %v266_v35 = vrot.slane %v130_v20, 2  ;;  %v292_v37 = vrot.slane %v3670_v23, 3 }
  0xe6   :  { %236 = vrot.lane.b32.xlu1 %v233_v33, %s3600_s7  ;;  %v264_v36 = vsel %vm261_vm6, %v262_v28, %v263_v31  ;;  %v293_v38 = vrot.slane %v3673_v24, 3  ;;  %v3696_v40 = vor.u32 %v142_v29, %v141_v21  ;;  %v295_v42 = vrot.slane %v3662_v19, 3 }
  0xe7   :  { %268 = vrot.lane.b32.xlu0 %v264_v36, %s3601_s10  ;;  %v296_v43 = vrot.slane %v130_v20, 3  ;;  %v177_v44 = vshll.u32 %v3685_v32, 16  ;;  %v3702_v45 = vshrl.u32 %v3662_v19, 16  ;;  %v3705_v46 = vshll.u32 %v3662_v19, 16 }
  0xe8   :  { %v3707_v47 = vshll.u32 %v130_v20, 16  ;;  %v3710_v48 = vor.u32 %v135_v41, %v3680_v30  ;;  %v267_v49 = vsel %vm261_vm6, %v265_v34, %v266_v35  ;;  %v294_v50 = vsel %vm4921_vm7, %v292_v37, %v293_v38 }
  0xe9   :  { %v3715_v51 = vshrl.u32 %v3670_v23, 16  ;;  %v297_v52 = vsel %vm4921_vm7, %v295_v42, %v296_v43  ;;  %v214_v53 = vrot.slane %v3705_v46, 1  ;;  %v3721_v54 = vshll.u32 %v3670_v23, 16 }
  0xea   :  { %270 = vrot.lane.b32.xlu1 %v267_v49, %s3601_s10  ;;  %v3724_v55 = vshll.u32 %v3673_v24, 16  ;;  %v228_v57 = vrot.slane %v3670_v23, 1  ;;  %v248_v58 = vrot.slane %v3702_v45, 1  ;;  %v249_v59 = vrot.slane %v3705_v46, 2 }
  0xeb   :  { %298 = vrot.lane.b32.xlu0 %v294_v50, %s3602_s13  ;;  %v3733_v60 = vshrl.u32 %v130_v20, 16  ;;  %v215_v61 = vor.u32 %v214_v53, %v3702_v45  ;;  %v218_v62 = vrot.slane %v3707_v47, 1  ;;  %v204_v63 = vrot.slane %v3721_v54, 1 }
  0xec   :  { %v254_v0 = vrot.slane %v3707_v47, 2  ;;  %v229_v1 = vrot.slane %v3673_v24, 1  ;;  %v239_v3 = vrot.slane %v3715_v51, 1  ;;  %v240_v4 = vrot.slane %v3721_v54, 2 }
  0xed   :  { %v253_v2 = vrot.slane %v3733_v60, 1  ;;  %v219_v5 = vsel %vm156_vm8, %v215_v61, %v218_v62  ;;  %v205_v6 = vor.u32 %v204_v63, %v3715_v51  ;;  %v242_v7 = vshrl.u32 %v3673_v24, 16  ;;  %v3526_v61 = vld [vmem:[%s4911_s2 + $0x20] ss:$0 sps:$4 sm:$0xff]  }
  0xee   :  { %300 = vrot.lane.b32.xlu1 %v297_v52, %s3602_s13  ;;  %v245_v8 = vrot.slane %v3724_v55, 2  ;;  %v250_v10 = vor.u32 %v249_v59, %v248_v58  ;;  %v280_v12 = vrot.slane %v3702_v45, 2  ;;  %v281_v13 = vrot.slane %v3705_v46, 3  ;;  %3503 = vmatprep.subr.msk.bf16.mxu1 %vm403_vm12, %v3526_v61 }
  0xef   :  { %222 = vrot.lane.b32.xlu0 %v219_v5, %s3603_s16  ;;  %v255_v11 = vor.u32 %v254_v0, %v253_v2  ;;  %v208_v14 = vrot.slane %v3724_v55, 1  ;;  %v244_v15 = vrot.slane %v242_v7, 1  ;;  %v283_v16 = vrot.slane %v3733_v60, 2 }
  0xf0   :  { %v284_v17 = vrot.slane %v3707_v47, 3  ;;  %v230_v18 = vsel %vm189_vm5, %v228_v57, %v229_v1  ;;  %v241_v20 = vor.u32 %v240_v4, %v239_v3  ;;  %v273_v21 = vrot.slane %v3715_v51, 2 }
  0xf1   :  { %v274_v24 = vrot.slane %v3721_v54, 3  ;;  %v209_v25 = vsel %vm156_vm8, %v205_v6, %v208_v14  ;;  %v246_v26 = vor.u32 %v245_v8, %v244_v15  ;;  %v276_v27 = vrot.slane %v242_v7, 2 }
  0xf2   :  { %234 = vrot.lane.b32.xlu1 %v230_v18, %s3600_s7  ;;  %v277_v28 = vrot.slane %v3724_v55, 3  ;;  %v3766_v29 = vsel %vm3665_vm4, %v3680_v30, 4048220490  ;;  %v256_v31 = vsel %vm4920_vm9, %v250_v10, %v255_v11  ;;  %v282_v33 = vor.u32 %v281_v13, %v280_v12 }
  0xf3   :  { %220 = vrot.lane.b32.xlu0 %v209_v25, %s3603_s16  ;;  %v285_v34 = vor.u32 %v284_v17, %v283_v16  ;;  %v310_v35 = vrot.slane %v3702_v45, 3  ;;  %v311_v36 = vrot.slane %v3705_v46, 4  ;;  %v313_v37 = vrot.slane %v3733_v60, 3 }
  0xf4   :  { %v314_v38 = vrot.slane %v3707_v47, 4  ;;  %v247_v39 = vsel %vm4920_vm9, %v241_v20, %v246_v26  ;;  %v275_v41 = vor.u32 %v274_v24, %v273_v21  ;;  %v278_v42 = vor.u32 %v277_v28, %v276_v27 }
  0xf5   :  { %v303_v30 = vrot.slane %v3715_v51, 3  ;;  %v304_v43 = vrot.slane %v3721_v54, 4  ;;  %v306_v49 = vrot.slane %v242_v7, 3  ;;  %v307_v45 = vrot.slane %v3724_v55, 4 }
  0xf6   :  { %259 = vrot.lane.b32.xlu1 %v256_v31, %s3604_s17  ;;  %v153_v46 = vsel %vm3665_vm4, 4048220490, %v3696_v40  ;;  %v165_v50 = vshll.u32 %v3766_v29, 16  ;;  %v312_v52 = vor.u32 %v311_v36, %v310_v35  ;;  %v315_v51 = vor.u32 %v314_v38, %v313_v37 }
  0xf7   :  { %257 = vrot.lane.b32.xlu0 %v247_v39, %s3604_s17  ;;  %v172_v47 = vshll.u32 %v153_v46, 16  ;;  %v152_v53 = vsel %vm3665_vm4, 4048220490, %v3710_v48  ;;  %v286_v54 = vsel %vm4919_vm10, %v282_v33, %v285_v34  ;;  %v170_v56 = vshrl.u32 %v153_v46, 16 }
  0xf8   :  { %v160_v57 = vshll.u32 %v152_v53, 16  ;;  %v179_v40 = vrot.slane %v177_v44, 1  ;;  %v279_v58 = vsel %vm4919_vm10, %v275_v41, %v278_v42  ;;  %v305_v59 = vor.u32 %v304_v43, %v303_v30 }
  0xf9   :  { %v174_v55 = vrot.slane %v172_v47, 1  ;;  %v308_v60 = vor.u32 %v307_v45, %v306_v49  ;;  %v193_v62 = vrot.slane %v153_v46, 1  ;;  %v158_v63 = vshrl.u32 %v152_v53, 16 }
  0xfa   :  { %289 = vrot.lane.b32.xlu1 %v286_v54, %s3605_s18  ;;  %v162_v0 = vrot.slane %v160_v57, 1  ;;  %v167_v1 = vrot.slane %v165_v50, 1  ;;  %v316_v44 = vsel %vm4918_vm11, %v312_v52, %v315_v51  ;;  %v194_v2 = vrot.slane %v3685_v32, 1  ;;  %v3527_v51 = vld [vmem:[%s4910_s1 + $0x8] sm:$0xff]  }
  0xfb   :  { %287 = vrot.lane.b32.xlu0 %v279_v58, %s3605_s18  ;;  %v175_v48 = vor.u32 %v174_v55, %v170_v56  ;;  %v190_v5 = vrot.slane %v152_v53, 1  ;;  %v309_v6 = vsel %vm4918_vm11, %v305_v59, %v308_v60  ;;  %v405_v8 = vsel %vm403_vm12, %v3526_v61, 0  ;;  %3390 = vmatprep.subr.bf16.mxu0 %v3527_v51 }
  0xfc   :  { %v163_v4 = vor.u32 %v162_v0, %v158_v63  ;;  %v195_v9 = vsel %vm189_vm5, %v193_v62, %v194_v2  ;;  %v191_v10 = vrot.slane %v3766_v29, 1  ;;  %3385 = vmatpush3.bf16.msra.mxu1 %v405_v8  ;;  %vm362_vm11 = vcmask 523264   ;;  %3391 = vmatpush3.bf16.msra.mxu0 %v3527_v51 }
  0xfd   :  { %v180_v3 = vsel %vm156_vm8, %v175_v48, %v179_v40  ;;  %vm398_vm10 = vcmask 588800  }
  0xfe   :  { %319 = vrot.lane.b32.xlu1 %v316_v44, %s3606_s21  ;;  %v184_v7 = vmax.bf16 %v180_v3, %v153_v46  ;;  %v168_v32 = vsel %vm156_vm8, %v163_v4, %v167_v1  ;;  %v192_v13 = vsel %vm189_vm5, %v190_v5, %v191_v10 }
  0xff   :  { %317 = vrot.lane.b32.xlu0 %v309_v6, %s3606_s21  ;;  %v183_v12 = vmax.bf16 %v168_v32, %v152_v53  ;;  %v3136_v53 = vld [vmem:[%s4912_s3 + $0x1] ss:$0 sm:$0xff] }
 0x100   :  { %v199_v11 = vmax.bf16 %v195_v9, %v184_v7 }
 0x101   :  { %v198_v14 = vmax.bf16 %v192_v13, %v183_v12 }
 0x102   :  { %325 = vrot.lane.b32.xlu1 %v199_v11, %s3607_s22 }
 0x103   :  { %323 = vrot.lane.b32.xlu0 %v198_v14, %s3607_s22 }
 0x158   :  { %v237_v15 = vpop.permute.xlu1 %236 }
 0x159   :  { %v269_v16 = vpop.permute.xlu0 %268 }
 0x15c   :  { %v271_v17 = vpop.permute.xlu1 %270 }
 0x15d   :  { %v299_v18 = vpop.permute.xlu0 %298 }
 0x160   :  { %v301_v20 = vpop.permute.xlu1 %300 }
 0x161   :  { %v223_v21 = vpop.permute.xlu0 %222 }
 0x162   :  { %v331_v29 = vsel %vm4917_vm13, %v3662_v19, %v223_v21 }
 0x163   :  { %v336_v35 = vsel %vm332_vm14, %v331_v29, %v237_v15 }
 0x164   :  { %v235_v24 = vpop.permute.xlu1 %234 }
 0x165   :  { %v221_v25 = vpop.permute.xlu0 %220 }
 0x166   :  { %v329_v28 = vsel %vm4917_vm13, %v3670_v23, %v221_v25  ;;  %vm357_vm13 = vcmask 457728  }
 0x167   :  { %v334_v33 = vsel %vm332_vm14, %v329_v28, %v235_v24 }
 0x168   :  { %v260_v26 = vpop.permute.xlu1 %259 }
 0x169   :  { %v258_v27 = vpop.permute.xlu0 %257  ;;  %v341_v37 = vsel %vm337_vm15, %v336_v35, %v260_v26 }
 0x16a   :  { %v339_v36 = vsel %vm337_vm15, %v334_v33, %v258_v27  ;;  %v346_v19 = vsel %vm342_vm2, %v341_v37, %v271_v17 }
 0x16b   :  { %v344_v23 = vsel %vm342_vm2, %v339_v36, %v269_v16 }
 0x16c   :  { %v290_v31 = vpop.permute.xlu1 %289 }
 0x16d   :  { %v288_v34 = vpop.permute.xlu0 %287  ;;  %v351_v42 = vsel %vm347_vm3, %v346_v19, %v290_v31 }
 0x16e   :  { %v349_v41 = vsel %vm347_vm3, %v344_v23, %v288_v34  ;;  %v356_v49 = vsel %vm352_vm1, %v351_v42, %v301_v20 }
 0x16f   :  { %v354_v30 = vsel %vm352_vm1, %v349_v41, %v299_v18 }
 0x170   :  { %v320_v38 = vpop.permute.xlu1 %319 }
 0x171   :  { %v318_v39 = vpop.permute.xlu0 %317  ;;  %v361_v47 = vsel %vm357_vm13, %v356_v49, %v320_v38 }
 0x172   :  { %v359_v45 = vsel %vm357_vm13, %v354_v30, %v318_v39  ;;  %v3144_v39 = vld [vmem:[%s4912_s3 + $0x2] ss:$0 sm:$0xff] }
 0x174   :  { %v326_v43 = vpop.permute.xlu1 %325 }
 0x175   :  { %v324_v46 = vpop.permute.xlu0 %323  ;;  %v366_v52 = vsel %vm362_vm11, %v361_v47, %v326_v43  ;;  %v3145_v43 = vld [vmem:[%s4912_s3 + $0x3] ss:$0 sm:$0xff] }
 0x176   :  { %v364_v50 = vsel %vm362_vm11, %v359_v45, %v324_v46 }
 0x177   :  { %3386 = vmatprep.mubr.msk.bf16.mxu1 %vm398_vm10, %v364_v50 }
 0x178   :  { %3387 = vmatmul.mubr.msk.bf16.vlgmr.msra.gmra.mrb[4].mxu1 %vm398_vm10, %v366_v52 }
 0x24b   :  { %v3388_v54 = vpop.f32.mrb[4].mxu1 }
 0x24c   :  { %v441_v56 = vpop.f32.mrb[5].mxu1  ;;  %v450_v55 = vadd.f32 %v3388_v54, %v3136_v53 }
 0x24d   :  { %v442_v57 = vadd.f32 %v3136_v53, %v441_v56  ;;  %v3389_v40 = vpop.f32.mrb[6].mxu1 }
 0x24e   :  { %v444_v58 = vpop.f32.mrb[7].mxu1  ;;  %v453_v60 = vadd.f32 %v3389_v40, %v3136_v53  ;;  %v471_v48 = vmul.f32 %v450_v55, %v450_v55  ;;  %v459_v44 = vsel %vm332_vm14, %v450_v55, 0.0 }
 0x24f   :  { %v469_v59 = vmul.f32 %v442_v57, %v442_v57  ;;  %v445_v61 = vadd.f32 %v3136_v53, %v444_v58  ;;  %v456_v62 = vsel %vm332_vm14, %v442_v57, 0.0 }
 0x250   :  { %v472_v3 = vmul.f32 %v453_v60, %v453_v60  ;;  %v476_v7 = vsel %vm332_vm14, %v471_v48, 0.0  ;;  %v461_v8 = vsel %vm332_vm14, %v453_v60, 0.0 }
 0x251   :  { %v457_v63 = vsel %vm332_vm14, %v445_v61, 0.0  ;;  %v470_v0 = vmul.f32 %v445_v61, %v445_v61  ;;  %v473_v2 = vsel %vm332_vm14, %v469_v59, 0.0 }
 0x252   :  { %v458_v1 = vadd.f32 %v457_v63, %v456_v62  ;;  %v478_v10 = vsel %vm332_vm14, %v472_v3, 0.0 }
 0x253   :  { %v474_v4 = vsel %vm332_vm14, %v470_v0, 0.0 }
 0x254   :  { %v460_v5 = vadd.f32 %v459_v44, %v458_v1  ;;  %v475_v6 = vadd.f32 %v474_v4, %v473_v2 }
 0x256   :  { %v462_v9 = vadd.f32 %v461_v8, %v460_v5  ;;  %v477_v32 = vadd.f32 %v476_v7, %v475_v6 }
 0x258   :  { %v463_v11 = vrot.slane %v462_v9, 4  ;;  %v479_v12 = vadd.f32 %v478_v10, %v477_v32  ;;  %v3528_v32 = vld [vmem:[%s4911_s2 + $0x24] sm:$0xff]  }
 0x259   :  { %3396 = vmatprep.subr.bf16.mxu0 %v3528_v32 }
 0x25a   :  { %v464_v13 = vadd.f32 %v463_v11, %v462_v9  ;;  %v480_v14 = vrot.slane %v479_v12, 4 }
 0x25c   :  { %v465_v15 = vrot.slane %v464_v13, 2  ;;  %v481_v16 = vadd.f32 %v480_v14, %v479_v12 }
 0x25e   :  { %v466_v17 = vadd.f32 %v465_v15, %v464_v13  ;;  %v482_v18 = vrot.slane %v481_v16, 2 }
 0x260   :  { %v467_v20 = vrot.slane %v466_v17, 1  ;;  %v483_v21 = vadd.f32 %v482_v18, %v481_v16 }
 0x262   :  { %v468_v24 = vadd.f32 %v467_v20, %v466_v17  ;;  %v484_v25 = vrot.slane %v483_v21, 1 }
 0x264   :  { %v485_v26 = vadd.f32 %v484_v25, %v483_v21  ;;  %v487_v27 = vmul.f32 0.03125, %v468_v24 }
 0x266   :  { %v488_v28 = vmul.f32 0.03125, %v485_v26  ;;  %v489_v29 = vmul.f32 %v487_v27, %v487_v27  ;;  %v493_v31 = vsub.f32 %v445_v61, %v487_v27  ;;  %v492_v33 = vsub.f32 %v442_v57, %v487_v27 }
 0x267   :  { %v494_v34 = vsub.f32 %v450_v55, %v487_v27  ;;  %v495_v35 = vsub.f32 %v453_v60, %v487_v27  ;;  %v3161_v60 = vld [vmem:[%s4912_s3 + $0x4] ss:$0 sm:$0xff] }
 0x268   :  { %v490_v36 = vsub.f32 %v488_v28, %v489_v29  ;;  %v3529_v29 = vld [vmem:[%s4911_s2 + $0x2c] sm:$0xff]  }
 0x26a   :  { %v491_v37 = vmax.f32 %v490_v36, 0.0 }
 0x26c   :  { %v496_v38 = vadd.f32 1e-05, %v491_v37 }
 0x26e   :  { %3558 = vrsqrt.f32 %v496_v38 }
 0x278   :  { %v3559_v23 = vpop.eup %3558 }
 0x279   :  { %v499_v19 = vmul.f32 %v3559_v23, %v493_v31  ;;  %v498_v41 = vmul.f32 %v3559_v23, %v492_v33  ;;  %v500_v42 = vmul.f32 %v3559_v23, %v494_v34  ;;  %v501_v30 = vmul.f32 %v3559_v23, %v495_v35 }
 0x27b   :  { %v506_v49 = vmul.f32 %v3144_v39, %v498_v41  ;;  %v507_v45 = vmul.f32 %v3144_v39, %v499_v19  ;;  %v508_v46 = vmul.f32 %v3144_v39, %v500_v42  ;;  %v509_v47 = vmul.f32 %v3144_v39, %v501_v30 }
 0x27d   :  { %v514_v50 = vadd.f32 %v3145_v43, %v506_v49  ;;  %v515_v52 = vadd.f32 %v3145_v43, %v507_v45  ;;  %v516_v51 = vadd.f32 %v3145_v43, %v508_v46  ;;  %v517_v53 = vadd.f32 %v3145_v43, %v509_v47  ;;  %v3530_v46 = vld [vmem:[%s4911_s2 + $0x34] sm:$0xff]  }
 0x27f   :  { %v518_v54 = vmax.f32 %v514_v50, 0.0  ;;  %v519_v56 = vmax.f32 %v515_v52, 0.0  ;;  %v520_v55 = vmax.f32 %v516_v51, 0.0  ;;  %v521_v57 = vmax.f32 %v517_v53, 0.0 }
 0x281   :  { %v522_v40 = vpack.c.bf16 %v519_v56, %v518_v54  ;;  %v523_v58 = vpack.c.bf16 %v521_v57, %v520_v55 }
 0x283   :  { %3392 = vmatprep.mubr.msk.bf16.mxu0 %vm332_vm14, %v522_v40 }
 0x284   :  { %3393 = vmatmul.mubr.msk.bf16.vlgmr.msra.gmra.mrb[0].mxu0 %vm332_vm14, %v523_v58 }
 0x285   :  { %3397 = vmatpush3.bf16.msra.mxu0 %v3528_v32 }
 0x286   :  { %3398 = vmatprep.subr.bf16.mxu0 %v3529_v29 }
 0x289   :  { %3399 = vmatpush3.bf16.msra.mxu0 %v3529_v29 }
 0x28a   :  { %3400 = vmatprep.subr.bf16.mxu0 %v3530_v46 }
 0x28d   :  { %3401 = vmatpush3.bf16.msra.mxu0 %v3530_v46 }
 0x357   :  { %v3394_v59 = vpop.f32.mrb[0].mxu0 }
 0x358   :  { %v592_v61 = vpop.f32.mrb[1].mxu0  ;;  %v601_v62 = vadd.f32 %v3394_v59, %v3161_v60 }
 0x359   :  { %v3395_v48 = vpop.f32.mrb[2].mxu0  ;;  %v593_v1 = vadd.f32 %v3161_v60, %v592_v61 }
 0x35a   :  { %v604_v63 = vadd.f32 %v3395_v48, %v3161_v60  ;;  %v595_v0 = vpop.f32.mrb[3].mxu0 }
 0x35b   :  { %v596_v44 = vadd.f32 %v3161_v60, %v595_v0 }
 0x35c   :  { %v608_v2 = vpack.c.bf16 %v604_v63, %v601_v62  ;;  %v3531_v63 = vld [vmem:[%s4911_s2 + $0x3c] sm:$0xff]  }
 0x35d   :  { %v607_v3 = vpack.c.bf16 %v596_v44, %v593_v1  ;;  %3402 = vmatprep.subr.bf16.mxu0 %v3531_v63 }
 0x35e   :  { %v612_v4 = vrot.slane %v608_v2, 6  ;;  %v627_v5 = vshrl.u32 %v608_v2, 16  ;;  %v630_v18 = vshll.u32 %v608_v2, 16  ;;  %3403 = vmatpush3.bf16.msra.mxu0 %v3531_v63 }
 0x35f   :  { %v611_v6 = vrot.slane %v607_v3, 6  ;;  %v620_v12 = vshrl.u32 %v607_v3, 16  ;;  %v623_v34 = vshll.u32 %v607_v3, 16 }
 0x360   :  { %v3856_v7 = vsel %vm65_vm0, 0, %v612_v4  ;;  %v618_v8 = vsel %vm65_vm0, %v612_v4, 0  ;;  %v629_v9 = vrot.slane %v627_v5, 7 }
 0x361   :  { %v3863_v10 = vsel %vm65_vm0, 0, %v611_v6  ;;  %v617_v11 = vsel %vm65_vm0, %v611_v6, 0  ;;  %v714_v13 = vrot.slane %v3856_v7, 1  ;;  %v715_v14 = vrot.slane %v618_v8, 1 }
 0x362   :  { %v711_v15 = vrot.slane %v3863_v10, 1  ;;  %v3870_v16 = vsel %vm3665_vm4, %v629_v9, 4048220490  ;;  %v712_v17 = vrot.slane %v617_v11, 1  ;;  %v746_v21 = vrot.slane %v3856_v7, 2 }
 0x363   :  { %v716_v20 = vsel %vm189_vm5, %v714_v13, %v715_v14  ;;  %v747_v24 = vrot.slane %v618_v8, 2  ;;  %v3874_v25 = vrot.slane %v620_v12, 7  ;;  %v743_v27 = vrot.slane %v3863_v10, 2 }
 0x364   :  { %719 = vrot.lane.b32.xlu1 %v716_v20, %s3600_s7  ;;  %v713_v26 = vsel %vm189_vm5, %v711_v15, %v712_v17  ;;  %v744_v28 = vrot.slane %v617_v11, 2  ;;  %v3882_v31 = vor.u32 %v630_v18, %v629_v9  ;;  %v661_v33 = vshll.u32 %v3870_v16, 16  ;;  %v3532_v17 = vld [vmem:[%s4911_s2 + $0x44] ss:$0 sps:$4 sm:$0xff]  }
 0x365   :  { %717 = vrot.lane.b32.xlu0 %v713_v26, %s3600_s7  ;;  %v774_v35 = vrot.slane %v3856_v7, 3  ;;  %v775_v36 = vrot.slane %v618_v8, 3  ;;  %v771_v37 = vrot.slane %v3863_v10, 3  ;;  %v772_v38 = vrot.slane %v617_v11, 3  ;;  %3504 = vmatprep.subr.msk.bf16.mxu0 %vm403_vm12, %v3532_v17 }
 0x366   :  { %v3889_v23 = vshrl.u32 %v3856_v7, 16  ;;  %v748_v39 = vsel %vm261_vm6, %v746_v21, %v747_v24  ;;  %v3893_v19 = vshll.u32 %v3856_v7, 16  ;;  %v3895_v41 = vshll.u32 %v618_v8, 16 }
 0x367   :  { %v3898_v42 = vshrl.u32 %v3863_v10, 16  ;;  %v3901_v30 = vor.u32 %v623_v34, %v3874_v25  ;;  %v745_v43 = vsel %vm261_vm6, %v743_v27, %v744_v28  ;;  %v3906_v49 = vshll.u32 %v3863_v10, 16 }
 0x368   :  { %751 = vrot.lane.b32.xlu1 %v748_v39, %s3601_s10  ;;  %v3908_v45 = vshll.u32 %v617_v11, 16  ;;  %v697_v47 = vrot.slane %v3893_v19, 1  ;;  %v730_v50 = vrot.slane %v3889_v23, 1  ;;  %v731_v52 = vrot.slane %v3893_v19, 2 }
 0x369   :  { %749 = vrot.lane.b32.xlu0 %v745_v43, %s3601_s10  ;;  %v3917_v51 = vshrl.u32 %v618_v8, 16  ;;  %v776_v53 = vsel %vm4921_vm7, %v774_v35, %v775_v36  ;;  %v773_v54 = vsel %vm4921_vm7, %v771_v37, %v772_v38  ;;  %v687_v56 = vrot.slane %v3906_v49, 1 }
 0x36a   :  { %v736_v55 = vrot.slane %v3895_v41, 2  ;;  %v698_v57 = vor.u32 %v697_v47, %v3889_v23  ;;  %v721_v58 = vrot.slane %v3898_v42, 1  ;;  %v722_v59 = vrot.slane %v3906_v49, 2 }
 0x36b   :  { %v735_v40 = vrot.slane %v3917_v51, 1  ;;  %v701_v60 = vrot.slane %v3895_v41, 1  ;;  %v688_v61 = vor.u32 %v687_v56, %v3898_v42  ;;  %v724_v48 = vshrl.u32 %v617_v11, 16 }
 0x36c   :  { %779 = vrot.lane.b32.xlu1 %v776_v53, %s3602_s13  ;;  %v727_v62 = vrot.slane %v3908_v45, 2  ;;  %v732_v0 = vor.u32 %v731_v52, %v730_v50  ;;  %v760_v44 = vrot.slane %v3889_v23, 2  ;;  %v761_v2 = vrot.slane %v3893_v19, 3 }
 0x36d   :  { %777 = vrot.lane.b32.xlu0 %v773_v54, %s3602_s13  ;;  %v737_v1 = vor.u32 %v736_v55, %v735_v40  ;;  %v691_v3 = vrot.slane %v3908_v45, 1  ;;  %v726_v4 = vrot.slane %v724_v48, 1  ;;  %v763_v5 = vrot.slane %v3917_v51, 2 }
 0x36e   :  { %v764_v6 = vrot.slane %v3895_v41, 3  ;;  %v702_v8 = vsel %vm156_vm8, %v698_v57, %v701_v60  ;;  %v723_v9 = vor.u32 %v722_v59, %v721_v58  ;;  %v753_v32 = vrot.slane %v3898_v42, 2 }
 0x36f   :  { %v754_v11 = vrot.slane %v3906_v49, 3  ;;  %v692_v12 = vsel %vm156_vm8, %v688_v61, %v691_v3  ;;  %v728_v13 = vor.u32 %v727_v62, %v726_v4  ;;  %v756_v14 = vrot.slane %v724_v48, 2 }
 0x370   :  { %705 = vrot.lane.b32.xlu1 %v702_v8, %s3603_s16  ;;  %v757_v15 = vrot.slane %v3908_v45, 3  ;;  %v639_v18 = vsel %vm3665_vm4, %v3874_v25, 4048220490  ;;  %v738_v20 = vsel %vm4920_vm9, %v732_v0, %v737_v1  ;;  %v762_v21 = vor.u32 %v761_v2, %v760_v44 }
 0x371   :  { %703 = vrot.lane.b32.xlu0 %v692_v12, %s3603_s16  ;;  %v765_v24 = vor.u32 %v764_v6, %v763_v5  ;;  %v788_v26 = vrot.slane %v3889_v23, 3  ;;  %v789_v27 = vrot.slane %v3893_v19, 4  ;;  %v791_v28 = vrot.slane %v3917_v51, 3 }
 0x372   :  { %v792_v29 = vrot.slane %v3895_v41, 4  ;;  %v729_v34 = vsel %vm4920_vm9, %v723_v9, %v728_v13  ;;  %v755_v35 = vor.u32 %v754_v11, %v753_v32  ;;  %v758_v25 = vor.u32 %v757_v15, %v756_v14 }
 0x373   :  { %v781_v36 = vrot.slane %v3898_v42, 3  ;;  %v782_v37 = vrot.slane %v3906_v49, 4  ;;  %v784_v38 = vrot.slane %v724_v48, 3  ;;  %v785_v23 = vrot.slane %v3908_v45, 4 }
 0x374   :  { %741 = vrot.lane.b32.xlu1 %v738_v20, %s3604_s17  ;;  %v638_v39 = vsel %vm3665_vm4, 4048220490, %v3882_v31  ;;  %v649_v19 = vshll.u32 %v639_v18, 16  ;;  %v663_v43 = vrot.slane %v661_v33, 1  ;;  %v790_v46 = vor.u32 %v789_v27, %v788_v26 }
 0x375   :  { %739 = vrot.lane.b32.xlu0 %v729_v34, %s3604_s17  ;;  %v656_v41 = vshll.u32 %v638_v39, 16  ;;  %v793_v42 = vor.u32 %v792_v29, %v791_v28  ;;  %v637_v49 = vsel %vm3665_vm4, 4048220490, %v3901_v30  ;;  %vm4924_vm9 = vsmask.f32 5376 }
 0x376   :  { %v766_v47 = vsel %vm4924_vm9, %v762_v21, %v765_v24  ;;  %v654_v45 = vshrl.u32 %v638_v39, 16  ;;  %v644_v52 = vshll.u32 %v637_v49, 16  ;;  %vm4925_vm7 = vmmov %vm4924_vm9  ;;  %v783_v51 = vor.u32 %v782_v37, %v781_v36 }
 0x377   :  { %v658_v50 = vrot.slane %v656_v41, 1  ;;  %v759_v31 = vsel %vm4925_vm7, %v755_v35, %v758_v25  ;;  %v786_v53 = vor.u32 %v785_v23, %v784_v38  ;;  %v873_v54 = vsel %vm403_vm12, %v3532_v17, 0 }
 0x378   :  { %769 = vrot.lane.b32.xlu1 %v766_v47, %s3605_s18  ;;  %v676_v56 = vrot.slane %v638_v39, 1  ;;  %v642_v55 = vshrl.u32 %v637_v49, 16  ;;  %v646_v57 = vrot.slane %v644_v52, 1  ;;  %3405 = vmatpush3.bf16.msra.mxu0 %v873_v54  ;;  %v651_v30 = vrot.slane %v649_v19, 1 }
 0x379   :  { %767 = vrot.lane.b32.xlu0 %v759_v31, %s3605_s18  ;;  %v659_v33 = vor.u32 %v658_v50, %v654_v45  ;;  %vm4926_vm9 = vsmask.f32 4352  ;;  %v677_v59 = vrot.slane %v3870_v16, 1  ;;  %v673_v61 = vrot.slane %v637_v49, 1 }
 0x37a   :  { %v794_v40 = vsel %vm4926_vm9, %v790_v46, %v793_v42  ;;  %v647_v60 = vor.u32 %v646_v57, %v642_v55  ;;  %vm4927_vm7 = vmmov %vm4926_vm9  ;;  %v674_v1 = vrot.slane %v639_v18, 1  ;;  %vm4928_vm9 = vcmask 64512   ;;  %v3533_v46 = vld [vmem:[%s4910_s1 + $0x10] sm:$0xff]   ;;  %v3165_v42 = vld [vmem:[%s4912_s3 + $0x5] ss:$0 sm:$0xff] }
 0x37b   :  { %v664_v58 = vsel %vm156_vm8, %v659_v33, %v663_v43  ;;  %v787_v48 = vsel %vm4927_vm7, %v783_v51, %v786_v53  ;;  %v678_v63 = vsel %vm189_vm5, %v676_v56, %v677_v59  ;;  %vm4929_vm7 = vmmov %vm4928_vm9  ;;  %v3574_v43 = vld [vmem:[%s4909_s0] sm:$0xff]   ;;  %3410 = vmatprep.subr.bf16.mxu1 %v3533_v46 }
 0x37c   :  { %797 = vrot.lane.b32.xlu1 %v794_v40, %s3606_s21  ;;  %v668_v62 = vmax.bf16 %v664_v58, %v638_v39  ;;  %v652_v0 = vsel %vm156_vm8, %v647_v60, %v651_v30  ;;  %v675_v3 = vsel %vm189_vm5, %v673_v61, %v674_v1  ;;  %3411 = vmatpush3.bf16.msra.mxu1 %v3533_v46 }
 0x37d   :  { %795 = vrot.lane.b32.xlu0 %v787_v48, %s3606_s21  ;;  %v667_v2 = vmax.bf16 %v652_v0, %v637_v49 }
 0x37e   :  { %v682_v44 = vmax.bf16 %v678_v63, %v668_v62 }
 0x37f   :  { %v681_v16 = vmax.bf16 %v675_v3, %v667_v2 }
 0x380   :  { %803 = vrot.lane.b32.xlu1 %v682_v44, %s3607_s22 }
 0x381   :  { %801 = vrot.lane.b32.xlu0 %v681_v16, %s3607_s22 }
 0x3d6   :  { %v720_v4 = vpop.permute.xlu1 %719 }
 0x3d7   :  { %v718_v5 = vpop.permute.xlu0 %717 }
 0x3da   :  { %v752_v6 = vpop.permute.xlu1 %751 }
 0x3db   :  { %v750_v8 = vpop.permute.xlu0 %749 }
 0x3de   :  { %v780_v9 = vpop.permute.xlu1 %779 }
 0x3df   :  { %v778_v32 = vpop.permute.xlu0 %777 }
 0x3e2   :  { %v706_v11 = vpop.permute.xlu1 %705 }
 0x3e3   :  { %v704_v12 = vpop.permute.xlu0 %703  ;;  %v808_v17 = vsel %vm4929_vm7, %v3856_v7, %v706_v11 }
 0x3e4   :  { %v806_v15 = vsel %vm4928_vm9, %v3863_v10, %v704_v12  ;;  %v812_v24 = vsel %vm332_vm14, %v808_v17, %v720_v4  ;;  %vm4930_vm9 = vcmask 31744  }
 0x3e5   :  { %v810_v20 = vsel %vm332_vm14, %v806_v15, %v718_v5  ;;  %vm4931_vm7 = vmmov %vm4930_vm9 }
 0x3e6   :  { %v742_v13 = vpop.permute.xlu1 %741 }
 0x3e7   :  { %v740_v14 = vpop.permute.xlu0 %739  ;;  %v816_v27 = vsel %vm337_vm15, %v812_v24, %v742_v13 }
 0x3e8   :  { %v814_v26 = vsel %vm337_vm15, %v810_v20, %v740_v14  ;;  %v820_v35 = vsel %vm342_vm2, %v816_v27, %v752_v6 }
 0x3e9   :  { %v818_v29 = vsel %vm342_vm2, %v814_v26, %v750_v8 }
 0x3ea   :  { %v770_v18 = vpop.permute.xlu1 %769 }
 0x3eb   :  { %v768_v21 = vpop.permute.xlu0 %767  ;;  %v824_v7 = vsel %vm347_vm3, %v820_v35, %v770_v18  ;;  %v3173_v35 = vld [vmem:[%s4912_s3 + $0x6] ss:$0 sm:$0xff] }
 0x3ec   :  { %v822_v10 = vsel %vm347_vm3, %v818_v29, %v768_v21  ;;  %v828_v37 = vsel %vm352_vm1, %v824_v7, %v780_v9 }
 0x3ed   :  { %v826_v25 = vsel %vm352_vm1, %v822_v10, %v778_v32 }
 0x3ee   :  { %v798_v28 = vpop.permute.xlu1 %797 }
 0x3ef   :  { %v796_v34 = vpop.permute.xlu0 %795  ;;  %v832_v39 = vsel %vm357_vm13, %v828_v37, %v798_v28  ;;  %v3174_v37 = vld [vmem:[%s4912_s3 + $0x7] ss:$0 sm:$0xff] }
 0x3f0   :  { %v830_v38 = vsel %vm357_vm13, %v826_v25, %v796_v34 }
 0x3f2   :  { %v804_v36 = vpop.permute.xlu1 %803 }
 0x3f3   :  { %v802_v23 = vpop.permute.xlu0 %801  ;;  %v836_v41 = vsel %vm362_vm11, %v832_v39, %v804_v36 }
 0x3f4   :  { %v834_v19 = vsel %vm362_vm11, %v830_v38, %v802_v23 }
 0x3f5   :  { %3406 = vmatprep.mubr.msk.bf16.mxu0 %vm398_vm10, %v834_v19 }
 0x3f6   :  { %3407 = vmatmul.mubr.msk.bf16.vlgmr.msra.gmra.mrb[4].mxu0 %vm398_vm10, %v836_v41 }
 0x3f7   :  { %3432 = vmatprep.mubr.msk.bf16.mxu0 %vm4930_vm9, %v3574_v43  ;;  %vm4932_vm9 = vcmask 1044480  }
 0x4c9   :  { %v3408_v49 = vpop.f32.mrb[4].mxu0 }
 0x4ca   :  { %v909_v47 = vpop.f32.mrb[5].mxu0  ;;  %v918_v45 = vadd.f32 %v3408_v49, %v3165_v42 }
 0x4cb   :  { %v910_v50 = vadd.f32 %v3165_v42, %v909_v47  ;;  %v3409_v52 = vpop.f32.mrb[6].mxu0 }
 0x4cc   :  { %v912_v31 = vpop.f32.mrb[7].mxu0  ;;  %v921_v53 = vadd.f32 %v3409_v52, %v3165_v42  ;;  %v939_v33 = vmul.f32 %v918_v45, %v918_v45  ;;  %v927_v40 = vsel %vm332_vm14, %v918_v45, 0.0 }
 0x4cd   :  { %v937_v51 = vmul.f32 %v910_v50, %v910_v50  ;;  %v913_v54 = vadd.f32 %v3165_v42, %v912_v31  ;;  %v924_v56 = vsel %vm332_vm14, %v910_v50, 0.0 }
 0x4ce   :  { %v940_v59 = vmul.f32 %v921_v53, %v921_v53  ;;  %v944_v62 = vsel %vm332_vm14, %v939_v33, 0.0  ;;  %v929_v63 = vsel %vm332_vm14, %v921_v53, 0.0 }
 0x4cf   :  { %v925_v55 = vsel %vm332_vm14, %v913_v54, 0.0  ;;  %v938_v57 = vmul.f32 %v913_v54, %v913_v54  ;;  %v941_v58 = vsel %vm332_vm14, %v937_v51, 0.0  ;;  %v1456_v51 = vld [vmem:[%s4913_s4] sm:$0x3] }
 0x4d0   :  { %v926_v30 = vadd.f32 %v925_v55, %v924_v56  ;;  %v946_v44 = vsel %vm332_vm14, %v940_v59, 0.0  ;;  %3506 = vmatprep.subr.msk.bf16.mxu0 %vm65_vm0, %v1456_v51  ;;  %v3190_v56 = vld [vmem:[%s4912_s3 + $0x8] ss:$0 sm:$0xff] }
 0x4d1   :  { %v942_v60 = vsel %vm332_vm14, %v938_v57, 0.0 }
 0x4d2   :  { %v928_v61 = vadd.f32 %v927_v40, %v926_v30  ;;  %v943_v48 = vadd.f32 %v942_v60, %v941_v58 }
 0x4d4   :  { %v930_v0 = vadd.f32 %v929_v63, %v928_v61  ;;  %v945_v1 = vadd.f32 %v944_v62, %v943_v48 }
 0x4d6   :  { %v931_v2 = vrot.slane %v930_v0, 4  ;;  %v947_v3 = vadd.f32 %v946_v44, %v945_v1 }
 0x4d8   :  { %v932_v16 = vadd.f32 %v931_v2, %v930_v0  ;;  %v948_v4 = vrot.slane %v947_v3, 4 }
 0x4da   :  { %v933_v5 = vrot.slane %v932_v16, 2  ;;  %v949_v6 = vadd.f32 %v948_v4, %v947_v3  ;;  %v3534_v3 = vld [vmem:[%s4911_s2 + $0x48] sm:$0xff]  }
 0x4db   :  { %3416 = vmatprep.subr.bf16.mxu1 %v3534_v3 }
 0x4dc   :  { %v934_v8 = vadd.f32 %v933_v5, %v932_v16  ;;  %v950_v9 = vrot.slane %v949_v6, 2 }
 0x4de   :  { %v935_v32 = vrot.slane %v934_v8, 1  ;;  %v951_v11 = vadd.f32 %v950_v9, %v949_v6 }
 0x4e0   :  { %v936_v12 = vadd.f32 %v935_v32, %v934_v8  ;;  %v952_v13 = vrot.slane %v951_v11, 1 }
 0x4e2   :  { %v953_v14 = vadd.f32 %v952_v13, %v951_v11  ;;  %v954_v15 = vmul.f32 0.03125, %v936_v12 }
 0x4e4   :  { %v955_v17 = vmul.f32 0.03125, %v953_v14  ;;  %v956_v18 = vmul.f32 %v954_v15, %v954_v15  ;;  %v960_v20 = vsub.f32 %v913_v54, %v954_v15  ;;  %v959_v21 = vsub.f32 %v910_v50, %v954_v15  ;;  %v3575_v54 = vld [vmem:[%s4909_s0 + $0x8] sm:$0xff]  }
 0x4e5   :  { %v961_v24 = vsub.f32 %v918_v45, %v954_v15  ;;  %v962_v26 = vsub.f32 %v921_v53, %v954_v15  ;;  %v1460_v53 = vsel %vm65_vm0, %v1456_v51, 0 }
 0x4e6   :  { %v957_v27 = vsub.f32 %v955_v17, %v956_v18  ;;  %3431 = vmatpush3.bf16.msra.mxu0 %v1460_v53 }
 0x4e8   :  { %v958_v28 = vmax.f32 %v957_v27, 0.0 }
 0x4e9   :  { %3433 = vmatmul.mubr.msk.bf16.vlgmr.msra.gmra.mrb[8].mxu0 %vm4931_vm7, %v3575_v54  ;;  %vm4933_vm7 = vmmov %vm4932_vm9 }
 0x4ea   :  { %v963_v29 = vadd.f32 1e-05, %v958_v28 }
 0x4ec   :  { %3560 = vrsqrt.f32 %v963_v29 }
 0x4f6   :  { %v3561_v34 = vpop.eup %3560 }
 0x4f7   :  { %v966_v10 = vmul.f32 %v3561_v34, %v960_v20  ;;  %v965_v7 = vmul.f32 %v3561_v34, %v959_v21  ;;  %v967_v25 = vmul.f32 %v3561_v34, %v961_v24  ;;  %v968_v36 = vmul.f32 %v3561_v34, %v962_v26  ;;  %v3535_v24 = vld [vmem:[%s4911_s2 + $0x50] sm:$0xff]  }
 0x4f9   :  { %v974_v38 = vmul.f32 %v3173_v35, %v966_v10  ;;  %v973_v23 = vmul.f32 %v3173_v35, %v965_v7  ;;  %v975_v39 = vmul.f32 %v3173_v35, %v967_v25  ;;  %v976_v19 = vmul.f32 %v3173_v35, %v968_v36 }
 0x4fb   :  { %v981_v41 = vadd.f32 %v3174_v37, %v973_v23  ;;  %v982_v43 = vadd.f32 %v3174_v37, %v974_v38  ;;  %v983_v46 = vadd.f32 %v3174_v37, %v975_v39  ;;  %v984_v42 = vadd.f32 %v3174_v37, %v976_v19 }
 0x4fd   :  { %v985_v49 = vmax.f32 %v981_v41, 0.0  ;;  %v986_v47 = vmax.f32 %v982_v43, 0.0  ;;  %v987_v45 = vmax.f32 %v983_v46, 0.0  ;;  %v988_v50 = vmax.f32 %v984_v42, 0.0  ;;  %v3536_v43 = vld [vmem:[%s4911_s2 + $0x58] sm:$0xff]  }
 0x4ff   :  { %v989_v52 = vpack.c.bf16 %v986_v47, %v985_v49  ;;  %v990_v31 = vpack.c.bf16 %v988_v50, %v987_v45 }
 0x501   :  { %3412 = vmatprep.mubr.msk.bf16.mxu1 %vm332_vm14, %v989_v52 }
 0x502   :  { %3413 = vmatmul.mubr.msk.bf16.vlgmr.msra.gmra.mrb[8].mxu1 %vm332_vm14, %v990_v31 }
 0x503   :  { %3417 = vmatpush3.bf16.msra.mxu1 %v3534_v3 }
 0x504   :  { %3418 = vmatprep.subr.bf16.mxu1 %v3535_v24 }
 0x507   :  { %3419 = vmatpush3.bf16.msra.mxu1 %v3535_v24 }
 0x508   :  { %3420 = vmatprep.subr.bf16.mxu1 %v3536_v43 }
 0x50b   :  { %3421 = vmatpush3.bf16.msra.mxu1 %v3536_v43 }
 0x5d5   :  { %v3414_v33 = vpop.f32.mrb[8].mxu1 }
 0x5d6   :  { %v1059_v55 = vpop.f32.mrb[9].mxu1  ;;  %v1068_v30 = vadd.f32 %v3414_v33, %v3190_v56 }
 0x5d7   :  { %v3415_v57 = vpop.f32.mrb[10].mxu1  ;;  %v1060_v59 = vadd.f32 %v3190_v56, %v1059_v55 }
 0x5d8   :  { %v1071_v40 = vadd.f32 %v3415_v57, %v3190_v56  ;;  %v1062_v58 = vpop.f32.mrb[11].mxu1 }
 0x5d9   :  { %v1063_v60 = vadd.f32 %v3190_v56, %v1062_v58 }
 0x5da   :  { %v1075_v61 = vpack.c.bf16 %v1071_v40, %v1068_v30  ;;  %v3537_v40 = vld [vmem:[%s4911_s2 + $0x60] sm:$0xff]  }
 0x5db   :  { %v1074_v48 = vpack.c.bf16 %v1063_v60, %v1060_v59  ;;  %3422 = vmatprep.subr.bf16.mxu1 %v3537_v40 }
 0x5dc   :  { %v1079_v62 = vrot.slane %v1075_v61, 6  ;;  %v1094_v63 = vshrl.u32 %v1075_v61, 16  ;;  %v1097_v12 = vshll.u32 %v1075_v61, 16  ;;  %3423 = vmatpush3.bf16.msra.mxu1 %v3537_v40 }
 0x5dd   :  { %v1078_v0 = vrot.slane %v1074_v48, 6  ;;  %v1087_v5 = vshrl.u32 %v1074_v48, 16  ;;  %v1090_v28 = vshll.u32 %v1074_v48, 16 }
 0x5de   :  { %v4048_v1 = vsel %vm65_vm0, 0, %v1079_v62  ;;  %v1085_v44 = vsel %vm65_vm0, %v1079_v62, 0  ;;  %v1096_v2 = vrot.slane %v1094_v63, 7 }
 0x5df   :  { %v4055_v16 = vsel %vm65_vm0, 0, %v1078_v0  ;;  %v1084_v4 = vsel %vm65_vm0, %v1078_v0, 0  ;;  %v1181_v6 = vrot.slane %v4048_v1, 1  ;;  %v1182_v8 = vrot.slane %v1085_v44, 1 }
 0x5e0   :  { %v1178_v9 = vrot.slane %v4055_v16, 1  ;;  %v4062_v32 = vsel %vm3665_vm4, %v1096_v2, 4048220490  ;;  %v1179_v11 = vrot.slane %v1084_v4, 1  ;;  %v1213_v14 = vrot.slane %v4048_v1, 2 }
 0x5e1   :  { %v1183_v13 = vsel %vm189_vm5, %v1181_v6, %v1182_v8  ;;  %v1214_v15 = vrot.slane %v1085_v44, 2  ;;  %v4066_v17 = vrot.slane %v1087_v5, 7  ;;  %v1210_v20 = vrot.slane %v4055_v16, 2 }
 0x5e2   :  { %1186 = vrot.lane.b32.xlu1 %v1183_v13, %s3600_s7  ;;  %v1180_v18 = vsel %vm189_vm5, %v1178_v9, %v1179_v11  ;;  %v1211_v21 = vrot.slane %v1084_v4, 2  ;;  %v4074_v26 = vor.u32 %v1097_v12, %v1096_v2  ;;  %v1128_v27 = vshll.u32 %v4062_v32, 16  ;;  %v3538_v11 = vld [vmem:[%s4911_s2 + $0x68] ss:$0 sps:$4 sm:$0xff]  }
 0x5e3   :  { %1184 = vrot.lane.b32.xlu0 %v1180_v18, %s3600_s7  ;;  %v1241_v29 = vrot.slane %v4048_v1, 3  ;;  %v1242_v34 = vrot.slane %v1085_v44, 3  ;;  %v1238_v35 = vrot.slane %v4055_v16, 3  ;;  %v1239_v10 = vrot.slane %v1084_v4, 3  ;;  %3505 = vmatprep.subr.msk.bf16.mxu1 %vm403_vm12, %v3538_v11 }
 0x5e4   :  { %v4081_v7 = vshrl.u32 %v4048_v1, 16  ;;  %v1215_v25 = vsel %vm261_vm6, %v1213_v14, %v1214_v15  ;;  %v4085_v36 = vshll.u32 %v4048_v1, 16  ;;  %v4087_v37 = vshll.u32 %v1085_v44, 16 }
 0x5e5   :  { %v4090_v38 = vshrl.u32 %v4055_v16, 16  ;;  %v4093_v23 = vor.u32 %v1090_v28, %v4066_v17  ;;  %v1212_v39 = vsel %vm261_vm6, %v1210_v20, %v1211_v21  ;;  %v4098_v19 = vshll.u32 %v4055_v16, 16 }
 0x5e6   :  { %1218 = vrot.lane.b32.xlu1 %v1215_v25, %s3601_s10  ;;  %v4100_v41 = vshll.u32 %v1084_v4, 16  ;;  %v1164_v46 = vrot.slane %v4085_v36, 1  ;;  %v1197_v42 = vrot.slane %v4081_v7, 1  ;;  %v1198_v49 = vrot.slane %v4085_v36, 2 }
 0x5e7   :  { %1216 = vrot.lane.b32.xlu0 %v1212_v39, %s3601_s10  ;;  %v4109_v47 = vshrl.u32 %v1085_v44, 16  ;;  %v1243_v45 = vsel %vm4932_vm9, %v1241_v29, %v1242_v34  ;;  %v1240_v50 = vsel %vm4933_vm7, %v1238_v35, %v1239_v10  ;;  %v1154_v52 = vrot.slane %v4098_v19, 1 }
 0x5e8   :  { %v1203_v31 = vrot.slane %v4087_v37, 2  ;;  %v1165_v51 = vor.u32 %v1164_v46, %v4081_v7  ;;  %v1188_v54 = vrot.slane %v4090_v38, 1  ;;  %v1189_v33 = vrot.slane %v4098_v19, 2 }
 0x5e9   :  { %v1202_v53 = vrot.slane %v4109_v47, 1  ;;  %v1168_v56 = vrot.slane %v4087_v37, 1  ;;  %v1155_v55 = vor.u32 %v1154_v52, %v4090_v38  ;;  %v1191_v57 = vshrl.u32 %v1084_v4, 16 }
 0x5ea   :  { %1246 = vrot.lane.b32.xlu1 %v1243_v45, %s3602_s13  ;;  %v1194_v30 = vrot.slane %v4100_v41, 2  ;;  %v1199_v58 = vor.u32 %v1198_v49, %v1197_v42  ;;  %v1227_v60 = vrot.slane %v4081_v7, 2  ;;  %v1228_v61 = vrot.slane %v4085_v36, 3 }
 0x5eb   :  { %1244 = vrot.lane.b32.xlu0 %v1240_v50, %s3602_s13  ;;  %v1204_v59 = vor.u32 %v1203_v31, %v1202_v53  ;;  %v1158_v48 = vrot.slane %v4100_v41, 1  ;;  %v1193_v62 = vrot.slane %v1191_v57, 1  ;;  %v1230_v63 = vrot.slane %v4109_v47, 2 }
 0x5ec   :  { %v1231_v0 = vrot.slane %v4087_v37, 3  ;;  %v1169_v44 = vsel %vm156_vm8, %v1165_v51, %v1168_v56  ;;  %v1190_v2 = vor.u32 %v1189_v33, %v1188_v54  ;;  %v1220_v3 = vrot.slane %v4090_v38, 2 }
 0x5ed   :  { %v1221_v4 = vrot.slane %v4098_v19, 3  ;;  %v1159_v5 = vsel %vm156_vm8, %v1155_v55, %v1158_v48  ;;  %v1195_v6 = vor.u32 %v1194_v30, %v1193_v62  ;;  %v1223_v8 = vrot.slane %v1191_v57, 2 }
 0x5ee   :  { %1172 = vrot.lane.b32.xlu1 %v1169_v44, %s3603_s16  ;;  %v1224_v9 = vrot.slane %v4100_v41, 3  ;;  %v1106_v12 = vsel %vm3665_vm4, %v4066_v17, 4048220490  ;;  %vm4934_vm9 = vsmask.f32 6400  ;;  %v1229_v14 = vor.u32 %v1228_v61, %v1227_v60  ;;  %v4181_v44 = vpop.f32.mrb[8].mxu0 }
 0x5ef   :  { %1170 = vrot.lane.b32.xlu0 %v1159_v5, %s3603_s16  ;;  %v1205_v13 = vsel %vm4934_vm9, %v1199_v58, %v1204_v59  ;;  %v1232_v15 = vor.u32 %v1231_v0, %v1230_v63  ;;  %v1255_v18 = vrot.slane %v4081_v7, 3  ;;  %v1256_v20 = vrot.slane %v4085_v36, 4  ;;  %vm4935_vm7 = vmmov %vm4934_vm9 }
 0x5f0   :  { %v1258_v21 = vrot.slane %v4109_v47, 3  ;;  %v1259_v24 = vrot.slane %v4087_v37, 4  ;;  %v1196_v28 = vsel %vm4935_vm7, %v1190_v2, %v1195_v6  ;;  %v1222_v29 = vor.u32 %v1221_v4, %v1220_v3  ;;  %v4183_v3 = vpop.f32.mrb[9].mxu0 }
 0x5f1   :  { %v1225_v17 = vor.u32 %v1224_v9, %v1223_v8  ;;  %v1248_v34 = vrot.slane %v4090_v38, 3  ;;  %v1249_v35 = vrot.slane %v4098_v19, 4  ;;  %v1251_v10 = vrot.slane %v1191_v57, 3  ;;  %v4191_v8 = vpop.f32.mrb[10].mxu0 }
 0x5f2   :  { %1208 = vrot.lane.b32.xlu1 %v1205_v13, %s3604_s17  ;;  %v1252_v7 = vrot.slane %v4100_v41, 4  ;;  %v1105_v25 = vsel %vm3665_vm4, 4048220490, %v4074_v26  ;;  %v1116_v36 = vshll.u32 %v1106_v12, 16  ;;  %v1130_v39 = vrot.slane %v1128_v27, 1 }
 0x5f3   :  { %1206 = vrot.lane.b32.xlu0 %v1196_v28, %s3604_s17  ;;  %v1123_v37 = vshll.u32 %v1105_v25, 16  ;;  %v1257_v43 = vor.u32 %v1256_v20, %v1255_v18  ;;  %v1260_v38 = vor.u32 %v1259_v24, %v1258_v21  ;;  %v1104_v19 = vsel %vm3665_vm4, 4048220490, %v4093_v23 }
 0x5f4   :  { %vm4936_vm9 = vsmask.f32 5376  ;;  %v1121_v41 = vshrl.u32 %v1105_v25, 16  ;;  %v1111_v49 = vshll.u32 %v1104_v19, 16  ;;  %v1250_v47 = vor.u32 %v1249_v35, %v1248_v34 }
 0x5f5   :  { %v1233_v46 = vsel %vm4936_vm9, %v1229_v14, %v1232_v15  ;;  %v1125_v42 = vrot.slane %v1123_v37, 1  ;;  %vm4937_vm7 = vmmov %vm4936_vm9  ;;  %v1253_v45 = vor.u32 %v1252_v7, %v1251_v10  ;;  %v1340_v50 = vsel %vm403_vm12, %v3538_v11, 0  ;;  %v4195_v11 = vpop.f32.mrb[11].mxu0 }
 0x5f6   :  { %1236 = vrot.lane.b32.xlu1 %v1233_v46, %s3605_s18  ;;  %v1226_v26 = vsel %vm4937_vm7, %v1222_v29, %v1225_v17  ;;  %v1143_v52 = vrot.slane %v1105_v25, 1  ;;  %v1109_v31 = vshrl.u32 %v1104_v19, 16  ;;  %v1113_v51 = vrot.slane %v1111_v49, 1  ;;  %3425 = vmatpush3.bf16.msra.mxu1 %v1340_v50 }
 0x5f7   :  { %1234 = vrot.lane.b32.xlu0 %v1226_v26, %s3605_s18  ;;  %v1126_v27 = vor.u32 %v1125_v42, %v1121_v41  ;;  %v1118_v23 = vrot.slane %v1116_v36, 1  ;;  %vm4938_vm9 = vsmask.f32 4352  ;;  %v1144_v33 = vrot.slane %v4062_v32, 1 }
 0x5f8   :  { %v1261_v53 = vsel %vm4938_vm9, %v1257_v43, %v1260_v38  ;;  %v1114_v56 = vor.u32 %v1113_v51, %v1109_v31  ;;  %v1140_v55 = vrot.slane %v1104_v19, 1  ;;  %vm4939_vm7 = vmmov %vm4938_vm9  ;;  %v1141_v59 = vrot.slane %v1106_v12, 1 }
 0x5f9   :  { %v1131_v54 = vsel %vm156_vm8, %v1126_v27, %v1130_v39  ;;  %v1254_v57 = vsel %vm4939_vm7, %v1250_v47, %v1253_v45  ;;  %v1145_v40 = vsel %vm189_vm5, %v1143_v52, %v1144_v33  ;;  %v1526_v4 = vmul.f32 %v4181_v44, %v4181_v44 }
 0x5fa   :  { %1264 = vrot.lane.b32.xlu1 %v1261_v53, %s3606_s21  ;;  %v1135_v30 = vmax.bf16 %v1131_v54, %v1105_v25  ;;  %v1119_v58 = vsel %vm156_vm8, %v1114_v56, %v1118_v23  ;;  %v1142_v48 = vsel %vm189_vm5, %v1140_v55, %v1141_v59  ;;  %v1511_v5 = vsel %vm332_vm14, %v4183_v3, 0.0 }
 0x5fb   :  { %1262 = vrot.lane.b32.xlu0 %v1254_v57, %s3606_s21  ;;  %v1134_v61 = vmax.bf16 %v1119_v58, %v1104_v19  ;;  %v1524_v6 = vmul.f32 %v4183_v3, %v4183_v3  ;;  %v1514_v9 = vsel %vm332_vm14, %v4181_v44, 0.0  ;;  %v1527_v14 = vmul.f32 %v4191_v8, %v4191_v8 }
 0x5fc   :  { %v1149_v60 = vmax.bf16 %v1145_v40, %v1135_v30  ;;  %v1512_v15 = vsel %vm332_vm14, %v4195_v11, 0.0  ;;  %v1525_v18 = vmul.f32 %v4195_v11, %v4195_v11  ;;  %v1531_v24 = vsel %vm332_vm14, %v1526_v4, 0.0 }
 0x5fd   :  { %v1148_v32 = vmax.bf16 %v1142_v48, %v1134_v61  ;;  %v1528_v13 = vsel %vm332_vm14, %v1524_v6, 0.0  ;;  %v1513_v21 = vadd.f32 %v1512_v15, %v1511_v5  ;;  %v1516_v28 = vsel %vm332_vm14, %v4191_v8, 0.0 }
 0x5fe   :  { %1270 = vrot.lane.b32.xlu1 %v1149_v60, %s3607_s22  ;;  %v1529_v29 = vsel %vm332_vm14, %v1525_v18, 0.0  ;;  %v1533_v10 = vsel %vm332_vm14, %v1527_v14, 0.0  ;;  %vm4940_vm9 = vcmask 64512  }
 0x5ff   :  { %1268 = vrot.lane.b32.xlu0 %v1148_v32, %s3607_s22  ;;  %v1515_v17 = vadd.f32 %v1514_v9, %v1513_v21  ;;  %v1530_v34 = vadd.f32 %v1529_v29, %v1528_v13  ;;  %vm4941_vm7 = vmmov %vm4940_vm9 }
 0x601   :  { %v1517_v25 = vadd.f32 %v1516_v28, %v1515_v17  ;;  %v1532_v36 = vadd.f32 %v1531_v24, %v1530_v34  ;;  %v3539_v24 = vld [vmem:[%s4910_s1 + $0x18] sm:$0xff]   ;;  %v3194_v28 = vld [vmem:[%s4912_s3 + $0x9] ss:$0 sm:$0xff] }
 0x602   :  { %3436 = vmatprep.subr.bf16.mxu0 %v3539_v24 }
 0x603   :  { %v1518_v37 = vrot.slane %v1517_v25, 4  ;;  %v1534_v39 = vadd.f32 %v1533_v10, %v1532_v36  ;;  %3437 = vmatpush3.bf16.msra.mxu0 %v3539_v24 }
 0x605   :  { %v1519_v19 = vadd.f32 %v1518_v37, %v1517_v25  ;;  %v1535_v46 = vrot.slane %v1534_v39, 4 }
 0x607   :  { %v1520_v49 = vrot.slane %v1519_v19, 2  ;;  %v1536_v26 = vadd.f32 %v1535_v46, %v1534_v39 }
 0x609   :  { %v1521_v27 = vadd.f32 %v1520_v49, %v1519_v19  ;;  %v1537_v52 = vrot.slane %v1536_v26, 2 }
 0x60b   :  { %v1522_v53 = vrot.slane %v1521_v27, 1  ;;  %v1538_v54 = vadd.f32 %v1537_v52, %v1536_v26 }
 0x60d   :  { %v1523_v56 = vadd.f32 %v1522_v53, %v1521_v27  ;;  %v1539_v55 = vrot.slane %v1538_v54, 1 }
 0x60f   :  { %v1540_v58 = vadd.f32 %v1539_v55, %v1538_v54  ;;  %v1541_v59 = vmul.f32 0.03125, %v1523_v56 }
 0x611   :  { %v1542_v48 = vmul.f32 0.03125, %v1540_v58  ;;  %v1543_v32 = vmul.f32 %v1541_v59, %v1541_v59  ;;  %v1549_v5 = vsub.f32 %v4191_v8, %v1541_v59 }
 0x613   :  { %v1544_v13 = vsub.f32 %v1542_v48, %v1543_v32 }
 0x654   :  { %v1187_v62 = vpop.permute.xlu1 %1186 }
 0x655   :  { %v1185_v63 = vpop.permute.xlu0 %1184 }
 0x658   :  { %v1219_v0 = vpop.permute.xlu1 %1218 }
 0x659   :  { %v1217_v2 = vpop.permute.xlu0 %1216 }
 0x65c   :  { %v1247_v12 = vpop.permute.xlu1 %1246 }
 0x65d   :  { %v1245_v20 = vpop.permute.xlu0 %1244 }
 0x660   :  { %v1173_v35 = vpop.permute.xlu1 %1172 }
 0x661   :  { %v1171_v7 = vpop.permute.xlu0 %1170  ;;  %v1275_v42 = vsel %vm4941_vm7, %v4048_v1, %v1173_v35 }
 0x662   :  { %v1273_v41 = vsel %vm4940_vm9, %v4055_v16, %v1171_v7  ;;  %v1279_v31 = vsel %vm332_vm14, %v1275_v42, %v1187_v62  ;;  %v1547_v62 = vsub.f32 %v4195_v11, %v1541_v59  ;;  %v1545_v11 = vmax.f32 %v1544_v13, 0.0 }
 0x663   :  { %v1277_v45 = vsel %vm332_vm14, %v1273_v41, %v1185_v63  ;;  %vm4942_vm9 = vcmask 1044480  }
 0x664   :  { %v1209_v43 = vpop.permute.xlu1 %1208  ;;  %vm4943_vm7 = vmmov %vm4942_vm9 }
 0x665   :  { %v1207_v38 = vpop.permute.xlu0 %1206  ;;  %v1283_v23 = vsel %vm337_vm15, %v1279_v31, %v1209_v43 }
 0x666   :  { %v1281_v51 = vsel %vm337_vm15, %v1277_v45, %v1207_v38  ;;  %v1287_v57 = vsel %vm342_vm2, %v1283_v23, %v1219_v0  ;;  %v1548_v0 = vsub.f32 %v4181_v44, %v1541_v59 }
 0x667   :  { %v1285_v33 = vsel %vm342_vm2, %v1281_v51, %v1217_v2 }
 0x668   :  { %v1237_v47 = vpop.permute.xlu1 %1236 }
 0x669   :  { %v1235_v50 = vpop.permute.xlu0 %1234  ;;  %v1291_v40 = vsel %vm347_vm3, %v1287_v57, %v1237_v47 }
 0x66a   :  { %v1289_v30 = vsel %vm347_vm3, %v1285_v33, %v1235_v50  ;;  %v1295_v63 = vsel %vm352_vm1, %v1291_v40, %v1247_v12  ;;  %v1550_v12 = vadd.f32 1e-05, %v1545_v11 }
 0x66b   :  { %v1293_v60 = vsel %vm352_vm1, %v1289_v30, %v1245_v20  ;;  %v1546_v20 = vsub.f32 %v4183_v3, %v1541_v59 }
 0x66c   :  { %v1265_v16 = vpop.permute.xlu1 %1264  ;;  %3562 = vrsqrt.f32 %v1550_v12 }
 0x66d   :  { %v1263_v1 = vpop.permute.xlu0 %1262  ;;  %v1299_v6 = vsel %vm357_vm13, %v1295_v63, %v1265_v16 }
 0x66e   :  { %v1297_v2 = vsel %vm357_vm13, %v1293_v60, %v1263_v1 }
 0x670   :  { %v1271_v61 = vpop.permute.xlu1 %1270 }
 0x671   :  { %v1269_v4 = vpop.permute.xlu0 %1268  ;;  %v1303_v14 = vsel %vm362_vm11, %v1299_v6, %v1271_v61 }
 0x672   :  { %v1301_v9 = vsel %vm362_vm11, %v1297_v2, %v1269_v4 }
 0x673   :  { %3426 = vmatprep.mubr.msk.bf16.mxu1 %vm398_vm10, %v1301_v9  ;;  %v3202_v9 = vld [vmem:[%s4912_s3 + $0xa] ss:$0 sm:$0xff] }
 0x674   :  { %3427 = vmatmul.mubr.msk.bf16.vlgmr.msra.gmra.mrb[12].mxu1 %vm398_vm10, %v1303_v14 }
 0x676   :  { %v3563_v15 = vpop.eup %3562 }
 0x677   :  { %v4232_v18 = vmul.f32 %v3563_v15, %v1547_v62  ;;  %v4234_v44 = vmul.f32 %v3563_v15, %v1548_v0  ;;  %v4236_v8 = vmul.f32 %v3563_v15, %v1549_v5  ;;  %v4239_v21 = vmul.f32 %v3563_v15, %v1546_v20  ;;  %v3206_v5 = vld [vmem:[%s4914_s5] ss:$0 sm:$0xff] }
 0x679   :  { %v1561_v15 = vmul.f32 %v3206_v5, %v4232_v18  ;;  %v1562_v20 = vmul.f32 %v3206_v5, %v4234_v44  ;;  %v1563_v24 = vmul.f32 %v3206_v5, %v4236_v8 }
 0x747   :  { %v3428_v29 = vpop.f32.mrb[12].mxu1 }
 0x748   :  { %v1376_v17 = vpop.f32.mrb[13].mxu1  ;;  %v1385_v34 = vadd.f32 %v3428_v29, %v3194_v28  ;;  %v1560_v29 = vmul.f32 %v3206_v5, %v4239_v21 }
 0x749   :  { %v1377_v35 = vadd.f32 %v3194_v28, %v1376_v17  ;;  %v3429_v10 = vpop.f32.mrb[14].mxu1  ;;  %v3207_v17 = vld [vmem:[%s4914_s5 + $0x1] ss:$0 sm:$0xff] }
 0x74a   :  { %v1379_v7 = vpop.f32.mrb[15].mxu1  ;;  %v1388_v3 = vadd.f32 %v3429_v10, %v3194_v28  ;;  %v1406_v37 = vmul.f32 %v1385_v34, %v1385_v34  ;;  %v1394_v46 = vsel %vm332_vm14, %v1385_v34, 0.0  ;;  %v1568_v8 = vadd.f32 %v3207_v17, %v1560_v29 }
 0x74b   :  { %v1404_v25 = vmul.f32 %v1377_v35, %v1377_v35  ;;  %v1380_v36 = vadd.f32 %v3194_v28, %v1379_v7  ;;  %v1391_v39 = vsel %vm332_vm14, %v1377_v35, 0.0  ;;  %v3203_v28 = vld [vmem:[%s4912_s3 + $0xb] ss:$0 sm:$0xff] }
 0x74c   :  { %v1407_v42 = vmul.f32 %v1388_v3, %v1388_v3  ;;  %v1411_v45 = vsel %vm332_vm14, %v1406_v37, 0.0  ;;  %v1396_v50 = vsel %vm332_vm14, %v1388_v3, 0.0  ;;  %v1570_v37 = vadd.f32 %v3207_v17, %v1562_v20 }
 0x74d   :  { %v1392_v43 = vsel %vm332_vm14, %v1380_v36, 0.0  ;;  %v1405_v38 = vmul.f32 %v1380_v36, %v1380_v36  ;;  %v1408_v41 = vsel %vm332_vm14, %v1404_v25, 0.0 }
 0x74e   :  { %v1393_v19 = vadd.f32 %v1392_v43, %v1391_v39  ;;  %v1413_v31 = vsel %vm332_vm14, %v1407_v42, 0.0  ;;  %v1571_v39 = vadd.f32 %v3207_v17, %v1563_v24 }
 0x74f   :  { %v1409_v49 = vsel %vm332_vm14, %v1405_v38, 0.0 }
 0x750   :  { %v1395_v26 = vadd.f32 %v1394_v46, %v1393_v19  ;;  %v1410_v47 = vadd.f32 %v1409_v49, %v1408_v41 }
 0x752   :  { %v1397_v27 = vadd.f32 %v1396_v50, %v1395_v26  ;;  %v1412_v52 = vadd.f32 %v1411_v45, %v1410_v47 }
 0x754   :  { %v1398_v51 = vrot.slane %v1397_v27, 4  ;;  %v1414_v23 = vadd.f32 %v1413_v31, %v1412_v52 }
 0x756   :  { %v1399_v53 = vadd.f32 %v1398_v51, %v1397_v27  ;;  %v1415_v54 = vrot.slane %v1414_v23, 4  ;;  %v3223_v51 = vld [vmem:[%s4912_s3 + $0xc] ss:$0 sm:$0xff] }
 0x758   :  { %v1400_v16 = vrot.slane %v1399_v53, 2  ;;  %v1416_v33 = vadd.f32 %v1415_v54, %v1414_v23 }
 0x75a   :  { %v1401_v1 = vadd.f32 %v1400_v16, %v1399_v53  ;;  %v1417_v56 = vrot.slane %v1416_v33, 2 }
 0x75c   :  { %v1402_v55 = vrot.slane %v1401_v1, 1  ;;  %v1418_v57 = vadd.f32 %v1417_v56, %v1416_v33 }
 0x75e   :  { %v1403_v30 = vadd.f32 %v1402_v55, %v1401_v1  ;;  %v1419_v40 = vrot.slane %v1418_v57, 1 }
 0x760   :  { %v1420_v58 = vadd.f32 %v1419_v40, %v1418_v57  ;;  %v1421_v59 = vmul.f32 0.03125, %v1403_v30 }
 0x762   :  { %v1422_v60 = vmul.f32 0.03125, %v1420_v58  ;;  %v1423_v61 = vmul.f32 %v1421_v59, %v1421_v59  ;;  %v1427_v48 = vsub.f32 %v1380_v36, %v1421_v59  ;;  %v1428_v32 = vsub.f32 %v1385_v34, %v1421_v59 }
 0x763   :  { %v1429_v62 = vsub.f32 %v1388_v3, %v1421_v59  ;;  %v1426_v63 = vsub.f32 %v1377_v35, %v1421_v59  ;;  %v1569_v36 = vadd.f32 %v3207_v17, %v1561_v15 }
 0x764   :  { %v1424_v2 = vsub.f32 %v1422_v60, %v1423_v61 }
 0x766   :  { %v1425_v4 = vmax.f32 %v1424_v2, 0.0 }
 0x768   :  { %v1430_v0 = vadd.f32 1e-05, %v1425_v4 }
 0x76a   :  { %3564 = vrsqrt.f32 %v1430_v0 }
 0x774   :  { %v3565_v6 = vpop.eup %3564 }
 0x775   :  { %v1433_v13 = vmul.f32 %v3565_v6, %v1427_v48  ;;  %v1434_v14 = vmul.f32 %v3565_v6, %v1428_v32  ;;  %v1435_v11 = vmul.f32 %v3565_v6, %v1429_v62  ;;  %v1432_v12 = vmul.f32 %v3565_v6, %v1426_v63  ;;  %v3540_v48 = vld [vmem:[%s4911_s2 + $0x6c] sm:$0xff]  }
 0x776   :  { %3442 = vmatprep.subr.bf16.mxu0 %v3540_v48 }
 0x777   :  { %v1441_v34 = vmul.f32 %v3202_v9, %v1433_v13  ;;  %v1442_v35 = vmul.f32 %v3202_v9, %v1434_v14  ;;  %v1443_v10 = vmul.f32 %v3202_v9, %v1435_v11  ;;  %v1440_v7 = vmul.f32 %v3202_v9, %v1432_v12 }
 0x779   :  { %v1449_v25 = vadd.f32 %v3203_v28, %v1441_v34  ;;  %v1448_v18 = vadd.f32 %v3203_v28, %v1440_v7  ;;  %v1450_v3 = vadd.f32 %v3203_v28, %v1442_v35  ;;  %v1451_v44 = vadd.f32 %v3203_v28, %v1443_v10  ;;  %v3541_v28 = vld [vmem:[%s4911_s2 + $0x74] sm:$0xff]  }
 0x77b   :  { %v1453_v43 = vmax.f32 %v1449_v25, 0.0  ;;  %v1452_v38 = vmax.f32 %v1448_v18, 0.0  ;;  %v1454_v19 = vmax.f32 %v1450_v3, 0.0  ;;  %v1455_v21 = vmax.f32 %v1451_v44, 0.0 }
 0x77d   :  { %v1572_v46 = vadd.f32 %v1568_v8, %v1452_v38  ;;  %v1573_v41 = vadd.f32 %v1569_v36, %v1453_v43  ;;  %v1574_v42 = vadd.f32 %v1570_v37, %v1454_v19  ;;  %v1575_v49 = vadd.f32 %v1571_v39, %v1455_v21  ;;  %v3542_v19 = vld [vmem:[%s4911_s2 + $0x7c] sm:$0xff]  }
 0x77f   :  { %v1576_v26 = vmax.f32 %v1572_v46, 0.0  ;;  %v1577_v47 = vmax.f32 %v1573_v41, 0.0  ;;  %v1578_v45 = vmax.f32 %v1574_v42, 0.0  ;;  %v1579_v50 = vmax.f32 %v1575_v49, 0.0 }
 0x781   :  { %v4271_v27 = vpack.c.bf16 %v1577_v47, %v1576_v26  ;;  %v4273_v52 = vpack.c.bf16 %v1579_v50, %v1578_v45 }
 0x783   :  { %3438 = vmatprep.mubr.msk.bf16.mxu0 %vm332_vm14, %v4271_v27 }
 0x784   :  { %3439 = vmatmul.mubr.msk.bf16.vlgmr.msra.gmra.mrb[12].mxu0 %vm332_vm14, %v4273_v52 }
 0x785   :  { %3443 = vmatpush3.bf16.msra.mxu0 %v3540_v48 }
 0x786   :  { %3444 = vmatprep.subr.bf16.mxu0 %v3541_v28 }
 0x789   :  { %3445 = vmatpush3.bf16.msra.mxu0 %v3541_v28 }
 0x78a   :  { %3446 = vmatprep.subr.bf16.mxu0 %v3542_v19 }
 0x78d   :  { %3447 = vmatpush3.bf16.msra.mxu0 %v3542_v19 }
 0x857   :  { %v3440_v31 = vpop.f32.mrb[12].mxu0 }
 0x858   :  { %v1650_v23 = vpop.f32.mrb[13].mxu0  ;;  %v1659_v54 = vadd.f32 %v3440_v31, %v3223_v51 }
 0x859   :  { %v3441_v53 = vpop.f32.mrb[14].mxu0  ;;  %v1651_v1 = vadd.f32 %v3223_v51, %v1650_v23 }
 0x85a   :  { %v1662_v16 = vadd.f32 %v3441_v53, %v3223_v51  ;;  %v1653_v33 = vpop.f32.mrb[15].mxu0 }
 0x85b   :  { %v1654_v56 = vadd.f32 %v3223_v51, %v1653_v33 }
 0x85c   :  { %v1666_v55 = vpack.c.bf16 %v1662_v16, %v1659_v54 }
 0x85d   :  { %v1665_v57 = vpack.c.bf16 %v1654_v56, %v1651_v1  ;;  %v3543_v1 = vld [vmem:[%s4911_s2 + $0x84] sm:$0xff]  }
 0x85e   :  { %v1670_v30 = vrot.slane %v1666_v55, 6  ;;  %v1685_v40 = vshrl.u32 %v1666_v55, 16  ;;  %v1688_v9 = vshll.u32 %v1666_v55, 16  ;;  %3448 = vmatprep.subr.bf16.mxu0 %v3543_v1 }
 0x85f   :  { %v1669_v58 = vrot.slane %v1665_v57, 6  ;;  %v1678_v63 = vshrl.u32 %v1665_v57, 16  ;;  %v1681_v34 = vshll.u32 %v1665_v57, 16  ;;  %3449 = vmatpush3.bf16.msra.mxu0 %v3543_v1 }
 0x860   :  { %v4283_v59 = vsel %vm65_vm0, 0, %v1670_v30  ;;  %v1676_v60 = vsel %vm65_vm0, %v1670_v30, 0  ;;  %v1687_v61 = vrot.slane %v1685_v40, 7 }
 0x861   :  { %v4290_v32 = vsel %vm65_vm0, 0, %v1669_v58  ;;  %v1675_v62 = vsel %vm65_vm0, %v1669_v58, 0  ;;  %v1772_v2 = vrot.slane %v4283_v59, 1  ;;  %v1773_v4 = vrot.slane %v1676_v60, 1 }
 0x862   :  { %v1769_v0 = vrot.slane %v4290_v32, 1  ;;  %v4297_v5 = vsel %vm3665_vm4, %v1687_v61, 4048220490  ;;  %v1770_v6 = vrot.slane %v1675_v62, 1  ;;  %v1804_v14 = vrot.slane %v4283_v59, 2 }
 0x863   :  { %v1774_v13 = vsel %vm189_vm5, %v1772_v2, %v1773_v4  ;;  %v1805_v11 = vrot.slane %v1676_v60, 2  ;;  %v4301_v12 = vrot.slane %v1678_v63, 7  ;;  %v1801_v20 = vrot.slane %v4290_v32, 2 }
 0x864   :  { %1777 = vrot.lane.b32.xlu1 %v1774_v13, %s3600_s7  ;;  %v1771_v15 = vsel %vm189_vm5, %v1769_v0, %v1770_v6  ;;  %v1802_v24 = vrot.slane %v1675_v62, 2  ;;  %v4309_v29 = vor.u32 %v1688_v9, %v1687_v61  ;;  %v1719_v17 = vshll.u32 %v4297_v5, 16  ;;  %v3544_v13 = vld [vmem:[%s4911_s2 + $0x8c] ss:$0 sps:$4 sm:$0xff]  }
 0x865   :  { %1775 = vrot.lane.b32.xlu0 %v1771_v15, %s3600_s7  ;;  %v1832_v35 = vrot.slane %v4283_v59, 3  ;;  %v1833_v10 = vrot.slane %v1676_v60, 3  ;;  %v1829_v7 = vrot.slane %v4290_v32, 3  ;;  %v1830_v25 = vrot.slane %v1675_v62, 3  ;;  %3507 = vmatprep.subr.msk.bf16.mxu0 %vm403_vm12, %v3544_v13 }
 0x866   :  { %v4316_v18 = vshrl.u32 %v4283_v59, 16  ;;  %v1806_v3 = vsel %vm261_vm6, %v1804_v14, %v1805_v11  ;;  %v4320_v44 = vshll.u32 %v4283_v59, 16  ;;  %v4322_v36 = vshll.u32 %v1676_v60, 16 }
 0x867   :  { %v4325_v8 = vshrl.u32 %v4290_v32, 16  ;;  %v4328_v37 = vor.u32 %v1681_v34, %v4301_v12  ;;  %v1803_v39 = vsel %vm261_vm6, %v1801_v20, %v1802_v24  ;;  %v4333_v43 = vshll.u32 %v4290_v32, 16 }
 0x868   :  { %1809 = vrot.lane.b32.xlu1 %v1806_v3, %s3601_s10  ;;  %v4335_v38 = vshll.u32 %v1675_v62, 16  ;;  %v1755_v21 = vrot.slane %v4320_v44, 1  ;;  %v1788_v46 = vrot.slane %v4316_v18, 1  ;;  %v1789_v41 = vrot.slane %v4320_v44, 2 }
 0x869   :  { %1807 = vrot.lane.b32.xlu0 %v1803_v39, %s3601_s10  ;;  %v4344_v42 = vshrl.u32 %v1676_v60, 16  ;;  %v1834_v49 = vsel %vm4942_vm9, %v1832_v35, %v1833_v10  ;;  %v1831_v26 = vsel %vm4943_vm7, %v1829_v7, %v1830_v25  ;;  %v1745_v47 = vrot.slane %v4333_v43, 1 }
 0x86a   :  { %v1794_v45 = vrot.slane %v4322_v36, 2  ;;  %v1756_v50 = vor.u32 %v1755_v21, %v4316_v18  ;;  %v1779_v51 = vrot.slane %v4325_v8, 1  ;;  %v1780_v23 = vrot.slane %v4333_v43, 2 }
 0x86b   :  { %v1793_v31 = vrot.slane %v4344_v42, 1  ;;  %v1759_v53 = vrot.slane %v4322_v36, 1  ;;  %v1746_v54 = vor.u32 %v1745_v47, %v4325_v8  ;;  %v1782_v16 = vshrl.u32 %v1675_v62, 16 }
 0x86c   :  { %1837 = vrot.lane.b32.xlu1 %v1834_v49, %s3602_s13  ;;  %v1785_v33 = vrot.slane %v4335_v38, 2  ;;  %v1790_v56 = vor.u32 %v1789_v41, %v1788_v46  ;;  %v1818_v57 = vrot.slane %v4316_v18, 2  ;;  %v1819_v30 = vrot.slane %v4320_v44, 3 }
 0x86d   :  { %1835 = vrot.lane.b32.xlu0 %v1831_v26, %s3602_s13  ;;  %v1795_v55 = vor.u32 %v1794_v45, %v1793_v31  ;;  %v1749_v40 = vrot.slane %v4335_v38, 1  ;;  %v1784_v58 = vrot.slane %v1782_v16, 1  ;;  %v1821_v60 = vrot.slane %v4344_v42, 2 }
 0x86e   :  { %v1822_v61 = vrot.slane %v4322_v36, 3  ;;  %v1760_v48 = vsel %vm156_vm8, %v1756_v50, %v1759_v53  ;;  %v1781_v62 = vor.u32 %v1780_v23, %v1779_v51  ;;  %v1811_v63 = vrot.slane %v4325_v8, 2 }
 0x86f   :  { %v1812_v2 = vrot.slane %v4333_v43, 3  ;;  %v1750_v4 = vsel %vm156_vm8, %v1746_v54, %v1749_v40  ;;  %v1786_v0 = vor.u32 %v1785_v33, %v1784_v58  ;;  %v1814_v6 = vrot.slane %v1782_v16, 2 }
 0x870   :  { %1763 = vrot.lane.b32.xlu1 %v1760_v48, %s3603_s16  ;;  %v1815_v9 = vrot.slane %v4335_v38, 3  ;;  %v1697_v14 = vsel %vm3665_vm4, %v4301_v12, 4048220490  ;;  %vm4944_vm9 = vsmask.f32 6400  ;;  %v1820_v15 = vor.u32 %v1819_v30, %v1818_v57 }
 0x871   :  { %1761 = vrot.lane.b32.xlu0 %v1750_v4, %s3603_s16  ;;  %v1796_v11 = vsel %vm4944_vm9, %v1790_v56, %v1795_v55  ;;  %v1823_v20 = vor.u32 %v1822_v61, %v1821_v60  ;;  %v1846_v24 = vrot.slane %v4316_v18, 3  ;;  %v1847_v28 = vrot.slane %v4320_v44, 4  ;;  %vm4945_vm7 = vmmov %vm4944_vm9 }
 0x872   :  { %v1849_v34 = vrot.slane %v4344_v42, 3  ;;  %v1850_v35 = vrot.slane %v4322_v36, 4  ;;  %v1787_v10 = vsel %vm4945_vm7, %v1781_v62, %v1786_v0  ;;  %v1813_v7 = vor.u32 %v1812_v2, %v1811_v63 }
 0x873   :  { %v1816_v12 = vor.u32 %v1815_v9, %v1814_v6  ;;  %v1839_v25 = vrot.slane %v4325_v8, 3  ;;  %v1840_v3 = vrot.slane %v4333_v43, 4  ;;  %v1842_v39 = vrot.slane %v1782_v16, 3 }
 0x874   :  { %1799 = vrot.lane.b32.xlu1 %v1796_v11, %s3604_s17  ;;  %v1843_v18 = vrot.slane %v4335_v38, 4  ;;  %v1696_v44 = vsel %vm3665_vm4, 4048220490, %v4309_v29  ;;  %v1707_v36 = vshll.u32 %v1697_v14, 16  ;;  %v1721_v21 = vrot.slane %v1719_v17, 1 }
 0x875   :  { %1797 = vrot.lane.b32.xlu0 %v1787_v10, %s3604_s17  ;;  %v1714_v19 = vshll.u32 %v1696_v44, 16  ;;  %v1848_v46 = vor.u32 %v1847_v28, %v1846_v24  ;;  %v1851_v8 = vor.u32 %v1850_v35, %v1849_v34  ;;  %v1695_v43 = vsel %vm3665_vm4, 4048220490, %v4328_v37 }
 0x876   :  { %vm4946_vm9 = vsmask.f32 5376  ;;  %v1712_v38 = vshrl.u32 %v1696_v44, 16  ;;  %v1702_v49 = vshll.u32 %v1695_v43, 16  ;;  %v1841_v26 = vor.u32 %v1840_v3, %v1839_v25 }
 0x877   :  { %v1824_v41 = vsel %vm4946_vm9, %v1820_v15, %v1823_v20  ;;  %v1716_v42 = vrot.slane %v1714_v19, 1  ;;  %vm4947_vm7 = vmmov %vm4946_vm9  ;;  %v1844_v47 = vor.u32 %v1843_v18, %v1842_v39  ;;  %v1931_v45 = vsel %vm403_vm12, %v3544_v13, 0 }
 0x878   :  { %1827 = vrot.lane.b32.xlu1 %v1824_v41, %s3605_s18  ;;  %v1817_v29 = vsel %vm4947_vm7, %v1813_v7, %v1816_v12  ;;  %v1734_v50 = vrot.slane %v1696_v44, 1  ;;  %v1700_v31 = vshrl.u32 %v1695_v43, 16  ;;  %v1704_v51 = vrot.slane %v1702_v49, 1  ;;  %3451 = vmatpush3.bf16.msra.mxu0 %v1931_v45 }
 0x879   :  { %1825 = vrot.lane.b32.xlu0 %v1817_v29, %s3605_s18  ;;  %v1717_v17 = vor.u32 %v1716_v42, %v1712_v38  ;;  %v1709_v37 = vrot.slane %v1707_v36, 1  ;;  %vm4948_vm9 = vsmask.f32 4352  ;;  %v1735_v54 = vrot.slane %v4297_v5, 1 }
 0x87a   :  { %v1852_v23 = vsel %vm4948_vm9, %v1848_v46, %v1851_v8  ;;  %v1705_v16 = vor.u32 %v1704_v51, %v1700_v31  ;;  %v1731_v33 = vrot.slane %v1695_v43, 1  ;;  %vm4949_vm7 = vmmov %vm4948_vm9  ;;  %v1732_v30 = vrot.slane %v1697_v14, 1  ;;  %v3545_v8 = vld [vmem:[%s4910_s1 + $0x20] sm:$0xff]  }
 0x87b   :  { %v1722_v53 = vsel %vm156_vm8, %v1717_v17, %v1721_v21  ;;  %v1845_v1 = vsel %vm4949_vm7, %v1841_v26, %v1844_v47  ;;  %v1736_v55 = vsel %vm189_vm5, %v1734_v50, %v1735_v54  ;;  %vm4950_vm9 = vcmask 64512   ;;  %3456 = vmatprep.subr.bf16.mxu1 %v3545_v8 }
 0x87c   :  { %1855 = vrot.lane.b32.xlu1 %v1852_v23, %s3606_s21  ;;  %v1726_v56 = vmax.bf16 %v1722_v53, %v1696_v44  ;;  %v1710_v57 = vsel %vm156_vm8, %v1705_v16, %v1709_v37  ;;  %v1733_v60 = vsel %vm189_vm5, %v1731_v33, %v1732_v30  ;;  %vm4951_vm7 = vmmov %vm4950_vm9  ;;  %3457 = vmatpush3.bf16.msra.mxu1 %v3545_v8 }
 0x87d   :  { %1853 = vrot.lane.b32.xlu0 %v1845_v1, %s3606_s21  ;;  %v1725_v58 = vmax.bf16 %v1710_v57, %v1695_v43  ;;  %v3227_v43 = vld [vmem:[%s4912_s3 + $0xd] ss:$0 sm:$0xff] }
 0x87e   :  { %v1740_v40 = vmax.bf16 %v1736_v55, %v1726_v56 }
 0x87f   :  { %v1739_v5 = vmax.bf16 %v1733_v60, %v1725_v58 }
 0x880   :  { %1861 = vrot.lane.b32.xlu1 %v1740_v40, %s3607_s22 }
 0x881   :  { %1859 = vrot.lane.b32.xlu0 %v1739_v5, %s3607_s22 }
 0x8d6   :  { %v1778_v61 = vpop.permute.xlu1 %1777 }
 0x8d7   :  { %v1776_v48 = vpop.permute.xlu0 %1775 }
 0x8da   :  { %v1810_v62 = vpop.permute.xlu1 %1809 }
 0x8db   :  { %v1808_v63 = vpop.permute.xlu0 %1807 }
 0x8de   :  { %v1838_v2 = vpop.permute.xlu1 %1837 }
 0x8df   :  { %v1836_v4 = vpop.permute.xlu0 %1835 }
 0x8e2   :  { %v1764_v0 = vpop.permute.xlu1 %1763 }
 0x8e3   :  { %v1762_v6 = vpop.permute.xlu0 %1761  ;;  %v1866_v11 = vsel %vm4951_vm7, %v4283_v59, %v1764_v0 }
 0x8e4   :  { %v1864_v14 = vsel %vm4950_vm9, %v4290_v32, %v1762_v6  ;;  %v1870_v28 = vsel %vm332_vm14, %v1866_v11, %v1778_v61  ;;  %vm4952_vm9 = vcmask 1044480  }
 0x8e5   :  { %v1868_v20 = vsel %vm332_vm14, %v1864_v14, %v1776_v48  ;;  %vm4953_vm7 = vmmov %vm4952_vm9 }
 0x8e6   :  { %v1800_v9 = vpop.permute.xlu1 %1799 }
 0x8e7   :  { %v1798_v13 = vpop.permute.xlu0 %1797  ;;  %v1874_v35 = vsel %vm337_vm15, %v1870_v28, %v1800_v9 }
 0x8e8   :  { %v1872_v34 = vsel %vm337_vm15, %v1868_v20, %v1798_v13  ;;  %v1878_v25 = vsel %vm342_vm2, %v1874_v35, %v1810_v62 }
 0x8e9   :  { %v1876_v7 = vsel %vm342_vm2, %v1872_v34, %v1808_v63 }
 0x8ea   :  { %v1828_v15 = vpop.permute.xlu1 %1827 }
 0x8eb   :  { %v1826_v24 = vpop.permute.xlu0 %1825  ;;  %v1882_v59 = vsel %vm347_vm3, %v1878_v25, %v1828_v15 }
 0x8ec   :  { %v1880_v32 = vsel %vm347_vm3, %v1876_v7, %v1826_v24  ;;  %v1886_v18 = vsel %vm352_vm1, %v1882_v59, %v1838_v2 }
 0x8ed   :  { %v1884_v3 = vsel %vm352_vm1, %v1880_v32, %v1836_v4  ;;  %v3235_v32 = vld [vmem:[%s4912_s3 + $0xe] ss:$0 sm:$0xff] }
 0x8ee   :  { %v1856_v10 = vpop.permute.xlu1 %1855 }
 0x8ef   :  { %v1854_v12 = vpop.permute.xlu0 %1853  ;;  %v1890_v19 = vsel %vm357_vm13, %v1886_v18, %v1856_v10 }
 0x8f0   :  { %v1888_v44 = vsel %vm357_vm13, %v1884_v3, %v1854_v12 }
 0x8f2   :  { %v1862_v39 = vpop.permute.xlu1 %1861 }
 0x8f3   :  { %v1860_v36 = vpop.permute.xlu0 %1859  ;;  %v1894_v46 = vsel %vm362_vm11, %v1890_v19, %v1862_v39 }
 0x8f4   :  { %v1892_v21 = vsel %vm362_vm11, %v1888_v44, %v1860_v36  ;;  %v3236_v44 = vld [vmem:[%s4912_s3 + $0xf] ss:$0 sm:$0xff] }
 0x8f5   :  { %3452 = vmatprep.mubr.msk.bf16.mxu0 %vm398_vm10, %v1892_v21 }
 0x8f6   :  { %3453 = vmatmul.mubr.msk.bf16.vlgmr.msra.gmra.mrb[16].mxu0 %vm398_vm10, %v1894_v46 }
 0x9c9   :  { %v3454_v41 = vpop.f32.mrb[16].mxu0 }
 0x9ca   :  { %v1967_v38 = vpop.f32.mrb[17].mxu0  ;;  %v1976_v42 = vadd.f32 %v3454_v41, %v3227_v43 }
 0x9cb   :  { %v1968_v49 = vadd.f32 %v3227_v43, %v1967_v38  ;;  %v3455_v29 = vpop.f32.mrb[18].mxu0 }
 0x9cc   :  { %v1970_v26 = vpop.f32.mrb[19].mxu0  ;;  %v1979_v45 = vadd.f32 %v3455_v29, %v3227_v43  ;;  %v1997_v50 = vmul.f32 %v1976_v42, %v1976_v42  ;;  %v1985_v53 = vsel %vm332_vm14, %v1976_v42, 0.0 }
 0x9cd   :  { %v1995_v47 = vmul.f32 %v1968_v49, %v1968_v49  ;;  %v1971_v17 = vadd.f32 %v3227_v43, %v1970_v26  ;;  %v1982_v31 = vsel %vm332_vm14, %v1968_v49, 0.0 }
 0x9ce   :  { %v1998_v16 = vmul.f32 %v1979_v45, %v1979_v45  ;;  %v2002_v55 = vsel %vm332_vm14, %v1997_v50, 0.0  ;;  %v1987_v57 = vsel %vm332_vm14, %v1979_v45, 0.0  ;;  %v3252_v50 = vld [vmem:[%s4912_s3 + $0x10] ss:$0 sm:$0xff] }
 0x9cf   :  { %v1983_v51 = vsel %vm332_vm14, %v1971_v17, 0.0  ;;  %v1996_v37 = vmul.f32 %v1971_v17, %v1971_v17  ;;  %v1999_v54 = vsel %vm332_vm14, %v1995_v47, 0.0 }
 0x9d0   :  { %v1984_v23 = vadd.f32 %v1983_v51, %v1982_v31  ;;  %v2004_v58 = vsel %vm332_vm14, %v1998_v16, 0.0 }
 0x9d1   :  { %v2000_v33 = vsel %vm332_vm14, %v1996_v37, 0.0 }
 0x9d2   :  { %v1986_v1 = vadd.f32 %v1985_v53, %v1984_v23  ;;  %v2001_v56 = vadd.f32 %v2000_v33, %v1999_v54 }
 0x9d4   :  { %v1988_v30 = vadd.f32 %v1987_v57, %v1986_v1  ;;  %v2003_v40 = vadd.f32 %v2002_v55, %v2001_v56 }
 0x9d6   :  { %v1989_v60 = vrot.slane %v1988_v30, 4  ;;  %v2005_v5 = vadd.f32 %v2004_v58, %v2003_v40 }
 0x9d8   :  { %v1990_v61 = vadd.f32 %v1989_v60, %v1988_v30  ;;  %v2006_v48 = vrot.slane %v2005_v5, 4  ;;  %v3546_v60 = vld [vmem:[%s4911_s2 + $0x90] sm:$0xff]  }
 0x9d9   :  { %3462 = vmatprep.subr.bf16.mxu1 %v3546_v60 }
 0x9da   :  { %v1991_v62 = vrot.slane %v1990_v61, 2  ;;  %v2007_v63 = vadd.f32 %v2006_v48, %v2005_v5 }
 0x9dc   :  { %v1992_v2 = vadd.f32 %v1991_v62, %v1990_v61  ;;  %v2008_v4 = vrot.slane %v2007_v63, 2 }
 0x9de   :  { %v1993_v0 = vrot.slane %v1992_v2, 1  ;;  %v2009_v6 = vadd.f32 %v2008_v4, %v2007_v63 }
 0x9e0   :  { %v1994_v9 = vadd.f32 %v1993_v0, %v1992_v2  ;;  %v2010_v13 = vrot.slane %v2009_v6, 1 }
 0x9e2   :  { %v2011_v14 = vadd.f32 %v2010_v13, %v2009_v6  ;;  %v2012_v11 = vmul.f32 0.03125, %v1994_v9 }
 0x9e4   :  { %v2013_v15 = vmul.f32 0.03125, %v2011_v14  ;;  %v2014_v20 = vmul.f32 %v2012_v11, %v2012_v11  ;;  %v2018_v24 = vsub.f32 %v1971_v17, %v2012_v11  ;;  %v2017_v28 = vsub.f32 %v1968_v49, %v2012_v11 }
 0x9e5   :  { %v2019_v34 = vsub.f32 %v1976_v42, %v2012_v11  ;;  %v2020_v35 = vsub.f32 %v1979_v45, %v2012_v11 }
 0x9e6   :  { %v2015_v10 = vsub.f32 %v2013_v15, %v2014_v20 }
 0x9e8   :  { %v2016_v7 = vmax.f32 %v2015_v10, 0.0 }
 0x9ea   :  { %v2021_v12 = vadd.f32 1e-05, %v2016_v7 }
 0x9ec   :  { %3566 = vrsqrt.f32 %v2021_v12 }
 0x9f6   :  { %v3567_v25 = vpop.eup %3566 }
 0x9f7   :  { %v2024_v59 = vmul.f32 %v3567_v25, %v2018_v24  ;;  %v2023_v3 = vmul.f32 %v3567_v25, %v2017_v28  ;;  %v2025_v39 = vmul.f32 %v3567_v25, %v2019_v34  ;;  %v2026_v18 = vmul.f32 %v3567_v25, %v2020_v35  ;;  %v3547_v28 = vld [vmem:[%s4911_s2 + $0x98] sm:$0xff]  }
 0x9f9   :  { %v2032_v36 = vmul.f32 %v3235_v32, %v2024_v59  ;;  %v2031_v19 = vmul.f32 %v3235_v32, %v2023_v3  ;;  %v2033_v21 = vmul.f32 %v3235_v32, %v2025_v39  ;;  %v2034_v46 = vmul.f32 %v3235_v32, %v2026_v18 }
 0x9fb   :  { %v2039_v8 = vadd.f32 %v3236_v44, %v2031_v19  ;;  %v2040_v43 = vadd.f32 %v3236_v44, %v2032_v36  ;;  %v2041_v41 = vadd.f32 %v3236_v44, %v2033_v21  ;;  %v2042_v38 = vadd.f32 %v3236_v44, %v2034_v46 }
 0x9fd   :  { %v2043_v42 = vmax.f32 %v2039_v8, 0.0  ;;  %v2044_v49 = vmax.f32 %v2040_v43, 0.0  ;;  %v2045_v29 = vmax.f32 %v2041_v41, 0.0  ;;  %v2046_v26 = vmax.f32 %v2042_v38, 0.0  ;;  %v3548_v8 = vld [vmem:[%s4911_s2 + $0xa0] sm:$0xff]  }
 0x9ff   :  { %v2047_v47 = vpack.c.bf16 %v2044_v49, %v2043_v42  ;;  %v2048_v45 = vpack.c.bf16 %v2046_v26, %v2045_v29 }
 0xa01   :  { %3458 = vmatprep.mubr.msk.bf16.mxu1 %vm332_vm14, %v2047_v47 }
 0xa02   :  { %3459 = vmatmul.mubr.msk.bf16.vlgmr.msra.gmra.mrb[16].mxu1 %vm332_vm14, %v2048_v45 }
 0xa03   :  { %3463 = vmatpush3.bf16.msra.mxu1 %v3546_v60 }
 0xa04   :  { %3464 = vmatprep.subr.bf16.mxu1 %v3547_v28 }
 0xa07   :  { %3465 = vmatpush3.bf16.msra.mxu1 %v3547_v28 }
 0xa08   :  { %3466 = vmatprep.subr.bf16.mxu1 %v3548_v8 }
 0xa0b   :  { %3467 = vmatpush3.bf16.msra.mxu1 %v3548_v8 }
 0xad5   :  { %v3460_v17 = vpop.f32.mrb[16].mxu1 }
 0xad6   :  { %v2117_v31 = vpop.f32.mrb[17].mxu1  ;;  %v2126_v37 = vadd.f32 %v3460_v17, %v3252_v50 }
 0xad7   :  { %v3461_v51 = vpop.f32.mrb[18].mxu1  ;;  %v2118_v54 = vadd.f32 %v3252_v50, %v2117_v31 }
 0xad8   :  { %v2129_v23 = vadd.f32 %v3461_v51, %v3252_v50  ;;  %v2120_v53 = vpop.f32.mrb[19].mxu1 }
 0xad9   :  { %v2121_v16 = vadd.f32 %v3252_v50, %v2120_v53 }
 0xada   :  { %v2133_v33 = vpack.c.bf16 %v2129_v23, %v2126_v37 }
 0xadb   :  { %v2132_v1 = vpack.c.bf16 %v2121_v16, %v2118_v54  ;;  %v3549_v54 = vld [vmem:[%s4911_s2 + $0xa8] sm:$0xff]  }
 0xadc   :  { %v2137_v56 = vrot.slane %v2133_v33, 6  ;;  %v2152_v55 = vshrl.u32 %v2133_v33, 16  ;;  %v2155_v6 = vshll.u32 %v2133_v33, 16  ;;  %3468 = vmatprep.subr.bf16.mxu1 %v3549_v54 }
 0xadd   :  { %v2136_v57 = vrot.slane %v2132_v1, 6  ;;  %v2145_v48 = vshrl.u32 %v2132_v1, 16  ;;  %v2148_v10 = vshll.u32 %v2132_v1, 16  ;;  %3469 = vmatpush3.bf16.msra.mxu1 %v3549_v54 }
 0xade   :  { %v4462_v30 = vsel %vm65_vm0, 0, %v2137_v56  ;;  %v2143_v40 = vsel %vm65_vm0, %v2137_v56, 0  ;;  %v2154_v58 = vrot.slane %v2152_v55, 7 }
 0xadf   :  { %v4469_v5 = vsel %vm65_vm0, 0, %v2136_v57  ;;  %v2142_v61 = vsel %vm65_vm0, %v2136_v57, 0  ;;  %v2239_v62 = vrot.slane %v4462_v30, 1  ;;  %v2240_v63 = vrot.slane %v2143_v40, 1 }
 0xae0   :  { %v2236_v2 = vrot.slane %v4469_v5, 1  ;;  %v4476_v4 = vsel %vm3665_vm4, %v2154_v58, 4048220490  ;;  %v2237_v0 = vrot.slane %v2142_v61, 1  ;;  %v2271_v13 = vrot.slane %v4462_v30, 2 }
 0xae1   :  { %v2241_v9 = vsel %vm189_vm5, %v2239_v62, %v2240_v63  ;;  %v2272_v14 = vrot.slane %v2143_v40, 2  ;;  %v4480_v11 = vrot.slane %v2145_v48, 7  ;;  %v2268_v20 = vrot.slane %v4469_v5, 2 }
 0xae2   :  { %2244 = vrot.lane.b32.xlu1 %v2241_v9, %s3600_s7  ;;  %v2238_v15 = vsel %vm189_vm5, %v2236_v2, %v2237_v0  ;;  %v2269_v24 = vrot.slane %v2142_v61, 2  ;;  %v4488_v34 = vor.u32 %v2155_v6, %v2154_v58  ;;  %v2186_v35 = vshll.u32 %v4476_v4, 16  ;;  %v3550_v9 = vld [vmem:[%s4911_s2 + $0xb0] ss:$0 sps:$4 sm:$0xff]  }
 0xae3   :  { %2242 = vrot.lane.b32.xlu0 %v2238_v15, %s3600_s7  ;;  %v2299_v7 = vrot.slane %v4462_v30, 3  ;;  %v2300_v12 = vrot.slane %v2143_v40, 3  ;;  %v2296_v25 = vrot.slane %v4469_v5, 3  ;;  %v2297_v32 = vrot.slane %v2142_v61, 3  ;;  %3508 = vmatprep.subr.msk.bf16.mxu1 %vm403_vm12, %v3550_v9 }
 0xae4   :  { %v4495_v59 = vshrl.u32 %v4462_v30, 16  ;;  %v2273_v3 = vsel %vm261_vm6, %v2271_v13, %v2272_v14  ;;  %v4499_v39 = vshll.u32 %v4462_v30, 16  ;;  %v4501_v18 = vshll.u32 %v2143_v40, 16 }
 0xae5   :  { %v4504_v44 = vshrl.u32 %v4469_v5, 16  ;;  %v4507_v36 = vor.u32 %v2148_v10, %v4480_v11  ;;  %v2270_v19 = vsel %vm261_vm6, %v2268_v20, %v2269_v24  ;;  %v4512_v21 = vshll.u32 %v4469_v5, 16 }
 0xae6   :  { %2276 = vrot.lane.b32.xlu1 %v2273_v3, %s3601_s10  ;;  %v4514_v46 = vshll.u32 %v2142_v61, 16  ;;  %v2222_v43 = vrot.slane %v4499_v39, 1  ;;  %v2255_v41 = vrot.slane %v4495_v59, 1  ;;  %v2256_v38 = vrot.slane %v4499_v39, 2 }
 0xae7   :  { %2274 = vrot.lane.b32.xlu0 %v2270_v19, %s3601_s10  ;;  %v4523_v42 = vshrl.u32 %v2143_v40, 16  ;;  %v2301_v49 = vsel %vm4952_vm9, %v2299_v7, %v2300_v12  ;;  %v2298_v29 = vsel %vm4953_vm7, %v2296_v25, %v2297_v32  ;;  %v2212_v26 = vrot.slane %v4512_v21, 1 }
 0xae8   :  { %v2261_v47 = vrot.slane %v4501_v18, 2  ;;  %v2223_v45 = vor.u32 %v2222_v43, %v4495_v59  ;;  %v2246_v50 = vrot.slane %v4504_v44, 1  ;;  %v2247_v31 = vrot.slane %v4512_v21, 2 }
 0xae9   :  { %v2260_v17 = vrot.slane %v4523_v42, 1  ;;  %v2226_v51 = vrot.slane %v4501_v18, 1  ;;  %v2213_v37 = vor.u32 %v2212_v26, %v4504_v44  ;;  %v2249_v23 = vshrl.u32 %v2142_v61, 16 }
 0xaea   :  { %2304 = vrot.lane.b32.xlu1 %v2301_v49, %s3602_s13  ;;  %v2252_v53 = vrot.slane %v4514_v46, 2  ;;  %v2257_v16 = vor.u32 %v2256_v38, %v2255_v41  ;;  %v2285_v1 = vrot.slane %v4495_v59, 2  ;;  %v2286_v56 = vrot.slane %v4499_v39, 3 }
 0xaeb   :  { %2302 = vrot.lane.b32.xlu0 %v2298_v29, %s3602_s13  ;;  %v2262_v33 = vor.u32 %v2261_v47, %v2260_v17  ;;  %v2216_v55 = vrot.slane %v4514_v46, 1  ;;  %v2251_v57 = vrot.slane %v2249_v23, 1  ;;  %v2288_v40 = vrot.slane %v4523_v42, 2 }
 0xaec   :  { %v2289_v58 = vrot.slane %v4501_v18, 3  ;;  %v2227_v60 = vsel %vm156_vm8, %v2223_v45, %v2226_v51  ;;  %v2248_v61 = vor.u32 %v2247_v31, %v2246_v50  ;;  %v2278_v48 = vrot.slane %v4504_v44, 2 }
 0xaed   :  { %v2279_v62 = vrot.slane %v4512_v21, 3  ;;  %v2217_v63 = vsel %vm156_vm8, %v2213_v37, %v2216_v55  ;;  %v2253_v2 = vor.u32 %v2252_v53, %v2251_v57  ;;  %v2281_v0 = vrot.slane %v2249_v23, 2 }
 0xaee   :  { %2230 = vrot.lane.b32.xlu1 %v2227_v60, %s3603_s16  ;;  %v2282_v6 = vrot.slane %v4514_v46, 3  ;;  %v2164_v13 = vsel %vm3665_vm4, %v4480_v11, 4048220490  ;;  %vm4954_vm9 = vsmask.f32 6400  ;;  %v2287_v15 = vor.u32 %v2286_v56, %v2285_v1 }
 0xaef   :  { %2228 = vrot.lane.b32.xlu0 %v2217_v63, %s3603_s16  ;;  %v2263_v14 = vsel %vm4954_vm9, %v2257_v16, %v2262_v33  ;;  %v2290_v20 = vor.u32 %v2289_v58, %v2288_v40  ;;  %v2313_v24 = vrot.slane %v4495_v59, 3  ;;  %v2314_v28 = vrot.slane %v4499_v39, 4  ;;  %vm4955_vm7 = vmmov %vm4954_vm9 }
 0xaf0   :  { %v2316_v10 = vrot.slane %v4523_v42, 3  ;;  %v2317_v7 = vrot.slane %v4501_v18, 4  ;;  %v2254_v12 = vsel %vm4955_vm7, %v2248_v61, %v2253_v2  ;;  %v2280_v25 = vor.u32 %v2279_v62, %v2278_v48 }
 0xaf1   :  { %v2283_v11 = vor.u32 %v2282_v6, %v2281_v0  ;;  %v2306_v32 = vrot.slane %v4504_v44, 3  ;;  %v2307_v3 = vrot.slane %v4512_v21, 4  ;;  %v2309_v19 = vrot.slane %v2249_v23, 3 }
 0xaf2   :  { %2266 = vrot.lane.b32.xlu1 %v2263_v14, %s3604_s17  ;;  %v2310_v59 = vrot.slane %v4514_v46, 4  ;;  %v2163_v39 = vsel %vm3665_vm4, 4048220490, %v4488_v34  ;;  %v2174_v18 = vshll.u32 %v2164_v13, 16  ;;  %v2188_v43 = vrot.slane %v2186_v35, 1  ;;  %v3551_v35 = vld [vmem:[%s4913_s4 + $0x8] sm:$0xff]  }
 0xaf3   :  { %2264 = vrot.lane.b32.xlu0 %v2254_v12, %s3604_s17  ;;  %v2181_v8 = vshll.u32 %v2163_v39, 16  ;;  %v2315_v41 = vor.u32 %v2314_v28, %v2313_v24  ;;  %v2318_v44 = vor.u32 %v2317_v7, %v2316_v10  ;;  %v2162_v21 = vsel %vm3665_vm4, 4048220490, %v4507_v36 }
 0xaf4   :  { %vm4956_vm9 = vsmask.f32 5376  ;;  %v2179_v46 = vshrl.u32 %v2163_v39, 16  ;;  %v2169_v49 = vshll.u32 %v2162_v21, 16  ;;  %v2308_v29 = vor.u32 %v2307_v3, %v2306_v32 }
 0xaf5   :  { %v2291_v38 = vsel %vm4956_vm9, %v2287_v15, %v2290_v20  ;;  %v2183_v42 = vrot.slane %v2181_v8, 1  ;;  %vm4957_vm7 = vmmov %vm4956_vm9  ;;  %v2311_v26 = vor.u32 %v2310_v59, %v2309_v19  ;;  %v2398_v47 = vsel %vm403_vm12, %v3550_v9, 0 }
 0xaf6   :  { %2294 = vrot.lane.b32.xlu1 %v2291_v38, %s3605_s18  ;;  %v2284_v34 = vsel %vm4957_vm7, %v2280_v25, %v2283_v11  ;;  %v2201_v45 = vrot.slane %v2163_v39, 1  ;;  %v2167_v17 = vshrl.u32 %v2162_v21, 16  ;;  %v2171_v50 = vrot.slane %v2169_v49, 1  ;;  %3471 = vmatpush3.bf16.msra.mxu1 %v2398_v47  ;;  %v3256_v38 = vld [vmem:[%s4912_s3 + $0x11] ss:$0 sm:$0xff] }
 0xaf7   :  { %2292 = vrot.lane.b32.xlu0 %v2284_v34, %s3605_s18  ;;  %v2184_v36 = vor.u32 %v2183_v42, %v2179_v46  ;;  %v2176_v31 = vrot.slane %v2174_v18, 1  ;;  %vm4958_vm9 = vsmask.f32 4352  ;;  %3496 = vmatprep.subr.bf16.mxu1 %v3551_v35  ;;  %v2202_v23 = vrot.slane %v4476_v4, 1 }
 0xaf8   :  { %v2319_v51 = vsel %vm4958_vm9, %v2315_v41, %v2318_v44  ;;  %v2172_v53 = vor.u32 %v2171_v50, %v2167_v17  ;;  %v2198_v54 = vrot.slane %v2162_v21, 1  ;;  %vm4959_vm7 = vmmov %vm4958_vm9  ;;  %v2199_v55 = vrot.slane %v2164_v13, 1 }
 0xaf9   :  { %v2189_v37 = vsel %vm156_vm8, %v2184_v36, %v2188_v43  ;;  %v2312_v16 = vsel %vm4959_vm7, %v2308_v29, %v2311_v26  ;;  %v2203_v1 = vsel %vm189_vm5, %v2201_v45, %v2202_v23  ;;  %vm4960_vm9 = vcmask 64512  }
 0xafa   :  { %2322 = vrot.lane.b32.xlu1 %v2319_v51, %s3606_s21  ;;  %v2193_v33 = vmax.bf16 %v2189_v37, %v2163_v39  ;;  %v2177_v56 = vsel %vm156_vm8, %v2172_v53, %v2176_v31  ;;  %v2200_v58 = vsel %vm189_vm5, %v2198_v54, %v2199_v55  ;;  %vm4961_vm7 = vmmov %vm4960_vm9 }
 0xafb   :  { %2320 = vrot.lane.b32.xlu0 %v2312_v16, %s3606_s21  ;;  %v2192_v40 = vmax.bf16 %v2177_v56, %v2162_v21  ;;  %v3552_v21 = vld [vmem:[%s4910_s1 + $0x28] sm:$0xff]  }
 0xafc   :  { %v2207_v57 = vmax.bf16 %v2203_v1, %v2193_v33  ;;  %3476 = vmatprep.subr.bf16.mxu0 %v3552_v21 }
 0xafd   :  { %v2206_v4 = vmax.bf16 %v2200_v58, %v2192_v40  ;;  %3477 = vmatpush3.bf16.msra.mxu0 %v3552_v21 }
 0xafe   :  { %2328 = vrot.lane.b32.xlu1 %v2207_v57, %s3607_s22 }
 0xaff   :  { %2326 = vrot.lane.b32.xlu0 %v2206_v4, %s3607_s22 }
 0xb54   :  { %v2245_v60 = vpop.permute.xlu1 %2244 }
 0xb55   :  { %v2243_v61 = vpop.permute.xlu0 %2242 }
 0xb58   :  { %v2277_v48 = vpop.permute.xlu1 %2276 }
 0xb59   :  { %v2275_v62 = vpop.permute.xlu0 %2274 }
 0xb5c   :  { %v2305_v63 = vpop.permute.xlu1 %2304 }
 0xb5d   :  { %v2303_v2 = vpop.permute.xlu0 %2302 }
 0xb60   :  { %v2231_v0 = vpop.permute.xlu1 %2230 }
 0xb61   :  { %v2229_v6 = vpop.permute.xlu0 %2228  ;;  %v2333_v15 = vsel %vm4961_vm7, %v4462_v30, %v2231_v0 }
 0xb62   :  { %v2331_v13 = vsel %vm4960_vm9, %v4469_v5, %v2229_v6  ;;  %v2337_v10 = vsel %vm332_vm14, %v2333_v15, %v2245_v60  ;;  %vm4964_vm9 = vsmask.f32 6400 }
 0xb63   :  { %v2335_v24 = vsel %vm332_vm14, %v2331_v13, %v2243_v61  ;;  %vm4965_vm7 = vmmov %vm4964_vm9 }
 0xb64   :  { %v2267_v9 = vpop.permute.xlu1 %2266 }
 0xb65   :  { %v2265_v14 = vpop.permute.xlu0 %2264  ;;  %v2341_v12 = vsel %vm337_vm15, %v2337_v10, %v2267_v9 }
 0xb66   :  { %v2339_v7 = vsel %vm337_vm15, %v2335_v24, %v2265_v14  ;;  %v2345_v3 = vsel %vm342_vm2, %v2341_v12, %v2277_v48 }
 0xb67   :  { %v2343_v11 = vsel %vm342_vm2, %v2339_v7, %v2275_v62 }
 0xb68   :  { %v2295_v20 = vpop.permute.xlu1 %2294 }
 0xb69   :  { %v2293_v28 = vpop.permute.xlu0 %2292  ;;  %v2349_v30 = vsel %vm347_vm3, %v2345_v3, %v2295_v20 }
 0xb6a   :  { %v2347_v5 = vsel %vm347_vm3, %v2343_v11, %v2293_v28  ;;  %v2353_v39 = vsel %vm352_vm1, %v2349_v30, %v2305_v63 }
 0xb6b   :  { %v2351_v19 = vsel %vm352_vm1, %v2347_v5, %v2303_v2 }
 0xb6c   :  { %v2323_v25 = vpop.permute.xlu1 %2322 }
 0xb6d   :  { %v2321_v32 = vpop.permute.xlu0 %2320  ;;  %v2357_v43 = vsel %vm357_vm13, %v2353_v39, %v2323_v25 }
 0xb6e   :  { %v2355_v18 = vsel %vm357_vm13, %v2351_v19, %v2321_v32 }
 0xb70   :  { %v2329_v59 = vpop.permute.xlu1 %2328 }
 0xb71   :  { %v2327_v8 = vpop.permute.xlu0 %2326  ;;  %v2361_v44 = vsel %vm362_vm11, %v2357_v43, %v2329_v59 }
 0xb72   :  { %v2359_v41 = vsel %vm362_vm11, %v2355_v18, %v2327_v8 }
 0xb73   :  { %3472 = vmatprep.mubr.msk.bf16.mxu1 %vm398_vm10, %v2359_v41 }
 0xb74   :  { %3473 = vmatmul.mubr.msk.bf16.vlgmr.msra.gmra.mrb[20].mxu1 %vm398_vm10, %v2361_v44 }
 0xb75   :  { %3498 = vmatprep.mubr.msk.bf16.mxu1 %vm332_vm14, %v4271_v27  ;;  %3497 = vmatpush3.bf16.msra.mxu1 %v3551_v35 }
 0xb7c   :  { %3499 = vmatmul.mubr.msk.bf16.vlgmr.msra.gmra.mrb[24].mxu1 %vm332_vm14, %v4273_v52 }
 0xc47   :  { %v3474_v46 = vpop.f32.mrb[20].mxu1 }
 0xc48   :  { %v2434_v42 = vpop.f32.mrb[21].mxu1  ;;  %v4628_v49 = vadd.f32 %v3474_v46, %v3256_v38 }
 0xc49   :  { %v4630_v34 = vadd.f32 %v3256_v38, %v2434_v42  ;;  %v3475_v27 = vpop.f32.mrb[22].mxu1 }
 0xc4a   :  { %v4632_v29 = vadd.f32 %v3475_v27, %v3256_v38  ;;  %v2437_v52 = vpop.f32.mrb[23].mxu1  ;;  %v2464_v35 = vmul.f32 %v4628_v49, %v4628_v49  ;;  %v2452_v51 = vsel %vm332_vm14, %v4628_v49, 0.0 }
 0xc4b   :  { %v2462_v26 = vmul.f32 %v4630_v34, %v4630_v34  ;;  %v4636_v47 = vadd.f32 %v3256_v38, %v2437_v52  ;;  %v2449_v36 = vsel %vm332_vm14, %v4630_v34, 0.0 }
 0xc4c   :  { %v2465_v50 = vmul.f32 %v4632_v29, %v4632_v29  ;;  %v2469_v1 = vsel %vm332_vm14, %v2464_v35, 0.0  ;;  %v2454_v56 = vsel %vm332_vm14, %v4632_v29, 0.0 }
 0xc4d   :  { %v2450_v45 = vsel %vm332_vm14, %v4636_v47, 0.0  ;;  %v2463_v17 = vmul.f32 %v4636_v47, %v4636_v47  ;;  %v2466_v37 = vsel %vm332_vm14, %v2462_v26, 0.0 }
 0xc4e   :  { %v2451_v31 = vadd.f32 %v2450_v45, %v2449_v36  ;;  %v2471_v40 = vsel %vm332_vm14, %v2465_v50, 0.0 }
 0xc4f   :  { %v2467_v23 = vsel %vm332_vm14, %v2463_v17, 0.0  ;;  %v4652_v53 = vpop.f32.mrb[24].mxu1 }
 0xc50   :  { %v2453_v54 = vadd.f32 %v2452_v51, %v2451_v31  ;;  %v2468_v16 = vadd.f32 %v2467_v23, %v2466_v37  ;;  %v4654_v33 = vpop.f32.mrb[25].mxu1  ;;  %v3057_v61 = vmul.f32 %v4652_v53, %v4652_v53  ;;  %v3045_v9 = vsel %vm332_vm14, %v4652_v53, 0.0 }
 0xc51   :  { %v3055_v55 = vmul.f32 %v4654_v33, %v4654_v33  ;;  %v4661_v57 = vpop.f32.mrb[26].mxu1  ;;  %v3042_v48 = vsel %vm332_vm14, %v4654_v33, 0.0 }
 0xc52   :  { %v2455_v58 = vadd.f32 %v2454_v56, %v2453_v54  ;;  %v2470_v4 = vadd.f32 %v2469_v1, %v2468_v16  ;;  %v4664_v60 = vpop.f32.mrb[27].mxu1  ;;  %v3058_v13 = vmul.f32 %v4661_v57, %v4661_v57  ;;  %v3062_v7 = vsel %vm332_vm14, %v3057_v61, 0.0 }
 0xc53   :  { %v3043_v62 = vsel %vm332_vm14, %v4664_v60, 0.0  ;;  %v3056_v63 = vmul.f32 %v4664_v60, %v4664_v60  ;;  %v3059_v14 = vsel %vm332_vm14, %v3055_v55, 0.0  ;;  %v3047_v12 = vsel %vm332_vm14, %v4661_v57, 0.0 }
 0xc54   :  { %v2456_v2 = vrot.slane %v2455_v58, 4  ;;  %v2472_v0 = vadd.f32 %v2471_v40, %v2470_v4  ;;  %v3044_v6 = vadd.f32 %v3043_v62, %v3042_v48  ;;  %v3064_v5 = vsel %vm332_vm14, %v3058_v13, 0.0 }
 0xc55   :  { %v3060_v15 = vsel %vm332_vm14, %v3056_v63, 0.0 }
 0xc56   :  { %v2457_v20 = vadd.f32 %v2456_v2, %v2455_v58  ;;  %v2473_v24 = vrot.slane %v2472_v0, 4  ;;  %v3046_v28 = vadd.f32 %v3045_v9, %v3044_v6  ;;  %v3061_v10 = vadd.f32 %v3060_v15, %v3059_v14  ;;  %v3264_v2 = vld [vmem:[%s4912_s3 + $0x12] ss:$0 sm:$0xff] }
 0xc58   :  { %v2458_v25 = vrot.slane %v2457_v20, 2  ;;  %v2474_v11 = vadd.f32 %v2473_v24, %v2472_v0  ;;  %v3048_v32 = vadd.f32 %v3047_v12, %v3046_v28  ;;  %v3063_v3 = vadd.f32 %v3062_v7, %v3061_v10 }
 0xc5a   :  { %v2459_v30 = vadd.f32 %v2458_v25, %v2457_v20  ;;  %v2475_v19 = vrot.slane %v2474_v11, 2  ;;  %v3049_v59 = vrot.slane %v3048_v32, 4  ;;  %v3065_v39 = vadd.f32 %v3064_v5, %v3063_v3 }
 0xc5c   :  { %v2460_v18 = vrot.slane %v2459_v30, 1  ;;  %v2476_v8 = vadd.f32 %v2475_v19, %v2474_v11  ;;  %v3050_v43 = vadd.f32 %v3049_v59, %v3048_v32  ;;  %v3066_v41 = vrot.slane %v3065_v39, 4 }
 0xc5e   :  { %v2461_v44 = vadd.f32 %v2460_v18, %v2459_v30  ;;  %v2477_v21 = vrot.slane %v2476_v8, 1  ;;  %v3051_v38 = vrot.slane %v3050_v43, 2  ;;  %v3067_v46 = vadd.f32 %v3066_v41, %v3065_v39  ;;  %v3281_v18 = vld [vmem:[%s4912_s3 + $0x14] ss:$0 sm:$0xff] }
 0xc60   :  { %v2478_v42 = vadd.f32 %v2477_v21, %v2476_v8  ;;  %v2479_v27 = vmul.f32 0.03125, %v2461_v44  ;;  %v3052_v52 = vadd.f32 %v3051_v38, %v3050_v43  ;;  %v3068_v26 = vrot.slane %v3067_v46, 2 }
 0xc62   :  { %v2480_v35 = vmul.f32 0.03125, %v2478_v42  ;;  %v2481_v36 = vmul.f32 %v2479_v27, %v2479_v27  ;;  %v2485_v45 = vsub.f32 %v4636_v47, %v2479_v27  ;;  %v3053_v17 = vrot.slane %v3052_v52, 1 }
 0xc63   :  { %v3069_v50 = vadd.f32 %v3068_v26, %v3067_v46  ;;  %v2484_v31 = vsub.f32 %v4630_v34, %v2479_v27  ;;  %v2486_v51 = vsub.f32 %v4628_v49, %v2479_v27  ;;  %v2487_v37 = vsub.f32 %v4632_v29, %v2479_v27 }
 0xc64   :  { %v2482_v23 = vsub.f32 %v2480_v35, %v2481_v36  ;;  %v3054_v54 = vadd.f32 %v3053_v17, %v3052_v52 }
 0xc65   :  { %v3070_v16 = vrot.slane %v3069_v50, 1 }
 0xc66   :  { %v2483_v1 = vmax.f32 %v2482_v23, 0.0  ;;  %v3072_v56 = vmul.f32 0.03125, %v3054_v54 }
 0xc67   :  { %v3071_v55 = vadd.f32 %v3070_v16, %v3069_v50  ;;  %v3553_v50 = vld [vmem:[%s4911_s2 + $0xb4] sm:$0xff]  }
 0xc68   :  { %v2488_v40 = vadd.f32 1e-05, %v2483_v1  ;;  %v3074_v58 = vmul.f32 %v3072_v56, %v3072_v56  ;;  %v3077_v4 = vsub.f32 %v4654_v33, %v3072_v56  ;;  %v3078_v47 = vsub.f32 %v4664_v60, %v3072_v56  ;;  %3482 = vmatprep.subr.bf16.mxu0 %v3553_v50 }
 0xc69   :  { %v3073_v61 = vmul.f32 0.03125, %v3071_v55  ;;  %v3079_v48 = vsub.f32 %v4652_v53, %v3072_v56  ;;  %v3080_v34 = vsub.f32 %v4661_v57, %v3072_v56  ;;  %v3265_v53 = vld [vmem:[%s4912_s3 + $0x13] ss:$0 sm:$0xff] }
 0xc6a   :  { %3568 = vrsqrt.f32 %v2488_v40 }
 0xc6b   :  { %v3075_v49 = vsub.f32 %v3073_v61, %v3074_v58 }
 0xc6d   :  { %v3076_v29 = vmax.f32 %v3075_v49, 0.0  ;;  %v3554_v49 = vld [vmem:[%s4911_s2 + $0xbc] sm:$0xff]  }
 0xc6f   :  { %v3081_v62 = vadd.f32 1e-05, %v3076_v29 }
 0xc71   :  { %3570 = vrsqrt.f32 %v3081_v62 }
 0xc74   :  { %v3569_v63 = vpop.eup %3568 }
 0xc75   :  { %v2491_v0 = vmul.f32 %v3569_v63, %v2485_v45  ;;  %v2490_v6 = vmul.f32 %v3569_v63, %v2484_v31  ;;  %v2492_v33 = vmul.f32 %v3569_v63, %v2486_v51  ;;  %v2493_v9 = vmul.f32 %v3569_v63, %v2487_v37 }
 0xc77   :  { %v2499_v60 = vmul.f32 %v3264_v2, %v2491_v0  ;;  %v2498_v57 = vmul.f32 %v3264_v2, %v2490_v6  ;;  %v2500_v14 = vmul.f32 %v3264_v2, %v2492_v33  ;;  %v2501_v13 = vmul.f32 %v3264_v2, %v2493_v9 }
 0xc79   :  { %v2506_v15 = vadd.f32 %v3265_v53, %v2498_v57  ;;  %v2507_v20 = vadd.f32 %v3265_v53, %v2499_v60  ;;  %v2508_v24 = vadd.f32 %v3265_v53, %v2500_v14  ;;  %v2509_v28 = vadd.f32 %v3265_v53, %v2501_v13 }
 0xc7b   :  { %v3571_v10 = vpop.eup %3570  ;;  %v2510_v7 = vmax.f32 %v2506_v15, 0.0  ;;  %v2511_v12 = vmax.f32 %v2507_v20, 0.0  ;;  %v2512_v25 = vmax.f32 %v2508_v24, 0.0  ;;  %v2513_v11 = vmax.f32 %v2509_v28, 0.0  ;;  %v3555_v28 = vld [vmem:[%s4911_s2 + $0xc4] sm:$0xff]  }
 0xc7c   :  { %v4698_v32 = vmul.f32 %v3571_v10, %v3077_v4  ;;  %v4700_v3 = vmul.f32 %v3571_v10, %v3078_v47  ;;  %v4702_v5 = vmul.f32 %v3571_v10, %v3079_v48  ;;  %v4704_v30 = vmul.f32 %v3571_v10, %v3080_v34 }
 0xc7d   :  { %v2514_v19 = vpack.c.bf16 %v2511_v12, %v2510_v7  ;;  %v2515_v59 = vpack.c.bf16 %v2513_v11, %v2512_v25 }
 0xc7f   :  { %3478 = vmatprep.mubr.msk.bf16.mxu0 %vm332_vm14, %v2514_v19 }
 0xc80   :  { %3479 = vmatmul.mubr.msk.bf16.vlgmr.msra.gmra.mrb[20].mxu0 %vm332_vm14, %v2515_v59 }
 0xc81   :  { %3483 = vmatpush3.bf16.msra.mxu0 %v3553_v50 }
 0xc82   :  { %3484 = vmatprep.subr.bf16.mxu0 %v3554_v49 }
 0xc85   :  { %3485 = vmatpush3.bf16.msra.mxu0 %v3554_v49 }
 0xc86   :  { %3486 = vmatprep.subr.bf16.mxu0 %v3555_v28 }
 0xc89   :  { %3487 = vmatpush3.bf16.msra.mxu0 %v3555_v28 }
 0xd53   :  { %v3480_v39 = vpop.f32.mrb[20].mxu0 }
 0xd54   :  { %v2584_v8 = vpop.f32.mrb[21].mxu0  ;;  %v2593_v41 = vadd.f32 %v3480_v39, %v3281_v18 }
 0xd55   :  { %v3481_v43 = vpop.f32.mrb[22].mxu0  ;;  %v2585_v38 = vadd.f32 %v3281_v18, %v2584_v8 }
 0xd56   :  { %v2596_v44 = vadd.f32 %v3481_v43, %v3281_v18  ;;  %v2587_v21 = vpop.f32.mrb[23].mxu0 }
 0xd57   :  { %v2588_v46 = vadd.f32 %v3281_v18, %v2587_v21 }
 0xd58   :  { %v2600_v42 = vpack.c.bf16 %v2596_v44, %v2593_v41 }
 0xd59   :  { %v2599_v27 = vpack.c.bf16 %v2588_v46, %v2585_v38 }
 0xd5a   :  { %v2604_v52 = vrot.slane %v2600_v42, 6  ;;  %v2619_v26 = vshrl.u32 %v2600_v42, 16  ;;  %v2622_v55 = vshll.u32 %v2600_v42, 16  ;;  %v3556_v42 = vld [vmem:[%s4911_s2 + $0xcc] sm:$0xff]  }
 0xd5b   :  { %v2603_v35 = vrot.slane %v2599_v27, 6  ;;  %v2612_v37 = vshrl.u32 %v2599_v27, 16  ;;  %v2615_v63 = vshll.u32 %v2599_v27, 16  ;;  %3488 = vmatprep.subr.bf16.mxu0 %v3556_v42 }
 0xd5c   :  { %v4712_v36 = vsel %vm65_vm0, 0, %v2604_v52  ;;  %v2610_v45 = vsel %vm65_vm0, %v2604_v52, 0  ;;  %v2621_v17 = vrot.slane %v2619_v26, 7  ;;  %3489 = vmatpush3.bf16.msra.mxu0 %v3556_v42 }
 0xd5d   :  { %v4719_v31 = vsel %vm65_vm0, 0, %v2603_v35  ;;  %v2609_v51 = vsel %vm65_vm0, %v2603_v35, 0  ;;  %v2706_v23 = vrot.slane %v4712_v36, 1  ;;  %v2707_v54 = vrot.slane %v2610_v45, 1 }
 0xd5e   :  { %v2703_v16 = vrot.slane %v4719_v31, 1  ;;  %v4726_v1 = vsel %vm3665_vm4, %v2621_v17, 4048220490  ;;  %v2704_v56 = vrot.slane %v2609_v51, 1  ;;  %v2738_v58 = vrot.slane %v4712_v36, 2 }
 0xd5f   :  { %v2708_v40 = vsel %vm189_vm5, %v2706_v23, %v2707_v54  ;;  %v2739_v4 = vrot.slane %v2610_v45, 2  ;;  %v4730_v47 = vrot.slane %v2612_v37, 7  ;;  %v2735_v48 = vrot.slane %v4719_v31, 2 }
 0xd60   :  { %2711 = vrot.lane.b32.xlu1 %v2708_v40, %s3600_s7  ;;  %v2705_v61 = vsel %vm189_vm5, %v2703_v16, %v2704_v56  ;;  %v2736_v34 = vrot.slane %v2609_v51, 2  ;;  %v4738_v29 = vor.u32 %v2622_v55, %v2621_v17  ;;  %v2653_v62 = vshll.u32 %v4726_v1, 16 }
 0xd61   :  { %2709 = vrot.lane.b32.xlu0 %v2705_v61, %s3600_s7  ;;  %v2766_v2 = vrot.slane %v4712_v36, 3  ;;  %v2767_v0 = vrot.slane %v2610_v45, 3  ;;  %v2763_v6 = vrot.slane %v4719_v31, 3  ;;  %v2764_v33 = vrot.slane %v2609_v51, 3 }
 0xd62   :  { %v4745_v9 = vshrl.u32 %v4712_v36, 16  ;;  %v2740_v53 = vsel %vm261_vm6, %v2738_v58, %v2739_v4  ;;  %v4749_v60 = vshll.u32 %v4712_v36, 16  ;;  %v4751_v57 = vshll.u32 %v2610_v45, 16  ;;  %v3557_v4 = vld [vmem:[%s4911_s2 + $0xd4] ss:$0 sps:$4 sm:$0xff]  }
 0xd63   :  { %v4754_v14 = vshrl.u32 %v4719_v31, 16  ;;  %v4757_v13 = vor.u32 %v2615_v63, %v4730_v47  ;;  %v2737_v15 = vsel %vm261_vm6, %v2735_v48, %v2736_v34  ;;  %v4762_v20 = vshll.u32 %v4719_v31, 16  ;;  %3509 = vmatprep.subr.msk.bf16.mxu0 %vm403_vm12, %v3557_v4 }
 0xd64   :  { %2743 = vrot.lane.b32.xlu1 %v2740_v53, %s3601_s10  ;;  %v4764_v24 = vshll.u32 %v2609_v51, 16  ;;  %v2689_v10 = vrot.slane %v4749_v60, 1  ;;  %v2722_v7 = vrot.slane %v4745_v9, 1  ;;  %v2723_v12 = vrot.slane %v4749_v60, 2 }
 0xd65   :  { %2741 = vrot.lane.b32.xlu0 %v2737_v15, %s3601_s10  ;;  %v4773_v25 = vshrl.u32 %v2610_v45, 16  ;;  %vm4962_vm0 = vcmask 1044480   ;;  %v2679_v59 = vrot.slane %v4762_v20, 1  ;;  %v2728_v39 = vrot.slane %v4751_v57, 2 }
 0xd66   :  { %v2768_v11 = vsel %vm4962_vm0, %v2766_v2, %v2767_v0  ;;  %vm4963_vm6 = vmmov %vm4962_vm0  ;;  %v2690_v18 = vor.u32 %v2689_v10, %v4745_v9  ;;  %v2713_v43 = vrot.slane %v4754_v14, 1  ;;  %v2714_v41 = vrot.slane %v4762_v20, 2 }
 0xd67   :  { %v2765_v19 = vsel %vm4963_vm6, %v2763_v6, %v2764_v33  ;;  %v2727_v8 = vrot.slane %v4773_v25, 1  ;;  %v2693_v44 = vrot.slane %v4751_v57, 1  ;;  %v2680_v21 = vor.u32 %v2679_v59, %v4754_v14 }
 0xd68   :  { %2771 = vrot.lane.b32.xlu1 %v2768_v11, %s3602_s13  ;;  %v2716_v38 = vshrl.u32 %v2609_v51, 16  ;;  %v2719_v46 = vrot.slane %v4764_v24, 2  ;;  %v2724_v27 = vor.u32 %v2723_v12, %v2722_v7  ;;  %v2752_v26 = vrot.slane %v4745_v9, 2 }
 0xd69   :  { %2769 = vrot.lane.b32.xlu0 %v2765_v19, %s3602_s13  ;;  %v2729_v52 = vor.u32 %v2728_v39, %v2727_v8  ;;  %v2753_v35 = vrot.slane %v4749_v60, 3  ;;  %v2683_v45 = vrot.slane %v4764_v24, 1  ;;  %v2755_v50 = vrot.slane %v4773_v25, 2 }
 0xd6a   :  { %v2718_v17 = vrot.slane %v2716_v38, 1  ;;  %v2756_v51 = vrot.slane %v4751_v57, 3  ;;  %v2694_v37 = vsel %vm156_vm8, %v2690_v18, %v2693_v44  ;;  %v2715_v23 = vor.u32 %v2714_v41, %v2713_v43 }
 0xd6b   :  { %v2745_v54 = vrot.slane %v4754_v14, 2  ;;  %v2746_v16 = vrot.slane %v4762_v20, 3  ;;  %v2684_v56 = vsel %vm156_vm8, %v2680_v21, %v2683_v45  ;;  %v2748_v40 = vrot.slane %v2716_v38, 2 }
 0xd6c   :  { %2697 = vrot.lane.b32.xlu1 %v2694_v37, %s3603_s16  ;;  %v2720_v55 = vor.u32 %v2719_v46, %v2718_v17  ;;  %v2749_v58 = vrot.slane %v4764_v24, 3  ;;  %v2631_v61 = vsel %vm3665_vm4, %v4730_v47, 4048220490  ;;  %v2730_v48 = vsel %vm4964_vm9, %v2724_v27, %v2729_v52 }
 0xd6d   :  { %2695 = vrot.lane.b32.xlu0 %v2684_v56, %s3603_s16  ;;  %v2754_v34 = vor.u32 %v2753_v35, %v2752_v26  ;;  %v2757_v49 = vor.u32 %v2756_v51, %v2755_v50  ;;  %v2780_v63 = vrot.slane %v4745_v9, 3  ;;  %v2781_v2 = vrot.slane %v4749_v60, 4 }
 0xd6e   :  { %v2783_v0 = vrot.slane %v4773_v25, 3  ;;  %v2784_v6 = vrot.slane %v4751_v57, 4  ;;  %v2721_v33 = vsel %vm4965_vm7, %v2715_v23, %v2720_v55  ;;  %v2747_v53 = vor.u32 %v2746_v16, %v2745_v54 }
 0xd6f   :  { %v2750_v47 = vor.u32 %v2749_v58, %v2748_v40  ;;  %v2773_v15 = vrot.slane %v4754_v14, 3  ;;  %v2774_v28 = vrot.slane %v4762_v20, 4  ;;  %v2776_v10 = vrot.slane %v2716_v38, 3 }
 0xd70   :  { %2733 = vrot.lane.b32.xlu1 %v2730_v48, %s3604_s17  ;;  %v2777_v9 = vrot.slane %v4764_v24, 4  ;;  %v2630_v60 = vsel %vm3665_vm4, 4048220490, %v4738_v29  ;;  %v2641_v57 = vshll.u32 %v2631_v61, 16  ;;  %v2655_v12 = vrot.slane %v2653_v62, 1 }
 0xd71   :  { %2731 = vrot.lane.b32.xlu0 %v2721_v33, %s3604_s17  ;;  %v2648_v7 = vshll.u32 %v2630_v60, 16  ;;  %v2782_v25 = vor.u32 %v2781_v2, %v2780_v63  ;;  %v2785_v14 = vor.u32 %v2784_v6, %v2783_v0  ;;  %v2629_v20 = vsel %vm3665_vm4, 4048220490, %v4757_v13 }
 0xd72   :  { %vm4966_vm0 = vsmask.f32 5376  ;;  %v2646_v24 = vshrl.u32 %v2630_v60, 16  ;;  %v2636_v59 = vshll.u32 %v2629_v20, 16  ;;  %v2775_v39 = vor.u32 %v2774_v28, %v2773_v15 }
 0xd73   :  { %v2758_v11 = vsel %vm4966_vm0, %v2754_v34, %v2757_v49  ;;  %v2650_v19 = vrot.slane %v2648_v7, 1  ;;  %vm4967_vm6 = vmmov %vm4966_vm0  ;;  %v2778_v18 = vor.u32 %v2777_v9, %v2776_v10  ;;  %v2865_v8 = vsel %vm403_vm12, %v3557_v4, 0 }
 0xd74   :  { %2761 = vrot.lane.b32.xlu1 %v2758_v11, %s3605_s18  ;;  %v2751_v29 = vsel %vm4967_vm6, %v2747_v53, %v2750_v47  ;;  %v2668_v43 = vrot.slane %v2630_v60, 1  ;;  %v2634_v41 = vshrl.u32 %v2629_v20, 16  ;;  %v2638_v22 = vrot.slane %v2636_v59, 1  ;;  %3491 = vmatpush3.bf16.msra.mxu0 %v2865_v8 }
 0xd75   :  { %2759 = vrot.lane.b32.xlu0 %v2751_v29, %s3605_s18  ;;  %v2651_v62 = vor.u32 %v2650_v19, %v2646_v24  ;;  %v2643_v13 = vrot.slane %v2641_v57, 1  ;;  %vm4968_vm4 = vsmask.f32 4352  ;;  %v2669_v38 = vrot.slane %v4726_v1, 1 }
 0xd76   :  { %v2786_v44 = vsel %vm4968_vm4, %v2782_v25, %v2785_v14  ;;  %v2639_v46 = vor.u32 %v2638_v22, %v2634_v41  ;;  %v2665_v42 = vrot.slane %v2629_v20, 1  ;;  %vm4969_vm9 = vmmov %vm4968_vm4  ;;  %v2666_v45 = vrot.slane %v2631_v61, 1 }
 0xd77   :  { %v2656_v21 = vsel %vm156_vm8, %v2651_v62, %v2655_v12  ;;  %v2779_v27 = vsel %vm4969_vm9, %v2775_v39, %v2778_v18  ;;  %v2670_v26 = vsel %vm189_vm5, %v2668_v43, %v2669_v38 }
 0xd78   :  { %2789 = vrot.lane.b32.xlu1 %v2786_v44, %s3606_s21  ;;  %v2660_v52 = vmax.bf16 %v2656_v21, %v2630_v60  ;;  %v2644_v35 = vsel %vm156_vm8, %v2639_v46, %v2643_v13  ;;  %v2667_v51 = vsel %vm189_vm5, %v2665_v42, %v2666_v45  ;;  %vm4970_vm8 = vcmask 64512  }
 0xd79   :  { %2787 = vrot.lane.b32.xlu0 %v2779_v27, %s3606_s21  ;;  %v2659_v50 = vmax.bf16 %v2644_v35, %v2629_v20  ;;  %vm4971_vm5 = vmmov %vm4970_vm8  ;;  %v3285_v20 = vld [vmem:[%s4912_s3 + $0x15] ss:$0 sm:$0xff] }
 0xd7a   :  { %v2674_v17 = vmax.bf16 %v2670_v26, %v2660_v52 }
 0xd7b   :  { %v2673_v1 = vmax.bf16 %v2667_v51, %v2659_v50 }
 0xd7c   :  { %2795 = vrot.lane.b32.xlu1 %v2674_v17, %s3607_s22 }
 0xd7d   :  { %2793 = vrot.lane.b32.xlu0 %v2673_v1, %s3607_s22 }
 0xdd2   :  { %v2712_v37 = vpop.permute.xlu1 %2711 }
 0xdd3   :  { %v2710_v23 = vpop.permute.xlu0 %2709 }
 0xdd6   :  { %v2744_v54 = vpop.permute.xlu1 %2743 }
 0xdd7   :  { %v2742_v16 = vpop.permute.xlu0 %2741 }
 0xdda   :  { %v2772_v56 = vpop.permute.xlu1 %2771 }
 0xddb   :  { %v2770_v55 = vpop.permute.xlu0 %2769 }
 0xdde   :  { %v2698_v40 = vpop.permute.xlu1 %2697 }
 0xddf   :  { %v2696_v58 = vpop.permute.xlu0 %2695  ;;  %v2800_v34 = vsel %vm4971_vm5, %v4712_v36, %v2698_v40 }
 0xde0   :  { %v2798_v61 = vsel %vm4970_vm8, %v4719_v31, %v2696_v58  ;;  %v2804_v0 = vsel %vm332_vm14, %v2800_v34, %v2712_v37 }
 0xde1   :  { %v2802_v63 = vsel %vm332_vm14, %v2798_v61, %v2710_v23 }
 0xde2   :  { %v2734_v4 = vpop.permute.xlu1 %2733 }
 0xde3   :  { %v2732_v48 = vpop.permute.xlu0 %2731  ;;  %v2808_v33 = vsel %vm337_vm15, %v2804_v0, %v2734_v4 }
 0xde4   :  { %v2806_v6 = vsel %vm337_vm15, %v2802_v63, %v2732_v48  ;;  %v2812_v28 = vsel %vm342_vm2, %v2808_v33, %v2744_v54 }
 0xde5   :  { %v2810_v47 = vsel %vm342_vm2, %v2806_v6, %v2742_v16 }
 0xde6   :  { %v2762_v49 = vpop.permute.xlu1 %2761 }
 0xde7   :  { %v2760_v2 = vpop.permute.xlu0 %2759  ;;  %v2816_v36 = vsel %vm347_vm3, %v2812_v28, %v2762_v49  ;;  %v3302_v28 = vld [vmem:[%s4914_s5 + $0x2] ss:$0 sm:$0xff] }
 0xde8   :  { %v2814_v31 = vsel %vm347_vm3, %v2810_v47, %v2760_v2  ;;  %v2820_v60 = vsel %vm352_vm1, %v2816_v36, %v2772_v56  ;;  %v3293_v36 = vld [vmem:[%s4912_s3 + $0x16] ss:$0 sm:$0xff] }
 0xde9   :  { %v2818_v10 = vsel %vm352_vm1, %v2814_v31, %v2770_v55 }
 0xdea   :  { %v2790_v53 = vpop.permute.xlu1 %2789 }
 0xdeb   :  { %v2788_v15 = vpop.permute.xlu0 %2787  ;;  %v2824_v12 = vsel %vm357_vm13, %v2820_v60, %v2790_v53 }
 0xdec   :  { %v2822_v57 = vsel %vm357_vm13, %v2818_v10, %v2788_v15 }
 0xdee   :  { %v2796_v9 = vpop.permute.xlu1 %2795 }
 0xdef   :  { %v2794_v7 = vpop.permute.xlu0 %2793  ;;  %v2828_v14 = vsel %vm362_vm11, %v2824_v12, %v2796_v9  ;;  %v3092_v12 = vmul.f32 %v3302_v28, %v4700_v3 }
 0xdf0   :  { %v2826_v25 = vsel %vm362_vm11, %v2822_v57, %v2794_v7  ;;  %v3091_v7 = vmul.f32 %v3302_v28, %v4698_v32 }
 0xdf1   :  { %3492 = vmatprep.mubr.msk.bf16.mxu0 %vm398_vm10, %v2826_v25  ;;  %v3093_v25 = vmul.f32 %v3302_v28, %v4702_v5 }
 0xdf2   :  { %3493 = vmatmul.mubr.msk.bf16.vlgmr.msra.gmra.mrb[24].mxu0 %vm398_vm10, %v2828_v14  ;;  %v3094_v14 = vmul.f32 %v3302_v28, %v4704_v30 }
 0xec5   :  { %v3494_v11 = vpop.f32.mrb[24].mxu0 }
 0xec6   :  { %v2901_v24 = vpop.f32.mrb[25].mxu0  ;;  %v2910_v19 = vadd.f32 %v3494_v11, %v3285_v20  ;;  %v3303_v11 = vld [vmem:[%s4914_s5 + $0x3] ss:$0 sm:$0xff] }
 0xec7   :  { %v2902_v59 = vadd.f32 %v3285_v20, %v2901_v24  ;;  %v3495_v29 = vpop.f32.mrb[26].mxu0  ;;  %v3100_v5 = vadd.f32 %v3303_v11, %v3092_v12  ;;  %v3102_v30 = vadd.f32 %v3303_v11, %v3094_v14 }
 0xec8   :  { %v2904_v39 = vpop.f32.mrb[27].mxu0  ;;  %v2913_v8 = vadd.f32 %v3495_v29, %v3285_v20  ;;  %v2931_v43 = vmul.f32 %v2910_v19, %v2910_v19  ;;  %v2919_v21 = vsel %vm332_vm14, %v2910_v19, 0.0 }
 0xec9   :  { %v2929_v18 = vmul.f32 %v2902_v59, %v2902_v59  ;;  %v2905_v62 = vadd.f32 %v3285_v20, %v2904_v39  ;;  %v2916_v41 = vsel %vm332_vm14, %v2902_v59, 0.0  ;;  %v3294_v20 = vld [vmem:[%s4912_s3 + $0x17] ss:$0 sm:$0xff]  ;;  %s3608_s3 = smov [#allocation2]  }
 0xeca   :  { %v2932_v46 = vmul.f32 %v2913_v8, %v2913_v8  ;;  %v2936_v26 = vsel %vm332_vm14, %v2931_v43, 0.0  ;;  %v2921_v35 = vsel %vm332_vm14, %v2913_v8, 0.0  ;;  %s3120_s11 = sshll.u32 %s3608_s3, 4  ;;  %s3121_s11 = int_to_ptr.vmem [resolvable:$true] %s3120_s11 }
 0xecb   :  { %v2917_v22 = vsel %vm332_vm14, %v2905_v62, 0.0  ;;  %v2930_v13 = vmul.f32 %v2905_v62, %v2905_v62  ;;  %v2933_v38 = vsel %vm332_vm14, %v2929_v18, 0.0  ;;  %s3576_s5 = scalar_lea.vmem %s3121_s11, 512  ;;  %p3581_p1 = scmp.lt.s32.totalorder %s3121_s11, %s3121_s11 }
 0xecc   :  { %v2918_v44 = vadd.f32 %v2917_v22, %v2916_v41  ;;  %v2938_v50 = vsel %vm332_vm14, %v2932_v46, 0.0  ;;  %p3577_p0 = scmp.ne.s32.totalorder %s3121_s11, %s3576_s5  ;;  %p3582_p2 = scmp.lt.s32.totalorder %s3576_s5, %s3576_s5 }
 0xecd   :  { %v2934_v42 = vsel %vm332_vm14, %v2930_v13, 0.0 }
 0xece   :  { %v2920_v27 = vadd.f32 %v2919_v21, %v2918_v44  ;;  %v2935_v52 = vadd.f32 %v2934_v42, %v2933_v38  ;;  %p3583_p3 = por %p3582_p2, %p3581_p1 }
 0xed0   :  { %v2922_v45 = vadd.f32 %v2921_v35, %v2920_v27  ;;  %v2937_v17 = vadd.f32 %v2936_v26, %v2935_v52  ;;  %p3584_p4 = pnand %p3583_p3, %p3577_p0 }
 0xed2   :  { %v2923_v51 = vrot.slane %v2922_v45, 4  ;;  %v2939_v1 = vadd.f32 %v2938_v50, %v2937_v17 }
 0xed4   :  { %v2924_v37 = vadd.f32 %v2923_v51, %v2922_v45  ;;  %v2940_v23 = vrot.slane %v2939_v1, 4 }
 0xed6   :  { %v2925_v54 = vrot.slane %v2924_v37, 2  ;;  %v2941_v16 = vadd.f32 %v2940_v23, %v2939_v1 }
 0xed8   :  { %v2926_v56 = vadd.f32 %v2925_v54, %v2924_v37  ;;  %v2942_v55 = vrot.slane %v2941_v16, 2 }
 0xeda   :  { %v2927_v40 = vrot.slane %v2926_v56, 1  ;;  %v2943_v58 = vadd.f32 %v2942_v55, %v2941_v16 }
 0xedc   :  { %v2928_v4 = vadd.f32 %v2927_v40, %v2926_v56  ;;  %v2944_v48 = vrot.slane %v2943_v58, 1 }
 0xede   :  { %v2945_v61 = vadd.f32 %v2944_v48, %v2943_v58  ;;  %v2946_v34 = vmul.f32 0.03125, %v2928_v4 }
 0xee0   :  { %v2947_v49 = vmul.f32 0.03125, %v2945_v61  ;;  %v2948_v63 = vmul.f32 %v2946_v34, %v2946_v34  ;;  %v2951_v2 = vsub.f32 %v2902_v59, %v2946_v34  ;;  %v2952_v0 = vsub.f32 %v2905_v62, %v2946_v34 }
 0xee1   :  { %v2953_v6 = vsub.f32 %v2910_v19, %v2946_v34  ;;  %v2954_v33 = vsub.f32 %v2913_v8, %v2946_v34  ;;  %v3099_v8 = vadd.f32 %v3303_v11, %v3091_v7  ;;  %v3101_v62 = vadd.f32 %v3303_v11, %v3093_v25 }
 0xee2   :  { %v2949_v53 = vsub.f32 %v2947_v49, %v2948_v63 }
 0xee4   :  { %v2950_v47 = vmax.f32 %v2949_v53, 0.0 }
 0xee6   :  { %v2955_v15 = vadd.f32 1e-05, %v2950_v47 }
 0xee8   :  { %3572 = vrsqrt.f32 %v2955_v15 }
 0xef2   :  { %v3573_v31 = vpop.eup %3572 }
 0xef3   :  { %v2957_v10 = vmul.f32 %v3573_v31, %v2951_v2  ;;  %v2958_v9 = vmul.f32 %v3573_v31, %v2952_v0  ;;  %v2959_v60 = vmul.f32 %v3573_v31, %v2953_v6  ;;  %v2960_v57 = vmul.f32 %v3573_v31, %v2954_v33 }
 0xef5   :  { %v2965_v24 = vmul.f32 %v3293_v36, %v2957_v10  ;;  %v2966_v19 = vmul.f32 %v3293_v36, %v2958_v9  ;;  %v2967_v59 = vmul.f32 %v3293_v36, %v2959_v60  ;;  %v2968_v29 = vmul.f32 %v3293_v36, %v2960_v57 }
 0xef7   :  { %v2973_v39 = vadd.f32 %v3294_v20, %v2965_v24  ;;  %v2974_v32 = vadd.f32 %v3294_v20, %v2966_v19  ;;  %v2975_v18 = vadd.f32 %v3294_v20, %v2967_v59  ;;  %v2976_v3 = vadd.f32 %v3294_v20, %v2968_v29 }
 0xef9   :  { %v2977_v43 = vmax.f32 %v2973_v39, 0.0  ;;  %v2978_v41 = vmax.f32 %v2974_v32, 0.0  ;;  %v2979_v22 = vmax.f32 %v2975_v18, 0.0  ;;  %v2980_v13 = vmax.f32 %v2976_v3, 0.0 }
 0xefb   :  { %v3104_v44 = vadd.f32 %v3100_v5, %v2978_v41  ;;  %v3103_v21 = vadd.f32 %v3099_v8, %v2977_v43  ;;  %v3105_v38 = vadd.f32 %v3101_v62, %v2979_v22  ;;  %v3106_v46 = vadd.f32 %v3102_v30, %v2980_v13 }
 0xefd   :  { %v3108_v42 = vmax.f32 %v3104_v44, 0.0  ;;  %v3107_v27 = vmax.f32 %v3103_v21, 0.0  ;;  %v3109_v52 = vmax.f32 %v3105_v38, 0.0  ;;  %v3110_v26 = vmax.f32 %v3106_v46, 0.0 }
 0xeff   :  { %3112 = vst.msk [vmem:[#allocation2 + $0x8] sm:$0xff] %vm332_vm14, %v3108_v42  ;;  %3111 = vst.msk [vmem:[#allocation2] sm:$0xff] %vm332_vm14, %v3107_v27 }
 0xf00   :  { %3113 = vst.msk [vmem:[#allocation2 + $0x10] sm:$0xff] %vm332_vm14, %v3109_v52  ;;  %3114 = vst.msk [vmem:[#allocation2 + $0x18] sm:$0xff] %vm332_vm14, %v3110_v26 }
 0xf01   :  { %3587 = shalt.err (!%p3584_p4)
}
 0xf02   :  { %s3588_s14 = scalar_lea.hbm %s4915_s6, 512 }
 0xf03   :  { %p3589_p5 = scmp.ne.s32.totalorder %s4915_s6, %s3588_s14  ;;  %p3592_p6 = scmp.lt.u32.totalorder %s3588_s14, %s4915_s6 }
 0xf05   :  { %p3594_p7 = pnand %p3592_p6, %p3589_p5 }
 0xf07   :  { %3597 = shalt.err (!%p3594_p7)
}
 0xf08   :  { %s3609_s24 = smov 128  }
 0xf09   :  { %3126 = dma.vmem_to_hbm [thread:$0]  %s3121_s11, 512, %s4915_s6, [#allocation3], %s3609_s24, %s3609_s24, %s3603_s16  }
 0xf0a   :  { %3598 = dma.done.wait [#allocation3], 512  }
 0xf0b   :  { %3599 = vsyncadd [#allocation3], 4294966784 }
 0xf0c   :  { %3130 = vsyncpa [#allocation3], 1 }

</bundles_post_ra>
